<compile_context>
chip_gen: v6e
topology: v6e:2x2x1
jax: 0.10.0
libtpu: 0.0.40
codegen_flags: <defaults>
</compile_context>

<pallas_src>
import functools
import math

import jax
import jax.numpy as jnp
from jax.experimental import pallas as pl
from jax.experimental.pallas import tpu as pltpu


def _window_attention_kernel(x_ref, wqkv_ref, bqkv_ref, wproj_ref, bproj_ref,
                             bias_ref, o_ref, acc_ref, *,
                             num_heads, head_dim, block_windows, tokens,
                             out_flat):
    """One grid step == a block of `block_windows` windows.

    x_ref    : (BW, N, C)   in dtype   VMEM
    wqkv_ref : (C, 3C)      bf16       VMEM (Q columns pre-scaled by 1/sqrt(Dh))
    bqkv_ref : (1, 3C)      f32        VMEM (Q part pre-scaled)
    wproj_ref: (C, C)       bf16       VMEM
    bproj_ref: (1, C)       f32        VMEM
    bias_ref : (H, N, N)    bf16       VMEM (dense relative-position bias)
    o_ref    : (BW, N*C) or (BW, N, C) VMEM (lane-dense when C < 128)
    acc_ref  : (BW, N, C)   f32        VMEM scratch (fused-projection accumulator)
    """
    BW, N, Dh = block_windows, tokens, head_dim
    C = num_heads * Dh
    M = BW * N

    # ---- QKV projection on the MXU: (BW*N, C) @ (C, 3C) --------------------
    x2 = x_ref[...].reshape(M, C).astype(jnp.bfloat16)
    qkv_f32 = jnp.dot(x2, wqkv_ref[...],
                      preferred_element_type=jnp.float32) + bqkv_ref[0]
    # Single bf16 cast of the whole qkv tensor; per-head q/k/v are slices.
    qkv = qkv_f32.astype(jnp.bfloat16).reshape(BW, N, 3 * C)

    # ---- per-head attention with fused output projection --------------------
    # Heads are few here (H=4); a static unroll keeps the body simple. For
    # many-head configs (Swin H=12-24) a lax.fori_loop over a VMEM qkv scratch
    # would bound live ranges better.
    for h in range(num_heads):
        q = qkv[:, :, h * Dh:(h + 1) * Dh]                 # (BW, N, Dh) bf16
        k = qkv[:, :, C + h * Dh:C + (h + 1) * Dh]
        v = qkv[:, :, 2 * C + h * Dh:2 * C + (h + 1) * Dh]

        # Batched over the window axis -- einsum, never .T on a 3-D array.
        s = jnp.einsum("bqd,bkd->bqk", q, k,
                       preferred_element_type=jnp.float32)            # (BW,N,N) f32
        s = s + bias_ref[h][None].astype(jnp.float32)                 # rel-pos bias

        # numerically-stable softmax in f32, normalization deferred to PV out
        s = s - jnp.max(s, axis=-1, keepdims=True)
        p = jnp.exp(s)                                                # unnormalized
        denom = jnp.sum(p, axis=-1, keepdims=True)                    # (BW,N,1)

        pv = jnp.einsum("bqk,bkd->bqd", p.astype(jnp.bfloat16), v,
                        preferred_element_type=jnp.float32)           # (BW,N,Dh) f32
        out_h = (pv * pl.reciprocal(denom, approx=False)).astype(jnp.bfloat16)

        # Fused output projection: (BW,N,Dh) @ (Dh,C) accumulated full-width.
        contrib = jnp.einsum("bnd,dc->bnc", out_h,
                             wproj_ref[h * Dh:(h + 1) * Dh, :],
                             preferred_element_type=jnp.float32)      # (BW,N,C) f32
        if h == 0:
            acc_ref[...] = contrib
        else:
            acc_ref[...] += contrib

    y = acc_ref[...] + bproj_ref[0]                                   # (BW,N,C) f32
    if out_flat:
        o_ref[...] = y.reshape(BW, N * C).astype(o_ref.dtype)         # lane-dense store
    else:
        o_ref[...] = y.astype(o_ref.dtype)


def _relative_position_index(window_size: int) -> jnp.ndarray:
    """Same recipe as the PyTorch __init__ (returns (N, N) int32 index)."""
    coords = jnp.stack(jnp.meshgrid(jnp.arange(window_size),
                                    jnp.arange(window_size),
                                    indexing="ij"))                    # (2, W, W)
    coords_flat = coords.reshape(2, -1)                                # (2, N)
    rel = coords_flat[:, :, None] - coords_flat[:, None, :]            # (2, N, N)
    rel = rel.transpose(1, 2, 0)                                       # (N, N, 2)
    rel0 = rel[..., 0] + window_size - 1
    rel1 = rel[..., 1] + window_size - 1
    return (rel0 * (2 * window_size - 1) + rel1).astype(jnp.int32)     # (N, N)


def prepare_window_attention_params(params, *, window_size, num_heads):
    """One-time, parameter-only preprocessing (do NOT re-run per forward):
       * fold the softmax scale into the Q columns of W_qkv / b_qkv,
       * cast the matmul weights to bf16 (MXU operands),
       * gather the dense (H, N, N) relative-position bias (stored bf16)."""
    w_qkv = params["w_qkv"]
    C = w_qkv.shape[0]
    head_dim = C // num_heads
    scale = head_dim ** (-0.5)
    N = window_size * window_size

    w_qkv = w_qkv.at[:, :C].multiply(scale)
    b_qkv = params["b_qkv"].at[:, :C].multiply(scale)

    rel_idx = _relative_position_index(window_size)
    bias = params["rel_pos_table"][rel_idx.reshape(-1)]                # (N*N, H)
    bias = bias.reshape(N, N, num_heads).transpose(2, 0, 1)            # (H, N, N)

    return {
        "w_qkv": w_qkv.astype(jnp.bfloat16),
        "b_qkv": b_qkv.astype(jnp.float32),
        "w_proj": params["w_proj"].astype(jnp.bfloat16),
        "b_proj": params["b_proj"].astype(jnp.float32),
        "bias": bias.astype(jnp.bfloat16),
    }


def _vmem_capacity_bytes():
    """Generation-aware VMEM capacity (falls back to the v7x 64 MiB floor)."""
    try:
        cap = getattr(pltpu.get_tpu_info(), "vmem_capacity_bytes", None)
        if cap:
            return int(cap)
    except Exception:
        pass
    return 64 << 20


def _choose_block_windows(B_, N, C, in_itemsize, out_itemsize, vmem_budget):
    """Largest divisor of B_ that fits the VMEM budget, preferring MXU-friendly
    M = BW*N (256-, then 128-multiples) and keeping >= 2 grid steps when
    possible (megacore / v7x 2-TC sharding)."""
    per_window = N * C * (2 * in_itemsize + 2 * out_itemsize + 4)  # x, o (dbl-buf) + f32 acc
    cap = max(1, vmem_budget // max(per_window, 1))
    divisors = [d for d in range(1, B_ + 1) if B_ % d == 0]
    cands = [d for d in divisors if d <= cap and d * N <= 1024] or [min(divisors)]

    def score(d):
        m = d * N
        return (B_ // d >= 2, m % 256 == 0, m % 128 == 0, m)

    return max(cands, key=score)


def window_attention(x, prepared, *, window_size, num_heads, block_windows=None):
    """x: (B_, N, C) with N == window_size**2; `prepared` from
    prepare_window_attention_params()."""
    B_, N, C = x.shape
    assert N == window_size * window_size
    assert C % num_heads == 0
    head_dim = C // num_heads

    out_dtype = x.dtype
    in_itemsize = jnp.dtype(x.dtype).itemsize
    out_itemsize = jnp.dtype(out_dtype).itemsize
    vmem_cap = _vmem_capacity_bytes()

    bw = (block_windows if block_windows is not None
          else _choose_block_windows(B_, N, C, in_itemsize, out_itemsize,
                                     int(0.45 * vmem_cap)))
    assert B_ % bw == 0

    # Lane-dense output when C < 128 lanes but N*C is a lane multiple: the
    # final store becomes an unmasked full-width vst (biggest single lever for
    # the store slot, worst on v5e's single vst slot).
    out_flat = (C % 128 != 0) and ((N * C) % 128 == 0)

    kernel = functools.partial(_window_attention_kernel,
                               num_heads=num_heads, head_dim=head_dim,
                               block_windows=bw, tokens=N, out_flat=out_flat)

    # Grid-invariant operands: fetched once, single-buffered.
    inv = dict(pipeline_mode=pl.Buffered(1))
    in_specs = [
        pl.BlockSpec((bw, N, C), lambda b: (b, 0, 0)),                     # x
        pl.BlockSpec((C, 3 * C), lambda b: (0, 0), **inv),                 # W_qkv (bf16)
        pl.BlockSpec((1, 3 * C), lambda b: (0, 0), **inv),                 # b_qkv (f32)
        pl.BlockSpec((C, C), lambda b: (0, 0), **inv),                     # W_proj (bf16)
        pl.BlockSpec((1, C), lambda b: (0, 0), **inv),                     # b_proj (f32)
        pl.BlockSpec((num_heads, N, N), lambda b: (0, 0, 0), **inv),       # rel bias (bf16)
    ]
    if out_flat:
        out_shape = jax.ShapeDtypeStruct((B_, N * C), out_dtype)
        out_specs = pl.BlockSpec((bw, N * C), lambda b: (b, 0))
    else:
        out_shape = jax.ShapeDtypeStruct((B_, N, C), out_dtype)
        out_specs = pl.BlockSpec((bw, N, C), lambda b: (b, 0, 0))

    # VMEM estimate: double-buffered x/o blocks, single-buffered weights/bias,
    # plus the f32 accumulator scratch; capped at ~65% of physical VMEM.
    block_bytes = (bw * N * C * (2 * in_itemsize + 2 * out_itemsize)   # x, o (dbl-buf)
                   + bw * N * C * 4                                    # f32 acc scratch
                   + (C * 3 * C + C * C) * 2                           # weights (bf16)
                   + (3 * C + C) * 4                                   # proj/qkv biases (f32)
                   + num_heads * N * N * 2)                            # rel-pos bias (bf16)
    vmem_limit = int(min(max(2 * block_bytes + (8 << 20), 32 << 20),
                         int(0.65 * vmem_cap)))

    out = pl.pallas_call(
        kernel,
        out_shape=out_shape,
        grid_spec=pltpu.PrefetchScalarGridSpec(
            num_scalar_prefetch=0,
            grid=(B_ // bw,),
            in_specs=in_specs,
            out_specs=out_specs,
            scratch_shapes=[pltpu.VMEM((bw, N, C), jnp.float32)],
        ),
        compiler_params=pltpu.CompilerParams(
            dimension_semantics=("parallel",),
            vmem_limit_bytes=vmem_limit),
    )(x, prepared["w_qkv"], prepared["b_qkv"],
      prepared["w_proj"], prepared["b_proj"], prepared["bias"])

    if out_flat:
        out = out.reshape(B_, N, C)
    return out


def _reference(x, params, *, window_size, num_heads):
    """Pure-JAX f32 reference mirroring the PyTorch forward exactly."""
    B_, N, C = x.shape
    head_dim = C // num_heads
    scale = head_dim ** (-0.5)
    qkv = x @ params["w_qkv"] + params["b_qkv"][0]
    qkv = qkv.reshape(B_, N, 3, num_heads, head_dim).transpose(2, 0, 3, 1, 4)
    q, k, v = qkv[0], qkv[1], qkv[2]                                    # (B_, H, N, Dh)
    attn = jnp.einsum("bhqd,bhkd->bhqk", q, k) * scale
    rel_idx = _relative_position_index(window_size)
    bias = params["rel_pos_table"][rel_idx.reshape(-1)]
    bias = bias.reshape(N, N, num_heads).transpose(2, 0, 1)[None]       # (1, H, N, N)
    attn = attn + bias
    attn = jax.nn.softmax(attn, axis=-1)
    out = jnp.einsum("bhqk,bhkd->bhqd", attn, v)
    out = out.transpose(0, 2, 1, 3).reshape(B_, N, C)
    return out @ params["w_proj"] + params["b_proj"][0]


def init_params(key, dim, window_size, num_heads):
    k1, k2, k3 = jax.random.split(key, 3)
    table_size = (2 * window_size - 1) * (2 * window_size - 1)
    return {
        # y = x @ W + b convention (W = torch weight transposed).
        "w_qkv": (jax.random.normal(k1, (dim, 3 * dim), jnp.float32)
                  * (1.0 / math.sqrt(dim))),
        "b_qkv": jnp.zeros((1, 3 * dim), jnp.float32),
        "w_proj": (jax.random.normal(k2, (dim, dim), jnp.float32)
                   * (1.0 / math.sqrt(dim))),
        "b_proj": jnp.zeros((1, dim), jnp.float32),
        # trunc_normal(std=0.02) approximated by plain normal*0.02.
        "rel_pos_table": (jax.random.normal(k3, (table_size, num_heads),
                                            jnp.float32) * 0.02),
    }


if __name__ == "__main__":
    dim = 32
    window_size = 4          # N = 16 tokens per window
    num_heads = 4
    B_ = 16                  # num_windows * batch  (-> BW=8, grid of 2 steps)

    key = jax.random.PRNGKey(0)
    pkey, xkey = jax.random.split(key)
    params = init_params(pkey, dim, window_size, num_heads)
    x = jax.random.normal(xkey, (B_, window_size * window_size, dim), jnp.float32)

    prepared = prepare_window_attention_params(params, window_size=window_size,
                                               num_heads=num_heads)
    out = window_attention(x, prepared, window_size=window_size,
                           num_heads=num_heads)
    out = jax.block_until_ready(out)

    ref = _reference(x, params, window_size=window_size, num_heads=num_heads)
    assert out.shape == (B_, window_size * window_size, dim)
    max_err = float(jnp.max(jnp.abs(out.astype(jnp.float32) - ref)))
    # bf16 MXU operands -> compare at bf16-level tolerance.
    assert jnp.allclose(out.astype(jnp.float32), ref, atol=7.5e-2, rtol=7.5e-2), (
        f"max abs err {max_err}")
    print("KERNEL_OK")
</pallas_src>

<mosaic_0001>
module attributes {stable_mosaic.version = 11 : i64} {
  func.func @_window_attention_kernel(%arg0: i32, %arg1: memref<8x16x32xf32, #tpu.memory_space<vmem>>, %arg2: memref<32x96xbf16, #tpu.memory_space<vmem>>, %arg3: memref<1x96xf32, #tpu.memory_space<vmem>>, %arg4: memref<32x32xbf16, #tpu.memory_space<vmem>>, %arg5: memref<1x32xf32, #tpu.memory_space<vmem>>, %arg6: memref<4x16x16xbf16, #tpu.memory_space<vmem>>, %arg7: memref<8x512xf32, #tpu.memory_space<vmem>>, %arg8: memref<8x16x32xf32, #tpu.memory_space<vmem>>) attributes {dimension_semantics = [#tpu.dimension_semantics<parallel>], iteration_bounds = array<i64: 2>, scalar_prefetch = 0 : i64, scratch_operands = 1 : i64, tpu.core_type = #tpu.core_type<tc>, window_params = [{transform_indices = @transform_0, window_bounds = array<i64: 8, 16, 32>}, {pipeline_mode = #tpu.pipeline_mode<synchronous>, transform_indices = @transform_1, window_bounds = array<i64: 32, 96>}, {pipeline_mode = #tpu.pipeline_mode<synchronous>, transform_indices = @transform_2, window_bounds = array<i64: 1, 96>}, {pipeline_mode = #tpu.pipeline_mode<synchronous>, transform_indices = @transform_3, window_bounds = array<i64: 32, 32>}, {pipeline_mode = #tpu.pipeline_mode<synchronous>, transform_indices = @transform_4, window_bounds = array<i64: 1, 32>}, {pipeline_mode = #tpu.pipeline_mode<synchronous>, transform_indices = @transform_5, window_bounds = array<i64: 4, 16, 16>}, {transform_indices = @transform_6, window_bounds = array<i64: 8, 512>}]} {
    %c0 = arith.constant 0 : index
    %c0_0 = arith.constant 0 : index
    %c0_1 = arith.constant 0 : index
    %0 = vector.load %arg1[%c0, %c0_0, %c0_1] : memref<8x16x32xf32, #tpu.memory_space<vmem>>, vector<8x16x32xf32>
    %1 = vector.shape_cast %0 : vector<8x16x32xf32> to vector<128x32xf32>
    %2 = arith.truncf %1 : vector<128x32xf32> to vector<128x32xbf16>
    %c0_2 = arith.constant 0 : index
    %c0_3 = arith.constant 0 : index
    %3 = vector.load %arg2[%c0_2, %c0_3] : memref<32x96xbf16, #tpu.memory_space<vmem>>, vector<32x96xbf16>
    %cst = arith.constant dense<0.000000e+00> : vector<128x96xf32>
    %4 = tpu.matmul %2, %3, %cst {dimension_numbers = #tpu.dot_dimension_numbers<[1], [0], [0], [1], [0, 0, 1, 1], [], []>} : vector<128x32xbf16>, vector<32x96xbf16>, vector<128x96xf32> -> vector<128x96xf32>
    %c0_4 = arith.constant 0 : index
    %c0_5 = arith.constant 0 : index
    %5 = vector.load %arg3[%c0_4, %c0_5] : memref<1x96xf32, #tpu.memory_space<vmem>>, vector<1x96xf32>
    %6 = vector.shape_cast %5 : vector<1x96xf32> to vector<96xf32>
    %7 = vector.shape_cast %6 : vector<96xf32> to vector<1x96xf32>
    %8 = vector.broadcast %7 : vector<1x96xf32> to vector<128x96xf32>
    %9 = arith.addf %4, %8 : vector<128x96xf32>
    %10 = arith.truncf %9 : vector<128x96xf32> to vector<128x96xbf16>
    %11 = vector.shape_cast %10 : vector<128x96xbf16> to vector<8x16x96xbf16>
    %12 = vector.extract_strided_slice %11 {offsets = [0, 0, 0], sizes = [8, 16, 8], strides = [1, 1, 1]} : vector<8x16x96xbf16> to vector<8x16x8xbf16>
    %13 = vector.extract_strided_slice %11 {offsets = [0, 0, 32], sizes = [8, 16, 8], strides = [1, 1, 1]} : vector<8x16x96xbf16> to vector<8x16x8xbf16>
    %14 = vector.extract_strided_slice %11 {offsets = [0, 0, 64], sizes = [8, 16, 8], strides = [1, 1, 1]} : vector<8x16x96xbf16> to vector<8x16x8xbf16>
    "tpu.trace_start"() <{level = 10 : i32, message = "bqd,bkd->bqk"}> : () -> ()
    %cst_6 = arith.constant dense<0.000000e+00> : vector<8x16x16xf32>
    %15 = tpu.matmul %12, %13, %cst_6 {dimension_numbers = #tpu.dot_dimension_numbers<[2], [2], [1], [1], [0, 0, 0, 1, 1, 1], [0], [0]>} : vector<8x16x8xbf16>, vector<8x16x8xbf16>, vector<8x16x16xf32> -> vector<8x16x16xf32>
    "tpu.trace_stop"() : () -> ()
    %c0_7 = arith.constant 0 : index
    %c0_8 = arith.constant 0 : index
    %c0_9 = arith.constant 0 : index
    %16 = vector.load %arg6[%c0_7, %c0_8, %c0_9] : memref<4x16x16xbf16, #tpu.memory_space<vmem>>, vector<1x16x16xbf16>
    %17 = vector.shape_cast %16 : vector<1x16x16xbf16> to vector<16x16xbf16>
    %18 = vector.shape_cast %17 : vector<16x16xbf16> to vector<1x16x16xbf16>
    %19 = arith.extf %18 : vector<1x16x16xbf16> to vector<1x16x16xf32>
    %20 = vector.broadcast %19 : vector<1x16x16xf32> to vector<8x16x16xf32>
    %21 = arith.addf %15, %20 : vector<8x16x16xf32>
    %cst_10 = arith.constant dense<0xFF800000> : vector<8x16xf32>
    %22 = vector.multi_reduction <maximumf>, %21, %cst_10 [2] : vector<8x16x16xf32> to vector<8x16xf32>
    %23 = vector.shape_cast %22 : vector<8x16xf32> to vector<8x16x1xf32>
    %24 = vector.broadcast %23 : vector<8x16x1xf32> to vector<8x16x16xf32>
    %25 = arith.subf %21, %24 : vector<8x16x16xf32>
    %26 = math.exp %25 : vector<8x16x16xf32>
    %cst_11 = arith.constant dense<0.000000e+00> : vector<8x16xf32>
    %27 = vector.multi_reduction <add>, %26, %cst_11 [2] : vector<8x16x16xf32> to vector<8x16xf32>
    %28 = vector.shape_cast %27 : vector<8x16xf32> to vector<8x16x1xf32>
    %29 = arith.truncf %26 : vector<8x16x16xf32> to vector<8x16x16xbf16>
    "tpu.trace_start"() <{level = 10 : i32, message = "bqk,bkd->bqd"}> : () -> ()
    %cst_12 = arith.constant dense<0.000000e+00> : vector<8x16x8xf32>
    %30 = tpu.matmul %29, %14, %cst_12 {dimension_numbers = #tpu.dot_dimension_numbers<[2], [1], [1], [2], [0, 0, 0, 1, 1, 2], [0], [0]>} : vector<8x16x16xbf16>, vector<8x16x8xbf16>, vector<8x16x8xf32> -> vector<8x16x8xf32>
    "tpu.trace_stop"() : () -> ()
    %31 = tpu.reciprocal %28 : vector<8x16x1xf32> -> vector<8x16x1xf32>
    %32 = vector.broadcast %31 : vector<8x16x1xf32> to vector<8x16x8xf32>
    %33 = arith.mulf %30, %32 : vector<8x16x8xf32>
    %34 = arith.truncf %33 : vector<8x16x8xf32> to vector<8x16x8xbf16>
    %c0_13 = arith.constant 0 : index
    %c0_14 = arith.constant 0 : index
    %35 = vector.load %arg4[%c0_13, %c0_14] : memref<32x32xbf16, #tpu.memory_space<vmem>>, vector<8x32xbf16>
    "tpu.trace_start"() <{level = 10 : i32, message = "bnd,dc->bnc"}> : () -> ()
    %cst_15 = arith.constant dense<0.000000e+00> : vector<8x16x32xf32>
    %36 = tpu.matmul %34, %35, %cst_15 {dimension_numbers = #tpu.dot_dimension_numbers<[2], [0], [0, 1], [1], [0, 0, 0, 1, 1, 1], [], []>} : vector<8x16x8xbf16>, vector<8x32xbf16>, vector<8x16x32xf32> -> vector<8x16x32xf32>
    "tpu.trace_stop"() : () -> ()
    %c0_16 = arith.constant 0 : index
    %c0_17 = arith.constant 0 : index
    %c0_18 = arith.constant 0 : index
    %37 = vector.load %arg8[%c0_16, %c0_17, %c0_18] : memref<8x16x32xf32, #tpu.memory_space<vmem>>, vector<8x16x32xf32>
    tpu.vector_store %arg8[%c0_16, %c0_17, %c0_18], %36 {strides = array<i32>} : memref<8x16x32xf32, #tpu.memory_space<vmem>>, vector<8x16x32xf32>,
    %38 = vector.extract_strided_slice %11 {offsets = [0, 0, 8], sizes = [8, 16, 8], strides = [1, 1, 1]} : vector<8x16x96xbf16> to vector<8x16x8xbf16>
    %39 = vector.extract_strided_slice %11 {offsets = [0, 0, 40], sizes = [8, 16, 8], strides = [1, 1, 1]} : vector<8x16x96xbf16> to vector<8x16x8xbf16>
    %40 = vector.extract_strided_slice %11 {offsets = [0, 0, 72], sizes = [8, 16, 8], strides = [1, 1, 1]} : vector<8x16x96xbf16> to vector<8x16x8xbf16>
    "tpu.trace_start"() <{level = 10 : i32, message = "bqd,bkd->bqk"}> : () -> ()
    %cst_19 = arith.constant dense<0.000000e+00> : vector<8x16x16xf32>
    %41 = tpu.matmul %38, %39, %cst_19 {dimension_numbers = #tpu.dot_dimension_numbers<[2], [2], [1], [1], [0, 0, 0, 1, 1, 1], [0], [0]>} : vector<8x16x8xbf16>, vector<8x16x8xbf16>, vector<8x16x16xf32> -> vector<8x16x16xf32>
    "tpu.trace_stop"() : () -> ()
    %c1 = arith.constant 1 : index
    %c0_20 = arith.constant 0 : index
    %c0_21 = arith.constant 0 : index
    %42 = vector.load %arg6[%c1, %c0_20, %c0_21] : memref<4x16x16xbf16, #tpu.memory_space<vmem>>, vector<1x16x16xbf16>
    %43 = vector.shape_cast %42 : vector<1x16x16xbf16> to vector<16x16xbf16>
    %44 = vector.shape_cast %43 : vector<16x16xbf16> to vector<1x16x16xbf16>
    %45 = arith.extf %44 : vector<1x16x16xbf16> to vector<1x16x16xf32>
    %46 = vector.broadcast %45 : vector<1x16x16xf32> to vector<8x16x16xf32>
    %47 = arith.addf %41, %46 : vector<8x16x16xf32>
    %cst_22 = arith.constant dense<0xFF800000> : vector<8x16xf32>
    %48 = vector.multi_reduction <maximumf>, %47, %cst_22 [2] : vector<8x16x16xf32> to vector<8x16xf32>
    %49 = vector.shape_cast %48 : vector<8x16xf32> to vector<8x16x1xf32>
    %50 = vector.broadcast %49 : vector<8x16x1xf32> to vector<8x16x16xf32>
    %51 = arith.subf %47, %50 : vector<8x16x16xf32>
    %52 = math.exp %51 : vector<8x16x16xf32>
    %cst_23 = arith.constant dense<0.000000e+00> : vector<8x16xf32>
    %53 = vector.multi_reduction <add>, %52, %cst_23 [2] : vector<8x16x16xf32> to vector<8x16xf32>
    %54 = vector.shape_cast %53 : vector<8x16xf32> to vector<8x16x1xf32>
    %55 = arith.truncf %52 : vector<8x16x16xf32> to vector<8x16x16xbf16>
    "tpu.trace_start"() <{level = 10 : i32, message = "bqk,bkd->bqd"}> : () -> ()
    %cst_24 = arith.constant dense<0.000000e+00> : vector<8x16x8xf32>
    %56 = tpu.matmul %55, %40, %cst_24 {dimension_numbers = #tpu.dot_dimension_numbers<[2], [1], [1], [2], [0, 0, 0, 1, 1, 2], [0], [0]>} : vector<8x16x16xbf16>, vector<8x16x8xbf16>, vector<8x16x8xf32> -> vector<8x16x8xf32>
    "tpu.trace_stop"() : () -> ()
    %57 = tpu.reciprocal %54 : vector<8x16x1xf32> -> vector<8x16x1xf32>
    %58 = vector.broadcast %57 : vector<8x16x1xf32> to vector<8x16x8xf32>
    %59 = arith.mulf %56, %58 : vector<8x16x8xf32>
    %60 = arith.truncf %59 : vector<8x16x8xf32> to vector<8x16x8xbf16>
    %c8 = arith.constant 8 : index
    %c0_25 = arith.constant 0 : index
    %61 = vector.load %arg4[%c8, %c0_25] : memref<32x32xbf16, #tpu.memory_space<vmem>>, vector<8x32xbf16>
    "tpu.trace_start"() <{level = 10 : i32, message = "bnd,dc->bnc"}> : () -> ()
    %cst_26 = arith.constant dense<0.000000e+00> : vector<8x16x32xf32>
    %62 = tpu.matmul %60, %61, %cst_26 {dimension_numbers = #tpu.dot_dimension_numbers<[2], [0], [0, 1], [1], [0, 0, 0, 1, 1, 1], [], []>} : vector<8x16x8xbf16>, vector<8x32xbf16>, vector<8x16x32xf32> -> vector<8x16x32xf32>
    "tpu.trace_stop"() : () -> ()
    %c0_27 = arith.constant 0 : index
    %c0_28 = arith.constant 0 : index
    %c0_29 = arith.constant 0 : index
    %63 = vector.load %arg8[%c0_27, %c0_28, %c0_29] : memref<8x16x32xf32, #tpu.memory_space<vmem>>, vector<8x16x32xf32>
    %64 = arith.addf %63, %62 : vector<8x16x32xf32>
    %c0_30 = arith.constant 0 : index
    %c0_31 = arith.constant 0 : index
    %c0_32 = arith.constant 0 : index
    %65 = vector.load %arg8[%c0_30, %c0_31, %c0_32] : memref<8x16x32xf32, #tpu.memory_space<vmem>>, vector<8x16x32xf32>
    tpu.vector_store %arg8[%c0_30, %c0_31, %c0_32], %64 {strides = array<i32>} : memref<8x16x32xf32, #tpu.memory_space<vmem>>, vector<8x16x32xf32>,
    %66 = vector.extract_strided_slice %11 {offsets = [0, 0, 16], sizes = [8, 16, 8], strides = [1, 1, 1]} : vector<8x16x96xbf16> to vector<8x16x8xbf16>
    %67 = vector.extract_strided_slice %11 {offsets = [0, 0, 48], sizes = [8, 16, 8], strides = [1, 1, 1]} : vector<8x16x96xbf16> to vector<8x16x8xbf16>
    %68 = vector.extract_strided_slice %11 {offsets = [0, 0, 80], sizes = [8, 16, 8], strides = [1, 1, 1]} : vector<8x16x96xbf16> to vector<8x16x8xbf16>
    "tpu.trace_start"() <{level = 10 : i32, message = "bqd,bkd->bqk"}> : () -> ()
    %cst_33 = arith.constant dense<0.000000e+00> : vector<8x16x16xf32>
    %69 = tpu.matmul %66, %67, %cst_33 {dimension_numbers = #tpu.dot_dimension_numbers<[2], [2], [1], [1], [0, 0, 0, 1, 1, 1], [0], [0]>} : vector<8x16x8xbf16>, vector<8x16x8xbf16>, vector<8x16x16xf32> -> vector<8x16x16xf32>
    "tpu.trace_stop"() : () -> ()
    %c2 = arith.constant 2 : index
    %c0_34 = arith.constant 0 : index
    %c0_35 = arith.constant 0 : index
    %70 = vector.load %arg6[%c2, %c0_34, %c0_35] : memref<4x16x16xbf16, #tpu.memory_space<vmem>>, vector<1x16x16xbf16>
    %71 = vector.shape_cast %70 : vector<1x16x16xbf16> to vector<16x16xbf16>
    %72 = vector.shape_cast %71 : vector<16x16xbf16> to vector<1x16x16xbf16>
    %73 = arith.extf %72 : vector<1x16x16xbf16> to vector<1x16x16xf32>
    %74 = vector.broadcast %73 : vector<1x16x16xf32> to vector<8x16x16xf32>
    %75 = arith.addf %69, %74 : vector<8x16x16xf32>
    %cst_36 = arith.constant dense<0xFF800000> : vector<8x16xf32>
    %76 = vector.multi_reduction <maximumf>, %75, %cst_36 [2] : vector<8x16x16xf32> to vector<8x16xf32>
    %77 = vector.shape_cast %76 : vector<8x16xf32> to vector<8x16x1xf32>
    %78 = vector.broadcast %77 : vector<8x16x1xf32> to vector<8x16x16xf32>
    %79 = arith.subf %75, %78 : vector<8x16x16xf32>
    %80 = math.exp %79 : vector<8x16x16xf32>
    %cst_37 = arith.constant dense<0.000000e+00> : vector<8x16xf32>
    %81 = vector.multi_reduction <add>, %80, %cst_37 [2] : vector<8x16x16xf32> to vector<8x16xf32>
    %82 = vector.shape_cast %81 : vector<8x16xf32> to vector<8x16x1xf32>
    %83 = arith.truncf %80 : vector<8x16x16xf32> to vector<8x16x16xbf16>
    "tpu.trace_start"() <{level = 10 : i32, message = "bqk,bkd->bqd"}> : () -> ()
    %cst_38 = arith.constant dense<0.000000e+00> : vector<8x16x8xf32>
    %84 = tpu.matmul %83, %68, %cst_38 {dimension_numbers = #tpu.dot_dimension_numbers<[2], [1], [1], [2], [0, 0, 0, 1, 1, 2], [0], [0]>} : vector<8x16x16xbf16>, vector<8x16x8xbf16>, vector<8x16x8xf32> -> vector<8x16x8xf32>
    "tpu.trace_stop"() : () -> ()
    %85 = tpu.reciprocal %82 : vector<8x16x1xf32> -> vector<8x16x1xf32>
    %86 = vector.broadcast %85 : vector<8x16x1xf32> to vector<8x16x8xf32>
    %87 = arith.mulf %84, %86 : vector<8x16x8xf32>
    %88 = arith.truncf %87 : vector<8x16x8xf32> to vector<8x16x8xbf16>
    %c16 = arith.constant 16 : index
    %c0_39 = arith.constant 0 : index
    %89 = vector.load %arg4[%c16, %c0_39] : memref<32x32xbf16, #tpu.memory_space<vmem>>, vector<8x32xbf16>
    "tpu.trace_start"() <{level = 10 : i32, message = "bnd,dc->bnc"}> : () -> ()
    %cst_40 = arith.constant dense<0.000000e+00> : vector<8x16x32xf32>
    %90 = tpu.matmul %88, %89, %cst_40 {dimension_numbers = #tpu.dot_dimension_numbers<[2], [0], [0, 1], [1], [0, 0, 0, 1, 1, 1], [], []>} : vector<8x16x8xbf16>, vector<8x32xbf16>, vector<8x16x32xf32> -> vector<8x16x32xf32>
    "tpu.trace_stop"() : () -> ()
    %c0_41 = arith.constant 0 : index
    %c0_42 = arith.constant 0 : index
    %c0_43 = arith.constant 0 : index
    %91 = vector.load %arg8[%c0_41, %c0_42, %c0_43] : memref<8x16x32xf32, #tpu.memory_space<vmem>>, vector<8x16x32xf32>
    %92 = arith.addf %91, %90 : vector<8x16x32xf32>
    %c0_44 = arith.constant 0 : index
    %c0_45 = arith.constant 0 : index
    %c0_46 = arith.constant 0 : index
    %93 = vector.load %arg8[%c0_44, %c0_45, %c0_46] : memref<8x16x32xf32, #tpu.memory_space<vmem>>, vector<8x16x32xf32>
    tpu.vector_store %arg8[%c0_44, %c0_45, %c0_46], %92 {strides = array<i32>} : memref<8x16x32xf32, #tpu.memory_space<vmem>>, vector<8x16x32xf32>,
    %94 = vector.extract_strided_slice %11 {offsets = [0, 0, 24], sizes = [8, 16, 8], strides = [1, 1, 1]} : vector<8x16x96xbf16> to vector<8x16x8xbf16>
    %95 = vector.extract_strided_slice %11 {offsets = [0, 0, 56], sizes = [8, 16, 8], strides = [1, 1, 1]} : vector<8x16x96xbf16> to vector<8x16x8xbf16>
    %96 = vector.extract_strided_slice %11 {offsets = [0, 0, 88], sizes = [8, 16, 8], strides = [1, 1, 1]} : vector<8x16x96xbf16> to vector<8x16x8xbf16>
    "tpu.trace_start"() <{level = 10 : i32, message = "bqd,bkd->bqk"}> : () -> ()
    %cst_47 = arith.constant dense<0.000000e+00> : vector<8x16x16xf32>
    %97 = tpu.matmul %94, %95, %cst_47 {dimension_numbers = #tpu.dot_dimension_numbers<[2], [2], [1], [1], [0, 0, 0, 1, 1, 1], [0], [0]>} : vector<8x16x8xbf16>, vector<8x16x8xbf16>, vector<8x16x16xf32> -> vector<8x16x16xf32>
    "tpu.trace_stop"() : () -> ()
    %c3 = arith.constant 3 : index
    %c0_48 = arith.constant 0 : index
    %c0_49 = arith.constant 0 : index
    %98 = vector.load %arg6[%c3, %c0_48, %c0_49] : memref<4x16x16xbf16, #tpu.memory_space<vmem>>, vector<1x16x16xbf16>
    %99 = vector.shape_cast %98 : vector<1x16x16xbf16> to vector<16x16xbf16>
    %100 = vector.shape_cast %99 : vector<16x16xbf16> to vector<1x16x16xbf16>
    %101 = arith.extf %100 : vector<1x16x16xbf16> to vector<1x16x16xf32>
    %102 = vector.broadcast %101 : vector<1x16x16xf32> to vector<8x16x16xf32>
    %103 = arith.addf %97, %102 : vector<8x16x16xf32>
    %cst_50 = arith.constant dense<0xFF800000> : vector<8x16xf32>
    %104 = vector.multi_reduction <maximumf>, %103, %cst_50 [2] : vector<8x16x16xf32> to vector<8x16xf32>
    %105 = vector.shape_cast %104 : vector<8x16xf32> to vector<8x16x1xf32>
    %106 = vector.broadcast %105 : vector<8x16x1xf32> to vector<8x16x16xf32>
    %107 = arith.subf %103, %106 : vector<8x16x16xf32>
    %108 = math.exp %107 : vector<8x16x16xf32>
    %cst_51 = arith.constant dense<0.000000e+00> : vector<8x16xf32>
    %109 = vector.multi_reduction <add>, %108, %cst_51 [2] : vector<8x16x16xf32> to vector<8x16xf32>
    %110 = vector.shape_cast %109 : vector<8x16xf32> to vector<8x16x1xf32>
    %111 = arith.truncf %108 : vector<8x16x16xf32> to vector<8x16x16xbf16>
    "tpu.trace_start"() <{level = 10 : i32, message = "bqk,bkd->bqd"}> : () -> ()
    %cst_52 = arith.constant dense<0.000000e+00> : vector<8x16x8xf32>
    %112 = tpu.matmul %111, %96, %cst_52 {dimension_numbers = #tpu.dot_dimension_numbers<[2], [1], [1], [2], [0, 0, 0, 1, 1, 2], [0], [0]>} : vector<8x16x16xbf16>, vector<8x16x8xbf16>, vector<8x16x8xf32> -> vector<8x16x8xf32>
    "tpu.trace_stop"() : () -> ()
    %113 = tpu.reciprocal %110 : vector<8x16x1xf32> -> vector<8x16x1xf32>
    %114 = vector.broadcast %113 : vector<8x16x1xf32> to vector<8x16x8xf32>
    %115 = arith.mulf %112, %114 : vector<8x16x8xf32>
    %116 = arith.truncf %115 : vector<8x16x8xf32> to vector<8x16x8xbf16>
    %c24 = arith.constant 24 : index
    %c0_53 = arith.constant 0 : index
    %117 = vector.load %arg4[%c24, %c0_53] : memref<32x32xbf16, #tpu.memory_space<vmem>>, vector<8x32xbf16>
    "tpu.trace_start"() <{level = 10 : i32, message = "bnd,dc->bnc"}> : () -> ()
    %cst_54 = arith.constant dense<0.000000e+00> : vector<8x16x32xf32>
    %118 = tpu.matmul %116, %117, %cst_54 {dimension_numbers = #tpu.dot_dimension_numbers<[2], [0], [0, 1], [1], [0, 0, 0, 1, 1, 1], [], []>} : vector<8x16x8xbf16>, vector<8x32xbf16>, vector<8x16x32xf32> -> vector<8x16x32xf32>
    "tpu.trace_stop"() : () -> ()
    %c0_55 = arith.constant 0 : index
    %c0_56 = arith.constant 0 : index
    %c0_57 = arith.constant 0 : index
    %119 = vector.load %arg8[%c0_55, %c0_56, %c0_57] : memref<8x16x32xf32, #tpu.memory_space<vmem>>, vector<8x16x32xf32>
    %120 = arith.addf %119, %118 : vector<8x16x32xf32>
    %c0_58 = arith.constant 0 : index
    %c0_59 = arith.constant 0 : index
    %c0_60 = arith.constant 0 : index
    %121 = vector.load %arg8[%c0_58, %c0_59, %c0_60] : memref<8x16x32xf32, #tpu.memory_space<vmem>>, vector<8x16x32xf32>
    tpu.vector_store %arg8[%c0_58, %c0_59, %c0_60], %120 {strides = array<i32>} : memref<8x16x32xf32, #tpu.memory_space<vmem>>, vector<8x16x32xf32>,
    %c0_61 = arith.constant 0 : index
    %c0_62 = arith.constant 0 : index
    %c0_63 = arith.constant 0 : index
    %122 = vector.load %arg8[%c0_61, %c0_62, %c0_63] : memref<8x16x32xf32, #tpu.memory_space<vmem>>, vector<8x16x32xf32>
    %c0_64 = arith.constant 0 : index
    %c0_65 = arith.constant 0 : index
    %123 = vector.load %arg5[%c0_64, %c0_65] : memref<1x32xf32, #tpu.memory_space<vmem>>, vector<1x32xf32>
    %124 = vector.shape_cast %123 : vector<1x32xf32> to vector<32xf32>
    %125 = vector.shape_cast %124 : vector<32xf32> to vector<1x1x32xf32>
    %126 = vector.broadcast %125 : vector<1x1x32xf32> to vector<8x16x32xf32>
    %127 = arith.addf %122, %126 : vector<8x16x32xf32>
    %128 = vector.shape_cast %127 : vector<8x16x32xf32> to vector<8x512xf32>
    %c0_66 = arith.constant 0 : index
    %c0_67 = arith.constant 0 : index
    %129 = vector.load %arg7[%c0_66, %c0_67] : memref<8x512xf32, #tpu.memory_space<vmem>>, vector<8x512xf32>
    tpu.vector_store %arg7[%c0_66, %c0_67], %128 {strides = array<i32>} : memref<8x512xf32, #tpu.memory_space<vmem>>, vector<8x512xf32>,
    return
  }
  func.func @transform_0(%arg0: i32) -> (i32, i32, i32) {
    %c0_i32 = arith.constant 0 : i32
    %c0_i32_0 = arith.constant 0 : i32
    %c0_i32_1 = arith.constant 0 : i32
    return %arg0, %c0_i32, %c0_i32_0 : i32, i32, i32
  }
  func.func @transform_1(%arg0: i32) -> (i32, i32) {
    %c0_i32 = arith.constant 0 : i32
    %c0_i32_0 = arith.constant 0 : i32
    %c0_i32_1 = arith.constant 0 : i32
    return %c0_i32, %c0_i32_0 : i32, i32
  }
  func.func @transform_2(%arg0: i32) -> (i32, i32) {
    %c0_i32 = arith.constant 0 : i32
    %c0_i32_0 = arith.constant 0 : i32
    %c0_i32_1 = arith.constant 0 : i32
    return %c0_i32, %c0_i32_0 : i32, i32
  }
  func.func @transform_3(%arg0: i32) -> (i32, i32) {
    %c0_i32 = arith.constant 0 : i32
    %c0_i32_0 = arith.constant 0 : i32
    %c0_i32_1 = arith.constant 0 : i32
    return %c0_i32, %c0_i32_0 : i32, i32
  }
  func.func @transform_4(%arg0: i32) -> (i32, i32) {
    %c0_i32 = arith.constant 0 : i32
    %c0_i32_0 = arith.constant 0 : i32
    %c0_i32_1 = arith.constant 0 : i32
    return %c0_i32, %c0_i32_0 : i32, i32
  }
  func.func @transform_5(%arg0: i32) -> (i32, i32, i32) {
    %c0_i32 = arith.constant 0 : i32
    %c0_i32_0 = arith.constant 0 : i32
    %c0_i32_1 = arith.constant 0 : i32
    %c0_i32_2 = arith.constant 0 : i32
    return %c0_i32, %c0_i32_0, %c0_i32_1 : i32, i32, i32
  }
  func.func @transform_6(%arg0: i32) -> (i32, i32) {
    %c0_i32 = arith.constant 0 : i32
    %c0_i32_0 = arith.constant 0 : i32
    return %arg0, %c0_i32 : i32, i32
  }
}

</mosaic_0001>

<bundles_post_ra>
// kernel: tpu_custom_call.1
= control target key start
LH: loop header
LB: loop body
LE: loop exit
PB: predicated region body
PF: predicated region fallthrough
CT: control target
= control target key end

     0   :  { %11 = vsyncpa [#allocation4], 0  ;;  %s8464_s0 = inlined_call_operand.hbm [shape: f32[16,16,32], index: 0, kind: input, shape index: {}]   ;;  %s8465_s1 = inlined_call_operand.hbm [shape: bf16[32,96], index: 1, kind: input, shape index: {}]   ;;  %s8466_s2 = inlined_call_operand.vmem [shape: f32[1,96], index: 2, kind: input, shape index: {}]   ;;  %s8467_s3 = inlined_call_operand.hbm [shape: bf16[32,32], index: 3, kind: input, shape index: {}]   ;;  %s8468_s4 = inlined_call_operand.vmem [shape: f32[1,32], index: 4, kind: input, shape index: {}]   ;;  %s8469_s5 = inlined_call_operand.hbm [shape: bf16[4,16,16], index: 5, kind: input, shape index: {}]   ;;  %s8470_s6 = inlined_call_operand.hbm [shape: f32[16,512], index: 6, kind: output, shape index: {}]  }
   0x1   :  { %13 = vsyncpa [#allocation4 + $0x1], 0 }
   0x2   :  { %14 = vsyncpa [#allocation7], 0 }
   0x3   :  { %15 = vsyncpa [#allocation10], 0 }
   0x4   :  { %16 = vsyncpa [#allocation5], 0 }
   0x5   :  { %18 = vsyncpa [#allocation5 + $0x1], 0  ;;  %s6964_s21 = smov 0   ;;  %s6966_s22 = smov 0  }
   0x6   :  { %s6968_s23 = smov 0   ;;  %s6970_s24 = smov 0  }
   0x7 LB: > { %s6985_s25 = sadd.s32 4294967295, %s6902_s24   ;;  %s5563_s26 = sadd.s32 4294967294, %s6902_s24   ;;  %s6902_s24 = sphi %s6970_s24, %s8494_s24   ;;  %s6898_s23 = sphi %s6968_s23, %s8493_s23   ;;  %s6894_s22 = sphi %s6966_s22, %s8492_s22   ;;  %s6890_s21 = sphi %s6964_s21, %s8491_s21  }
   0x8   : > { %p44_p0 = scmp.ne.s32.totalorder %s6894_s22, %s6890_s21  ;;  %p8471_p1 = scmp.eq.s32.totalorder %s6985_s25, 0 }
   0x9   : > { %p179_p3 = scmp.eq.s32.totalorder %s5563_s26, 1  ;;  %p5564_p5 = scmp.ge.s32.totalorder %s6902_s24, 1 }
   0xa   : > { %p6994_p4 = por %p8471_p1, %p44_p0  ;;  %p186_p7 = scmp.lt.s32.totalorder %s6902_s24, 3 }
   0xb   : > { %p6999_p6 = por %p179_p3, %p44_p0  ;;  %s6904_s30 = smov [#allocation6]  }
   0xc   : > { %s8475_s27 = scalar_select %p6994_p4, 1, 0 }
   0xd   : > { %s8476_s28 = scalar_select %p6999_p6, 1, 0 }
   0xe   : > { %p7004_p8 = pnand %p5564_p5, %p186_p7  ;;  %s198_s7 = sshll.u32 %s6904_s30, 4  ;;  %s199_s7 = int_to_ptr.vmem [resolvable:$true] %s198_s7 }
   0xf   : > { %s6905_s9 = smov [#allocation8]   ;;  %s6906_s11 = smov [#allocation9]  }
  0x10   : > { %s8477_s29 = scalar_select %p7004_p8, 1, 0 }
  0x11   : > { %p6385_p9 = pneg %p7004_p8  ;;  %s214_s10 = sshll.u32 %s6905_s9, 4  ;;  %s215_s10 = int_to_ptr.vmem [resolvable:$true] %s214_s10 }
  0x12   : > { %s230_s12 = sshll.u32 %s6906_s11, 4  ;;  %s6735_s13 = scalar_lea.vmem %s199_s7, 256  ;;  %s231_s12 = int_to_ptr.vmem [resolvable:$true] %s230_s12 }
  0x13   : > { %p7013_p11 = pnand %p6385_p9, %p8471_p1  ;;  %p6736_p13 = scmp.ne.s32.totalorder %s199_s7, %s6735_s13 }
  0x14   : > { %p6743_p5 = scmp.lt.s32.totalorder %s199_s7, %s199_s7  ;;  %p6744_p7 = scmp.lt.s32.totalorder %s6735_s13, %s6735_s13 }
  0x15   : > { %p6726_p12 = pneg %p7013_p11 }
  0x16   : > { %p6745_p9 = por %p6744_p7, %p6743_p5 }
  0x17   : > { %p6738_p0 = pnand %p6736_p13, %p6726_p12 }
  0x19   : > { %p6739_p3 = pneg %p6738_p0 }
  0x1b   : > { %p6746_p10 = pnand %p6745_p9, %p6739_p3 }
  0x1d   : > { %6749 = shalt.err (!%p6746_p10)
}
  0x1e   : > { %s6907_s14 = smov 64   ;;  %s6908_s15 = smov 4  }
  0x1f   : > { %6388 = dma.hbm_to_vmem [thread:$0]  (!%p7013_p11), %s8465_s1, 256, %s199_s7, [#allocation7], %s6907_s14, %s6907_s14, %s6908_s15  }
  0x20   : > { %s6761_s18 = scalar_lea.vmem %s215_s10, 256  ;;  %p6769_p2 = scmp.lt.s32.totalorder %s215_s10, %s215_s10 }
  0x21   : > { %p6762_p1 = scmp.ne.s32.totalorder %s215_s10, %s6761_s18  ;;  %p6770_p6 = scmp.lt.s32.totalorder %s6761_s18, %s6761_s18 }
  0x23   : > { %p6764_p13 = pnand %p6762_p1, %p6726_p12  ;;  %p6771_p5 = por %p6770_p6, %p6769_p2 }
  0x25   : > { %p6765_p0 = pneg %p6764_p13 }
  0x27   : > { %p6772_p3 = pnand %p6771_p5, %p6765_p0 }
  0x29   : > { %6775 = shalt.err (!%p6772_p3)
}
  0x2a   : > { %6391 = dma.hbm_to_vmem [thread:$0]  (!%p7013_p11), %s8467_s3, 256, %s215_s10, [#allocation7], %s6907_s14, %s6907_s14, %s6908_s15  }
  0x2b   : > { %s6787_s26 = scalar_lea.vmem %s231_s12, 512  ;;  %p6795_p9 = scmp.lt.s32.totalorder %s231_s12, %s231_s12 }
  0x2c   : > { %p6788_p10 = scmp.ne.s32.totalorder %s231_s12, %s6787_s26  ;;  %p6796_p13 = scmp.lt.s32.totalorder %s6787_s26, %s6787_s26 }
  0x2e   : > { %p6790_p7 = pnand %p6788_p10, %p6726_p12  ;;  %p6797_p4 = por %p6796_p13, %p6795_p9 }
  0x30   : > { %p6791_p1 = pneg %p6790_p7 }
  0x32   : > { %p6798_p2 = pnand %p6797_p4, %p6791_p1 }
  0x34   : > { %6801 = shalt.err (!%p6798_p2)
}
  0x35   : > { %6394 = dma.hbm_to_vmem [thread:$0]  (!%p7013_p11), %s8469_s5, 512, %s231_s12, [#allocation10], %s6907_s14, %s6907_s14, %s6908_s15  }
  0x36   : > { %s7044_s9 = sadd.s32 1, %s6902_s24   ;;  %s31_s8 = sadd.s32 1, %s6898_s23 }
  0x37   : > { %s28_s10 = ssub.s32 %s6902_s24, %s7044_s9  ;;  %p38_p6 = scmp.ne.s32.totalorder %s6898_s23, %s6894_s22 }
  0x38   : > { %p29_p4 = scmp.eq.s32.totalorder %s28_s10, 0  ;;  %p39_p12 = scmp.eq.s32.totalorder %s6902_s24, 0 }
  0x39   : > { %p6406_p0 = scmp.lt.s32.totalorder %s6902_s24, 2  ;;  %p8479_p3 = scmp.eq.s32.totalorder %s6985_s25, 1 }
  0x3a   : > { %s7054_s11 = scalar_select %p29_p4, %s6898_s23, %s31_s8  }
  0x3b   : > { %p40_p5 = por %p39_p12, %p38_p6  ;;  %p7058_p10 = por %p8479_p3, %p38_p6 }
  0x3c   : > { %s244_s16 = sand.u32 1, %s6898_s23   ;;  %s5693_s17 = sshll.u32 %s6902_s24, 11 }
  0x3d   : > { %s8480_s13 = scalar_select %p7058_p10, 1, 0 }
  0x3e   : > { %s5569_s12 = sshll.u32 %s244_s16, 7  ;;  %s7067_s18 = scalar_lea.hbm %s8464_s0, %s5693_s17 }
  0x3f   : > { %s248_s19 = scalar_lea.vmem [#allocation3], %s5569_s12  ;;  %p7069_p11 = pnand %p6406_p0, %p40_p5 }
  0x40   : > { %s256_s20 = sshll.u32 %s248_s19, 4  ;;  %s7075_s30 = scalar_lea.sflag [#allocation4], %s244_s16  ;;  %s7073_s20 = int_to_ptr.vmem [resolvable:$true] %s256_s20 }
  0x41   : > { %s6802_s7 = scalar_lea.hbm %s7067_s18, 2048  ;;  %p6804_p1 = pneg %p7069_p11 }
  0x42   : > { %p6803_p7 = scmp.ne.s32.totalorder %s7067_s18, %s6802_s7  ;;  %s6807_s17 = scalar_lea.hbm %s8464_s0, 4096 }
  0x43   : > { %p6808_p2 = scmp.lt.s32.totalorder %s7067_s18, %s8464_s0  ;;  %p6809_p4 = scmp.lt.s32.totalorder %s6807_s17, %s6802_s7 }
  0x44   : > { %p6805_p9 = pnand %p6804_p1, %p6803_p7 }
  0x45   : > { %p6810_p6 = por %p6809_p4, %p6808_p2 }
  0x46   : > { %p6806_p13 = pneg %p6805_p9 }
  0x48   : > { %p6811_p12 = pnand %p6810_p6, %p6806_p13 }
  0x4a   : > { %6814 = shalt.err (!%p6811_p12)
}
  0x4b   : > { %s6815_s16 = scalar_lea.vmem %s7073_s20, 2048  ;;  %s6909_s15 = smov [#allocation3]  }
  0x4c   : > { %p6816_p0 = scmp.ne.s32.totalorder %s7073_s20, %s6815_s16  ;;  %s6820_s19 = sshll.u32 %s6909_s15, 4  ;;  %s6821_s19 = int_to_ptr.vmem [resolvable:$false] %s6820_s19 }
  0x4d   : > { %s6822_s10 = scalar_lea.vmem %s6821_s19, 4096  ;;  %p6823_p7 = scmp.lt.s32.totalorder %s7073_s20, %s6821_s19 }
  0x4e   : > { %p6818_p5 = pnand %p6816_p0, %p6804_p1  ;;  %p6824_p9 = scmp.lt.s32.totalorder %s6822_s10, %s6815_s16 }
  0x50   : > { %p6819_p3 = pneg %p6818_p5  ;;  %p6825_p10 = por %p6824_p9, %p6823_p7 }
  0x52   : > { %p6826_p8 = pnand %p6825_p10, %p6819_p3 }
  0x54   : > { %6829 = shalt.err (!%p6826_p8)
}
  0x55   : > { %s6910_s7 = smov 128   ;;  %s6911_s8 = smov 8  }
  0x56   : > { %6398 = dma.hbm_to_vmem [thread:$0]  (!%p7069_p11), %s7067_s18, 2048, %s7073_s20, %s7075_s30, %s6910_s7, %s6910_s7, %s6911_s8  }
  0x57   : > { %p8482_p1 = scmp.ne.s32.totalorder %s8477_s29, 0 }
  0x58   : > { %s7099_s17 = sand.u32 (!%p8482_p1), 1, %s6894_s22   ;;  %p8483_p8 = scmp.ne.s32.totalorder (!%p8482_p1), %s8475_s27, 0 }
  0x59   : > { %268 = sbr.rel (%p8482_p1) target bundleno = 3325 (0xcfd), region = 44  ;;  %s5574_s12 = sshll.u32 (!%p8482_p1), %s7099_s17, 7 }
  0x5a   : > { %s271_s14 = scalar_lea.sflag (!%p8482_p1), [#allocation4], %s7099_s17  ;;  %s7103_s16 = scalar_lea.vmem (!%p8482_p1), [#allocation3], %s5574_s12 }
  0x5e   : > { %6873 = dma.done.wait (%p8483_p8), %s271_s14, 2048  }
  0x5f   : > { %6875 = vsyncadd (%p8483_p8), %s271_s14, 4294965248  ;;  %p8484_p10 = scmp.eq.s32.totalorder %s6985_s25, 0 }
  0x61   : > { %6877 = dma.done.wait (%p8484_p10), [#allocation7], 512   ;;  %p8485_p11 = pmov %p8484_p10 }
  0x62   : > { %p8486_p13 = pmov %p8484_p10 }
  0x63   : > { %6879 = vsyncadd (%p8485_p11), [#allocation7], 4294966784 }
  0x64   : > { %6881 = dma.done.wait (%p8486_p13), [#allocation10], 512   ;;  %p8487_p2 = pmov %p8484_p10 }
  0x65   : > { %v6466_v0 = vld [vmem:[#allocation6 + $0x8] sm:$0xff]   ;;  %v6467_v1 = vld [vmem:[#allocation6] sm:$0xff]   ;;  %vm364_vm0 = vcmask 261120   ;;  %v319_v4 = vld [vmem:[%s7103_s16 + $0x10] sm:$0xff]  ;;  %v6912_v26 = vmov 0.0   ;;  %vm6913_vm1 = vmmov 0  }
  0x66   : > { %6883 = vsyncadd (%p8487_p2), [#allocation10], 4294966784  ;;  %5885 = vmatprep.subr.bf16.mxu0 %v6466_v0  ;;  %6361 = vmatprep.subr.bf16.mxu1 %v6466_v0  ;;  %v317_v2 = vld [vmem:[%s7103_s16] sm:$0xff]  ;;  %v318_v3 = vld [vmem:[%s7103_s16 + $0x8] sm:$0xff]  ;;  %s6914_s18 = smov 96   ;;  %s6915_s20 = smov 64  }
  0x67   : > { %5886 = vmatpush3.bf16.msra.mxu0 %v6466_v0  ;;  %6363 = vmatpush3.bf16.msra.mxu1 %v6466_v0  ;;  %v333_v5 = vpack.c.bf16 %v318_v3, %v317_v2  ;;  %v320_v6 = vld [vmem:[%s7103_s16 + $0x18] sm:$0xff]  ;;  %v325_v7 = vld [vmem:[%s7103_s16 + $0x40] sm:$0xff]  ;;  %v326_v8 = vld [vmem:[%s7103_s16 + $0x48] sm:$0xff]  ;;  %vm501_vm2 = vcmask 64512   ;;  %vm899_vm3 = vcmask 130048   ;;  %s6916_s26 = smov 88  }
  0x68   : > { %5887 = vmatprep.subr.bf16.mxu0 %v6467_v1  ;;  %6362 = vmatprep.subr.bf16.mxu1 %v6467_v1  ;;  %v337_v9 = vpack.c.bf16 %v326_v8, %v325_v7  ;;  %v327_v10 = vld [vmem:[%s7103_s16 + $0x50] sm:$0xff]  ;;  %v328_v11 = vld [vmem:[%s7103_s16 + $0x58] sm:$0xff]  ;;  %v321_v12 = vld [vmem:[%s7103_s16 + $0x20] sm:$0xff]  ;;  %v334_v14 = vpack.c.bf16 %v320_v6, %v319_v4  ;;  %s6917_s30 = smov 120   ;;  %vm1493_vm4 = vcmask 1043456   ;;  %s6918_s15 = smov 56  }
  0x69   : > { %5889 = vmatprep.mubr.msk.bf16.mxu0 %vm364_vm0, %v333_v5  ;;  %v322_v13 = vld [vmem:[%s7103_s16 + $0x28] sm:$0xff]  ;;  %v338_v15 = vpack.c.bf16 %v328_v11, %v327_v10  ;;  %v329_v16 = vld [vmem:[%s7103_s16 + $0x60] sm:$0xff]  ;;  %v323_v20 = vld [vmem:[%s7103_s16 + $0x30] sm:$0xff]  ;;  %s6919_s19 = smov 80   ;;  %s6920_s10 = smov 112   ;;  %vm5432_vm5 = vcmask 523264  }
  0x6a   : > { %5897 = vmatprep.mubr.msk.bf16.mxu1 %vm364_vm0, %v337_v9  ;;  %v330_v17 = vld [vmem:[%s7103_s16 + $0x68] sm:$0xff]  ;;  %v335_v18 = vpack.c.bf16 %v322_v13, %v321_v12  ;;  %v324_v21 = vld [vmem:[%s7103_s16 + $0x38] sm:$0xff]  ;;  %v331_v22 = vld [vmem:[%s7103_s16 + $0x70] sm:$0xff]  ;;  %s6921_s7 = smov 48   ;;  %s6922_s8 = smov 72   ;;  %vm5434_vm6 = vcmask 785408  }
  0x6b   : > { %5888 = vmatpush3.bf16.msra.mxu0 %v6467_v1  ;;  %6364 = vmatpush3.bf16.msra.mxu1 %v6467_v1  ;;  %v339_v19 = vpack.c.bf16 %v330_v17, %v329_v16  ;;  %v332_v23 = vld [vmem:[%s7103_s16 + $0x78] sm:$0xff]  ;;  %v336_v24 = vpack.c.bf16 %v324_v21, %v323_v20  ;;  %v5579_v33 = vld [vmem:[%s8466_s2] ss:$0 sm:$0xff]  ;;  %s6923_s12 = smov 104   ;;  %s6924_s14 = smov 40  }
  0x6c   : > { %v340_v25 = vpack.c.bf16 %v332_v23, %v331_v22  ;;  %5905 = vmatprep.subr.bf16.mxu1 %v6912_v26  ;;  %5929 = vmatprep.subr.bf16.mxu0 %v6912_v26  ;;  %v5696_v22 = vld [vmem:[#allocation9] sm:$0xff]   ;;  %s6927_s29 = smov 32   ;;  %p8488_p6 = scmp.ne.s32.totalorder %s8480_s13, 0 }
  0x6d   : > { %v7240_v23 = vunpack.c.l.bf16 %v5696_v22 }
  0x6e   : > { %5890 = vmatmul.mubr.msk.bf16.vlgmr.msra.gmra.mxu0 %vm364_vm0, %v334_v14  ;;  %5898 = vmatmul.mubr.msk.bf16.vlgmr.msra.gmra.mxu1 %vm364_vm0, %v338_v15 }
  0x6f   : > { %5893 = vmatprep.mubr.msk.bf16.mxu0 %vm364_vm0, %v335_v18  ;;  %5901 = vmatprep.mubr.msk.bf16.mxu1 %vm364_vm0, %v339_v19 }
  0x76   : > { %5894 = vmatmul.mubr.msk.bf16.gmra.mxu0 %vm364_vm0, %v336_v24  ;;  %5902 = vmatmul.mubr.msk.bf16.gmra.mxu1 %vm364_vm0, %v340_v25 }
  0x77   : > { %5907 = vmatprep.mubr.msk.bf16.mxu1 %vm6913_vm1, %v6912_v26  ;;  %5931 = vmatprep.mubr.msk.bf16.mxu0 %vm6913_vm1, %v6912_v26 }
 0x12e   : > { %v5891_v27 = vpop.f32.mrf.mxu0  ;;  %v5899_v28 = vpop.f32.mrf.mxu1 }
 0x12f   : > { %v432_v44 = vadd.f32 %v5891_v27, %v5579_v33  ;;  %v464_v61 = vadd.f32 %v5899_v28, %v5579_v33 }
 0x130   : > { %v423_v29 = vpop.f32.mrf.mxu0  ;;  %v455_v30 = vpop.f32.mrf.mxu1 }
 0x131   : > { %v424_v36 = vadd.f32 %v5579_v33, %v423_v29  ;;  %v456_v48 = vadd.f32 %v5579_v33, %v455_v30 }
 0x132   : > { %v5892_v31 = vpop.f32.mrf.mxu0  ;;  %v5900_v32 = vpop.f32.mrf.mxu1 }
 0x133   : > { %v435_v40 = vadd.f32 %v5892_v31, %v5579_v33  ;;  %v467_v62 = vadd.f32 %v5900_v32, %v5579_v33  ;;  %v7247_v31 = vunpack.c.h.bf16 %v5696_v22 }
 0x134   : > { %v426_v34 = vpop.f32.mrf.mxu0  ;;  %v458_v35 = vpop.f32.mrf.mxu1 }
 0x135   : > { %v427_v37 = vadd.f32 %v5579_v33, %v426_v34  ;;  %v7154_v47 = vpack.c.bf16 %v435_v40, %v432_v44  ;;  %v459_v49 = vadd.f32 %v5579_v33, %v458_v35  ;;  %v7174_v0 = vpack.c.bf16 %v467_v62, %v464_v61 }
 0x136   : > { %v5895_v38 = vpop.f32.mrf.mxu0  ;;  %v5903_v39 = vpop.f32.mrf.mxu1 }
 0x137   : > { %v7150_v41 = vpack.c.bf16 %v427_v37, %v424_v36  ;;  %v448_v56 = vadd.f32 %v5895_v38, %v5579_v33  ;;  %v7158_v57 = vpack.c.bf16 %v459_v49, %v456_v48  ;;  %v480_v1 = vadd.f32 %v5903_v39, %v5579_v33 }
 0x138   : > { %v439_v42 = vpop.f32.mrf.mxu0  ;;  %v471_v43 = vpop.f32.mrf.mxu1 }
 0x139   : > { %499 = vrot.lane.b32.xlu0 %v7150_v41, %s6914_s18  ;;  %v440_v50 = vadd.f32 %v5579_v33, %v439_v42  ;;  %v472_v54 = vadd.f32 %v5579_v33, %v471_v43 }
 0x13a   : > { %v5896_v45 = vpop.f32.mrf.mxu0  ;;  %v5904_v46 = vpop.f32.mrf.mxu1 }
 0x13b   : > { %v451_v58 = vadd.f32 %v5896_v45, %v5579_v33  ;;  %v483_v2 = vadd.f32 %v5904_v46, %v5579_v33 }
 0x13c   : > { %v442_v51 = vpop.f32.mrf.mxu0  ;;  %v474_v52 = vpop.f32.mrf.mxu1 }
 0x13d   : > { %v443_v53 = vadd.f32 %v5579_v33, %v442_v51  ;;  %550 = vrot.lane.b32.xlu0 %v7154_v47, %s6914_s18  ;;  %v475_v55 = vadd.f32 %v5579_v33, %v474_v52  ;;  %v7168_v63 = vpack.c.bf16 %v451_v58, %v448_v56  ;;  %v7180_v3 = vpack.c.bf16 %v483_v2, %v480_v1 }
 0x13f   : > { %v7160_v59 = vpack.c.bf16 %v443_v53, %v440_v50  ;;  %v7162_v60 = vpack.c.bf16 %v475_v55, %v472_v54 }
 0x141   : > { %600 = vrot.lane.b32.xlu1 %v7160_v59, %s6914_s18  ;;  %700 = vrot.lane.b32.xlu0 %v7158_v57, %s6914_s18 }
 0x145   : > { %650 = vrot.lane.b32.xlu1 %v7168_v63, %s6914_s18  ;;  %800 = vrot.lane.b32.xlu0 %v7162_v60, %s6914_s18 }
 0x149   : > { %750 = vrot.lane.b32.xlu1 %v7174_v0, %s6914_s18  ;;  %1099 = vrot.lane.b32.xlu0 %v7154_v47, %s6915_s20 }
 0x14d   : > { %850 = vrot.lane.b32.xlu1 %v7180_v3, %s6914_s18 }
 0x151   : > { %1052 = vrot.lane.b32.xlu1 %v7150_v41, %s6915_s20 }
 0x155   : > { %1193 = vrot.lane.b32.xlu1 %v7168_v63, %s6915_s20 }
 0x159   : > { %1146 = vrot.lane.b32.xlu1 %v7160_v59, %s6915_s20 }
 0x1ab   : > { %v500_v4 = vpop.permute.xlu0 %499 }
 0x1ac   : > { %v506_v5 = vsel %vm501_vm2, %v500_v4, 0 }
 0x1ad   : > { %5906 = vmatpush3.bf16.xpose.msra.mxu1 %v506_v5 }
 0x1ae   : > { %5911 = vmatprep.subr.bf16.mxu1 %v6912_v26 }
 0x1af   : > { %v551_v6 = vpop.permute.xlu0 %550 }
 0x1b0   : > { %v556_v9 = vsel %vm501_vm2, %v551_v6, 0 }
 0x1b3   : > { %v601_v7 = vpop.permute.xlu1 %600  ;;  %v701_v8 = vpop.permute.xlu0 %700 }
 0x1b4   : > { %v706_v10 = vsel %vm501_vm2, %v701_v8, 0  ;;  %5908 = vmatmul.mubr.msk.bf16.vlgmr.msra.gmra.mxu1 %vm501_vm2, %v7150_v41  ;;  %v606_v14 = vsel %vm501_vm2, %v601_v7, 0 }
 0x1b5   : > { %5912 = vmatpush3.bf16.xpose.msra.mxu1 %v556_v9  ;;  %5930 = vmatpush3.bf16.xpose.msra.mxu0 %v706_v10 }
 0x1b6   : > { %5913 = vmatprep.mubr.msk.bf16.mxu1 %vm6913_vm1, %v6912_v26  ;;  %5917 = vmatprep.subr.bf16.mxu1 %v6912_v26 }
 0x1b7   : > { %v651_v11 = vpop.permute.xlu1 %650  ;;  %5941 = vmatprep.subr.bf16.mxu0 %v6912_v26  ;;  %v801_v12 = vpop.permute.xlu0 %800 }
 0x1b8   : > { %v806_v15 = vsel %vm501_vm2, %v801_v12, 0  ;;  %v656_v18 = vsel %vm501_vm2, %v651_v11, 0 }
 0x1bb   : > { %v751_v13 = vpop.permute.xlu1 %750  ;;  %v1100_v21 = vpop.permute.xlu0 %1099 }
 0x1bc   : > { %5914 = vmatmul.mubr.msk.bf16.vlgmr.msra.gmra.mxu1 %vm501_vm2, %v7154_v47  ;;  %5932 = vmatmul.mubr.msk.bf16.vlgmr.msra.gmra.mxu0 %vm501_vm2, %v7158_v57  ;;  %v756_v19 = vsel %vm501_vm2, %v751_v13, 0 }
 0x1bd   : > { %5918 = vmatpush3.bf16.xpose.msra.mxu1 %v606_v14  ;;  %5942 = vmatpush3.bf16.xpose.msra.mxu0 %v806_v15 }
 0x1be   : > { %5919 = vmatprep.mubr.msk.bf16.mxu1 %vm6913_vm1, %v6912_v26  ;;  %5943 = vmatprep.mubr.msk.bf16.mxu0 %vm6913_vm1, %v6912_v26 }
 0x1bf   : > { %v851_v16 = vpop.permute.xlu1 %850  ;;  %5923 = vmatprep.subr.bf16.mxu1 %v6912_v26  ;;  %5953 = vmatprep.subr.bf16.mxu0 %v6912_v26 }
 0x1c0   : > { %v856_v20 = vsel %vm501_vm2, %v851_v16, 0 }
 0x1c3   : > { %v1053_v17 = vpop.permute.xlu1 %1052 }
 0x1c4   : > { %5920 = vmatmul.mubr.msk.bf16.vlgmr.msra.gmra.mxu1 %vm501_vm2, %v7160_v59  ;;  %5944 = vmatmul.mubr.msk.bf16.vlgmr.msra.gmra.mxu0 %vm501_vm2, %v7162_v60 }
 0x1c5   : > { %5924 = vmatpush3.bf16.xpose.msra.mxu1 %v656_v18  ;;  %5954 = vmatpush3.bf16.msra.mxu0 %v1053_v17 }
 0x1c6   : > { %5925 = vmatprep.mubr.msk.bf16.mxu1 %vm6913_vm1, %v6912_v26  ;;  %5935 = vmatprep.subr.bf16.mxu1 %v6912_v26 }
 0x1c7   : > { %5955 = vmatprep.mubr.msk.bf16.mxu0 %vm6913_vm1, %v6912_v26  ;;  %5965 = vmatprep.subr.bf16.mxu0 %v6912_v26 }
 0x1cc   : > { %5926 = vmatmul.mubr.msk.bf16.vlgmr.msra.gmra.mxu1 %vm501_vm2, %v7168_v63 }
 0x1cd   : > { %5936 = vmatpush3.bf16.xpose.msra.mxu1 %v756_v19  ;;  %5937 = vmatprep.mubr.msk.bf16.mxu1 %vm6913_vm1, %v6912_v26 }
 0x1ce   : > { %5947 = vmatprep.subr.bf16.mxu1 %v6912_v26 }
 0x1d4   : > { %5938 = vmatmul.mubr.msk.bf16.vlgmr.msra.gmra.mxu1 %vm501_vm2, %v7174_v0 }
 0x1d5   : > { %5948 = vmatpush3.bf16.xpose.msra.mxu1 %v856_v20  ;;  %5949 = vmatprep.mubr.msk.bf16.mxu1 %vm6913_vm1, %v6912_v26 }
 0x1d6   : > { %5959 = vmatprep.subr.bf16.mxu1 %v6912_v26 }
 0x1dc   : > { %5950 = vmatmul.mubr.msk.bf16.vlgmr.msra.gmra.mxu1 %vm501_vm2, %v7180_v3 }
 0x1dd   : > { %5960 = vmatpush3.bf16.msra.mxu1 %v1100_v21  ;;  %5961 = vmatprep.mubr.msk.bf16.mxu1 %vm6913_vm1, %v6912_v26 }
 0x1de   : > { %5971 = vmatprep.subr.bf16.mxu1 %v6912_v26 }
 0x274   : > { %v542_v24 = vpop.f32.mrf.mxu1 }
 0x275   : > { %v7243_v25 = vadd.f32 %v7240_v23, %v542_v24 }
 0x276   : > { %v5909_v27 = vpop.f32.mrf.mxu1 }
 0x277   : > { %v900_v28 = vsel %vm899_vm3, %v7243_v25, -inf }
 0x278   : > { %901 = vmax.xlane.f32.xlu0 %v900_v28  ;;  %v545_v29 = vpop.f32.mrf.mxu1 }
 0x279   : > { %v7253_v37 = vadd.f32 %v7247_v31, %v545_v29 }
 0x27a   : > { %v5910_v30 = vpop.f32.mrf.mxu1 }
 0x27b   : > { %v903_v46 = vsel %vm899_vm3, %v7253_v37, -inf }
 0x27c   : > { %v592_v32 = vpop.f32.mrf.mxu1  ;;  %v742_v33 = vpop.f32.mrf.mxu0 }
 0x27d   : > { %v7250_v34 = vadd.f32 %v7240_v23, %v742_v33  ;;  %v7261_v45 = vadd.f32 %v7240_v23, %v592_v32 }
 0x27e   : > { %v5915_v35 = vpop.f32.mrf.mxu1  ;;  %v5933_v36 = vpop.f32.mrf.mxu0 }
 0x27f   : > { %v924_v38 = vsel %vm899_vm3, %v7250_v34, -inf  ;;  %v906_v56 = vsel %vm899_vm3, %v7261_v45, -inf }
 0x280   : > { %v595_v39 = vpop.f32.mrf.mxu1  ;;  %925 = vmax.xlane.f32.xlu1 %v924_v38  ;;  %v745_v40 = vpop.f32.mrf.mxu0 }
 0x281   : > { %v7258_v42 = vadd.f32 %v7247_v31, %v745_v40  ;;  %v7271_v54 = vadd.f32 %v7247_v31, %v595_v39 }
 0x282   : > { %v5916_v43 = vpop.f32.mrf.mxu1  ;;  %v5934_v44 = vpop.f32.mrf.mxu0 }
 0x283   : > { %v927_v48 = vsel %vm899_vm3, %v7258_v42, -inf  ;;  %v909_v5 = vsel %vm899_vm3, %v7271_v54, -inf }
 0x284   : > { %v642_v49 = vpop.f32.mrf.mxu1  ;;  %904 = vmax.xlane.f32.xlu1 %v903_v46  ;;  %928 = vmax.xlane.f32.xlu0 %v927_v48  ;;  %v842_v50 = vpop.f32.mrf.mxu0 }
 0x285   : > { %v7268_v51 = vadd.f32 %v7240_v23, %v842_v50  ;;  %v7274_v55 = vadd.f32 %v7240_v23, %v642_v49 }
 0x286   : > { %v5921_v52 = vpop.f32.mrf.mxu1  ;;  %v5945_v53 = vpop.f32.mrf.mxu0 }
 0x287   : > { %v936_v58 = vsel %vm899_vm3, %v7268_v51, -inf  ;;  %v912_v6 = vsel %vm899_vm3, %v7274_v55, -inf }
 0x288   : > { %v645_v61 = vpop.f32.mrf.mxu1  ;;  %907 = vmax.xlane.f32.xlu0 %v906_v56  ;;  %937 = vmax.xlane.f32.xlu1 %v936_v58  ;;  %v845_v62 = vpop.f32.mrf.mxu0 }
 0x289   : > { %v7281_v4 = vadd.f32 %v7247_v31, %v845_v62  ;;  %v7291_v10 = vadd.f32 %v7247_v31, %v645_v61 }
 0x28a   : > { %v5922_v1 = vpop.f32.mrf.mxu1  ;;  %v5946_v2 = vpop.f32.mrf.mxu0 }
 0x28b   : > { %v939_v12 = vsel %vm899_vm3, %v7281_v4, -inf  ;;  %v915_v16 = vsel %vm899_vm3, %v7291_v10, -inf }
 0x28c   : > { %v692_v7 = vpop.f32.mrf.mxu1  ;;  %910 = vmax.xlane.f32.xlu0 %v909_v5  ;;  %913 = vmax.xlane.f32.xlu1 %v912_v6 }
 0x28d   : > { %v7288_v8 = vadd.f32 %v7240_v23, %v692_v7 }
 0x28e   : > { %v5927_v9 = vpop.f32.mrf.mxu1 }
 0x28f   : > { %v918_v11 = vsel %vm899_vm3, %v7288_v8, -inf }
 0x290   : > { %v695_v13 = vpop.f32.mrf.mxu1  ;;  %919 = vmax.xlane.f32.xlu1 %v918_v11  ;;  %940 = vmax.xlane.f32.xlu0 %v939_v12 }
 0x291   : > { %v7298_v15 = vadd.f32 %v7247_v31, %v695_v13 }
 0x292   : > { %v5928_v14 = vpop.f32.mrf.mxu1 }
 0x293   : > { %v921_v21 = vsel %vm899_vm3, %v7298_v15, -inf }
 0x294   : > { %v792_v17 = vpop.f32.mrf.mxu1  ;;  %916 = vmax.xlane.f32.xlu0 %v915_v16 }
 0x295   : > { %v7303_v18 = vadd.f32 %v7240_v23, %v792_v17 }
 0x296   : > { %v5939_v19 = vpop.f32.mrf.mxu1 }
 0x297   : > { %v930_v20 = vsel %vm899_vm3, %v7303_v18, -inf }
 0x298   : > { %v795_v22 = vpop.f32.mrf.mxu1  ;;  %931 = vmax.xlane.f32.xlu1 %v930_v20  ;;  %922 = vmax.xlane.f32.xlu0 %v921_v21 }
 0x299   : > { %v7310_v24 = vadd.f32 %v7247_v31, %v795_v22 }
 0x29a   : > { %v5940_v27 = vpop.f32.mrf.mxu1 }
 0x29b   : > { %v933_v28 = vsel %vm899_vm3, %v7310_v24, -inf }
 0x29c   : > { %v892_v29 = vpop.f32.mrf.mxu1  ;;  %934 = vmax.xlane.f32.xlu0 %v933_v28 }
 0x29d   : > { %v7319_v35 = vadd.f32 %v7240_v23, %v892_v29  ;;  %v7342_v23 = vpop.permute.xlu1 %1193 }
 0x29e   : > { %v5951_v30 = vpop.f32.mrf.mxu1 }
 0x29f   : > { %v942_v38 = vsel %vm899_vm3, %v7319_v35, -inf }
 0x2a0   : > { %v895_v32 = vpop.f32.mrf.mxu1 }
 0x2a1   : > { %v7322_v36 = vadd.f32 %v7247_v31, %v895_v32  ;;  %v1147_v44 = vpop.permute.xlu1 %1146 }
 0x2a2   : > { %v5952_v33 = vpop.f32.mrf.mxu1 }
 0x2a3   : > { %v945_v39 = vsel %vm899_vm3, %v7322_v36, -inf }
 0x2a9   : > { %1287 = vrot.lane.b32.xlu1 %v7174_v0, %s6915_s20 }
 0x2b2   : > { %1240 = vrot.lane.b32.xlu0 %v7158_v57, %s6915_s20 }
 0x2cd   : > { %943 = vmax.xlane.f32.xlu1 %v942_v38 }
 0x2d1   : > { %946 = vmax.xlane.f32.xlu0 %v945_v39 }
 0x2de   : > { %1381 = vrot.lane.b32.xlu1 %v7180_v3, %s6915_s20 }
 0x2e2   : > { %1617 = vrot.lane.b32.xlu1 %v7150_v41, %s6916_s26 }
 0x2e6   : > { %1668 = vrot.lane.b32.xlu1 %v7154_v47, %s6916_s26 }
 0x2e7   : > { %1334 = vrot.lane.b32.xlu0 %v7162_v60, %s6915_s20 }
 0x2ea   : > { %1666 = vrot.lane.b32.xlu1 %v7154_v47, %s6917_s30 }
 0x2eb   : > { %1615 = vrot.lane.b32.xlu0 %v7150_v41, %s6917_s30 }
 0x2ee   : > { %1719 = vrot.lane.b32.xlu1 %v7160_v59, %s6916_s26 }
 0x301   : > { %v902_v31 = vpop.xlane.xlu0 %901 }
 0x302   : > { %v948_v40 = vsub.f32 %v7243_v25, %v902_v31 }
 0x304   : > { %v964_v43 = vmul.f32 1.442695, %v948_v40 }
 0x306   : > { %6468 = vpow2.f32 %v964_v43 }
 0x309   : > { %v926_v46 = vpop.xlane.xlu1 %925 }
 0x30a   : > { %v956_v48 = vsub.f32 %v7250_v34, %v926_v46 }
 0x30c   : > { %v980_v49 = vmul.f32 1.442695, %v956_v48 }
 0x30d   : > { %v905_v50 = vpop.xlane.xlu1 %904  ;;  %v929_v52 = vpop.xlane.xlu0 %928 }
 0x30e   : > { %6470 = vpow2.f32 %v980_v49  ;;  %v949_v53 = vsub.f32 %v7253_v37, %v905_v50  ;;  %v957_v56 = vsub.f32 %v7258_v42, %v929_v52 }
 0x310   : > { %v966_v58 = vmul.f32 1.442695, %v949_v53  ;;  %v982_v61 = vmul.f32 1.442695, %v957_v56 }
 0x311   : > { %v938_v62 = vpop.xlane.xlu1 %937  ;;  %v908_v1 = vpop.xlane.xlu0 %907 }
 0x312   : > { %6472 = vpow2.f32 %v966_v58  ;;  %v960_v25 = vsub.f32 %v7268_v51, %v938_v62  ;;  %v950_v2 = vsub.f32 %v7261_v45, %v908_v1 }
 0x313   : > { %v6469_v5 = vpop.eup %6468  ;;  %6474 = vpow2.f32 %v982_v61 }
 0x314   : > { %v988_v34 = vmul.f32 1.442695, %v960_v25  ;;  %v968_v6 = vmul.f32 1.442695, %v950_v2  ;;  %v996_v7 = vsel %vm899_vm3, %v6469_v5, 0.0 }
 0x315   : > { %v914_v9 = vpop.xlane.xlu1 %913  ;;  %997 = vadd.xlane.f32.xlu0 %v996_v7  ;;  %v911_v37 = vpop.xlane.xlu0 %910 }
 0x316   : > { %6476 = vpow2.f32 %v988_v34  ;;  %v952_v42 = vsub.f32 %v7274_v55, %v914_v9  ;;  %v951_v11 = vsub.f32 %v7271_v54, %v911_v37 }
 0x317   : > { %6478 = vpow2.f32 %v968_v6 }
 0x318   : > { %v972_v12 = vmul.f32 1.442695, %v952_v42  ;;  %v970_v13 = vmul.f32 1.442695, %v951_v11 }
 0x319   : > { %v920_v51 = vpop.xlane.xlu1 %919  ;;  %v941_v14 = vpop.xlane.xlu0 %940 }
 0x31a   : > { %6480 = vpow2.f32 %v972_v12  ;;  %v954_v45 = vsub.f32 %v7288_v8, %v920_v51  ;;  %v961_v16 = vsub.f32 %v7281_v4, %v941_v14 }
 0x31b   : > { %v7355_v17 = vpop.eup %6470  ;;  %6482 = vpow2.f32 %v970_v13 }
 0x31c   : > { %v976_v19 = vmul.f32 1.442695, %v954_v45  ;;  %v990_v20 = vmul.f32 1.442695, %v961_v16  ;;  %v1020_v55 = vsel %vm899_vm3, %v7355_v17, 0.0 }
 0x31d   : > { %1021 = vadd.xlane.f32.xlu1 %v1020_v55  ;;  %v917_v54 = vpop.xlane.xlu0 %916 }
 0x31e   : > { %6484 = vpow2.f32 %v976_v19  ;;  %v953_v21 = vsub.f32 %v7291_v10, %v917_v54 }
 0x31f   : > { %v6473_v22 = vpop.eup %6472  ;;  %6486 = vpow2.f32 %v990_v20 }
 0x320   : > { %v7360_v27 = vpop.eup %6474  ;;  %v974_v8 = vmul.f32 1.442695, %v953_v21  ;;  %v999_v4 = vsel %vm899_vm3, %v6473_v22, 0.0  ;;  %v1044_v28 = vpack.c.bf16 %v6473_v22, %v6469_v5 }
 0x321   : > { %1000 = vadd.xlane.f32.xlu1 %v999_v4  ;;  %v1023_v29 = vsel %vm899_vm3, %v7360_v27, 0.0  ;;  %v923_v30 = vpop.xlane.xlu0 %922  ;;  %v932_v38 = vpop.xlane.xlu1 %931  ;;  %v1048_v9 = vpack.c.bf16 %v7360_v27, %v7355_v17 }
 0x322   : > { %6488 = vpow2.f32 %v974_v8  ;;  %1024 = vadd.xlane.f32.xlu0 %v1023_v29  ;;  %v955_v32 = vsub.f32 %v7298_v15, %v923_v30  ;;  %5956 = vmatmul.mubr.msk.bf16.vlgmr.msra.gmra.mxu0 %vm899_vm3, %v1044_v28  ;;  %v1468_v8 = vld [vmem:[#allocation8] sm:$0xf] }
 0x323   : > { %v7367_v10 = vpop.eup %6476  ;;  %5966 = vmatpush3.bf16.msra.mxu0 %v1147_v44  ;;  %5967 = vmatprep.mubr.msk.bf16.mxu0 %vm6913_vm1, %v6912_v26  ;;  %v958_v44 = vsub.f32 %v7303_v18, %v932_v38  ;;  %v1495_v28 = vsel %vm1493_vm4, %v1468_v8, 0 }
 0x324   : > { %v6479_v33 = vpop.eup %6478  ;;  %v978_v39 = vmul.f32 1.442695, %v955_v32  ;;  %v1032_v31 = vsel %vm899_vm3, %v7367_v10, 0.0  ;;  %5977 = vmatprep.subr.bf16.mxu0 %v6912_v26 }
 0x325   : > { %1033 = vadd.xlane.f32.xlu1 %v1032_v31  ;;  %v1002_v40 = vsel %vm899_vm3, %v6479_v33, 0.0  ;;  %v935_v15 = vpop.xlane.xlu0 %934  ;;  %v984_v58 = vmul.f32 1.442695, %v958_v44  ;;  %v1288_v7 = vpop.permute.xlu1 %1287 }
 0x326   : > { %1003 = vadd.xlane.f32.xlu0 %v1002_v40  ;;  %v959_v43 = vsub.f32 %v7310_v24, %v935_v15  ;;  %6490 = vpow2.f32 %v978_v39 }
 0x327   : > { %v6481_v46 = vpop.eup %6480 }
 0x328   : > { %v6483_v48 = vpop.eup %6482  ;;  %v1008_v49 = vsel %vm899_vm3, %v6481_v46, 0.0  ;;  %v986_v50 = vmul.f32 1.442695, %v959_v43 }
 0x329   : > { %1009 = vadd.xlane.f32.xlu1 %v1008_v49  ;;  %v1005_v52 = vsel %vm899_vm3, %v6483_v48, 0.0  ;;  %v1045_v53 = vpack.c.bf16 %v6483_v48, %v6479_v33 }
 0x32a   : > { %1006 = vadd.xlane.f32.xlu0 %v1005_v52  ;;  %6492 = vpow2.f32 %v986_v50 }
 0x32b   : > { %v6485_v56 = vpop.eup %6484  ;;  %5962 = vmatmul.mubr.msk.bf16.vlgmr.msra.gmra.mxu1 %vm899_vm3, %v1045_v53  ;;  %6494 = vpow2.f32 %v984_v58 }
 0x32c   : > { %v6487_v61 = vpop.eup %6486  ;;  %5972 = vmatpush3.bf16.msra.mxu1 %v7342_v23  ;;  %v1014_v24 = vsel %vm899_vm3, %v6485_v56, 0.0  ;;  %5973 = vmatprep.mubr.msk.bf16.mxu1 %vm6913_vm1, %v6912_v26  ;;  %v1241_v23 = vpop.permute.xlu0 %1240 }
 0x32d   : > { %1015 = vadd.xlane.f32.xlu1 %v1014_v24  ;;  %v1035_v18 = vsel %vm899_vm3, %v6487_v61, 0.0  ;;  %5983 = vmatprep.subr.bf16.mxu1 %v6912_v26  ;;  %v1050_v62 = vpack.c.bf16 %v6487_v61, %v7367_v10 }
 0x32e   : > { %1036 = vadd.xlane.f32.xlu0 %v1035_v18 }
 0x32f   : > { %v6489_v1 = vpop.eup %6488 }
 0x330   : > { %v1011_v25 = vsel %vm899_vm3, %v6489_v1, 0.0  ;;  %v1046_v2 = vpack.c.bf16 %v6489_v1, %v6481_v46 }
 0x332   : > { %1012 = vadd.xlane.f32.xlu0 %v1011_v25  ;;  %5968 = vmatmul.mubr.msk.bf16.vlgmr.msra.gmra.mxu0 %vm899_vm3, %v1046_v2 }
 0x333   : > { %5978 = vmatpush3.bf16.msra.mxu0 %v1241_v23  ;;  %5979 = vmatprep.mubr.msk.bf16.mxu0 %vm6913_vm1, %v6912_v26  ;;  %v6491_v5 = vpop.eup %6490 }
 0x334   : > { %5989 = vmatprep.subr.bf16.mxu0 %v6912_v26  ;;  %v1017_v34 = vsel %vm899_vm3, %v6491_v5, 0.0  ;;  %v1047_v6 = vpack.c.bf16 %v6491_v5, %v6485_v56 }
 0x336   : > { %1018 = vadd.xlane.f32.xlu0 %v1017_v34  ;;  %5974 = vmatmul.mubr.msk.bf16.vlgmr.msra.gmra.mxu1 %vm899_vm3, %v1047_v6 }
 0x337   : > { %5984 = vmatpush3.bf16.msra.mxu1 %v1288_v7  ;;  %5985 = vmatprep.mubr.msk.bf16.mxu1 %vm6913_vm1, %v6912_v26  ;;  %v6493_v37 = vpop.eup %6492 }
 0x338   : > { %5995 = vmatprep.subr.bf16.mxu1 %v6912_v26  ;;  %v6495_v42 = vpop.eup %6494 }
 0x339   : > { %v1049_v11 = vpack.c.bf16 %v6493_v37, %v6495_v42  ;;  %v1026_v20 = vsel %vm899_vm3, %v6495_v42, 0.0 }
 0x33a   : > { %5980 = vmatmul.mubr.msk.bf16.vlgmr.msra.gmra.mxu0 %vm899_vm3, %v1048_v9 }
 0x33b   : > { %5991 = vmatprep.mubr.msk.bf16.mxu0 %vm6913_vm1, %v6912_v26 }
 0x33e   : > { %1717 = vrot.lane.b32.xlu1 %v7160_v59, %s6917_s30  ;;  %5986 = vmatmul.mubr.msk.bf16.vlgmr.msra.gmra.mxu1 %vm899_vm3, %v1049_v11 }
 0x33f   : > { %5997 = vmatprep.mubr.msk.bf16.mxu1 %vm6913_vm1, %v6912_v26 }
 0x34c   : > { %1770 = vrot.lane.b32.xlu0 %v7168_v63, %s6916_s26 }
 0x356   : > { %v944_v12 = vpop.xlane.xlu1 %943 }
 0x357   : > { %v962_v13 = vsub.f32 %v7319_v35, %v944_v12  ;;  %v1029_v35 = vsel %vm899_vm3, %v6493_v37, 0.0 }
 0x359   : > { %v992_v51 = vmul.f32 1.442695, %v962_v13 }
 0x35a   : > { %v1382_v14 = vpop.permute.xlu1 %1381  ;;  %v947_v45 = vpop.xlane.xlu0 %946 }
 0x35b   : > { %v963_v16 = vsub.f32 %v7322_v36, %v947_v45  ;;  %5996 = vmatpush3.bf16.msra.mxu1 %v1382_v14  ;;  %6496 = vpow2.f32 %v992_v51 }
 0x35c   : > { %6019 = vmatprep.subr.bf16.mxu1 %v6912_v26 }
 0x35d   : > { %v994_v17 = vmul.f32 1.442695, %v963_v16 }
 0x35e   : > { %v1335_v19 = vpop.permute.xlu0 %1334  ;;  %v1618_v55 = vpop.permute.xlu1 %1617 }
 0x35f   : > { %6498 = vpow2.f32 %v994_v17  ;;  %5990 = vmatpush3.bf16.msra.mxu0 %v1335_v19  ;;  %v1623_v27 = vsel %vm501_vm2, %v1618_v55, 0 }
 0x360   : > { %6365 = vmatprep.subr.msk.bf16.mxu0 %vm1493_vm4, %v1468_v8 }
 0x362   : > { %1027 = vadd.xlane.f32.xlu1 %v1026_v20  ;;  %5992 = vmatmul.mubr.msk.bf16.vlgmr.msra.gmra.mxu0 %vm899_vm3, %v1050_v62  ;;  %v1669_v4 = vpop.permute.xlu1 %1668  ;;  %v1616_v30 = vpop.permute.xlu0 %1615 }
 0x363   : > { %6002 = vmatpush3.bf16.msra.mxu0 %v1495_v28  ;;  %v1674_v10 = vsel %vm501_vm2, %v1669_v4, 0 }
 0x364   : > { %6043 = vmatprep.subr.bf16.mxu0 %v6912_v26 }
 0x366   : > { %v1667_v32 = vpop.permute.xlu1 %1666 }
 0x368   : > { %v6497_v54 = vpop.eup %6496 }
 0x369   : > { %v1038_v22 = vsel %vm899_vm3, %v6497_v54, 0.0 }
 0x36a   : > { %v1720_v33 = vpop.permute.xlu1 %1719 }
 0x36b   : > { %1030 = vadd.xlane.f32.xlu0 %v1029_v35  ;;  %v1725_v38 = vsel %vm501_vm2, %v1720_v33, 0 }
 0x36c   : > { %v6499_v21 = vpop.eup %6498 }
 0x36d   : > { %v1051_v36 = vpack.c.bf16 %v6499_v21, %v6497_v54  ;;  %v1041_v29 = vsel %vm899_vm3, %v6499_v21, 0.0 }
 0x36f   : > { %1039 = vadd.xlane.f32.xlu0 %v1038_v22  ;;  %5998 = vmatmul.mubr.msk.bf16.vlgmr.msra.gmra.mxu1 %vm899_vm3, %v1051_v36 }
 0x370   : > { %6020 = vmatpush3.bf16.xpose.msra.mxu1 %v1623_v27  ;;  %6021 = vmatprep.mubr.msk.bf16.mxu1 %vm6913_vm1, %v6912_v26 }
 0x371   : > { %6025 = vmatprep.subr.bf16.mxu1 %v6912_v26 }
 0x373   : > { %1042 = vadd.xlane.f32.xlu0 %v1041_v29  ;;  %1821 = vrot.lane.b32.xlu1 %v7158_v57, %s6916_s26 }
 0x377   : > { %1872 = vrot.lane.b32.xlu1 %v7174_v0, %s6916_s26  ;;  %6022 = vmatmul.mubr.msk.bf16.vlgmr.msra.gmra.mxu1 %vm501_vm2, %v1616_v30 }
 0x378   : > { %6026 = vmatpush3.bf16.xpose.msra.mxu1 %v1674_v10  ;;  %6027 = vmatprep.mubr.msk.bf16.mxu1 %vm6913_vm1, %v6912_v26 }
 0x379   : > { %6031 = vmatprep.subr.bf16.mxu1 %v6912_v26 }
 0x37b   : > { %1923 = vrot.lane.b32.xlu1 %v7162_v60, %s6916_s26 }
 0x37f   : > { %1974 = vrot.lane.b32.xlu1 %v7180_v3, %s6916_s26  ;;  %6028 = vmatmul.mubr.msk.bf16.vlgmr.msra.gmra.mxu1 %vm501_vm2, %v1667_v32  ;;  %s5578_s26 = sshll.u32 %s7099_s17, 5 }
 0x380   : > { %6032 = vmatpush3.bf16.xpose.msra.mxu1 %v1725_v38  ;;  %6033 = vmatprep.mubr.msk.bf16.mxu1 %vm6913_vm1, %v6912_v26 }
 0x381   : > { %6037 = vmatprep.subr.bf16.mxu1 %v6912_v26 }
 0x383   : > { %1972 = vrot.lane.b32.xlu1 %v7180_v3, %s6917_s30 }
 0x387   : > { %2175 = vrot.lane.b32.xlu1 %v7150_v41, %s6918_s15 }
 0x389   : > { %1768 = vrot.lane.b32.xlu0 %v7168_v63, %s6917_s30 }
 0x38b   : > { %2269 = vrot.lane.b32.xlu1 %v7160_v59, %s6918_s15 }
 0x38d   : > { %1819 = vrot.lane.b32.xlu0 %v7158_v57, %s6917_s30 }
 0x38f   : > { %2316 = vrot.lane.b32.xlu1 %v7168_v63, %s6918_s15 }
 0x391   : > { %1870 = vrot.lane.b32.xlu0 %v7174_v0, %s6917_s30 }
 0x395   : > { %1921 = vrot.lane.b32.xlu0 %v7162_v60, %s6917_s30 }
 0x399   : > { %2222 = vrot.lane.b32.xlu0 %v7154_v47, %s6918_s15 }
 0x39e   : > { %v998_v31 = vpop.xlane.xlu0 %997 }
 0x39f   : > { %6500 = vrcp.f32 %v998_v31 }
 0x3a6   : > { %v1022_v39 = vpop.xlane.xlu1 %1021 }
 0x3aa   : > { %v1001_v40 = vpop.xlane.xlu1 %1000 }
 0x3ab   : > { %v1025_v15 = vpop.xlane.xlu0 %1024  ;;  %6502 = vrcp.f32 %v1001_v40 }
 0x3ac   : > { %v6501_v62 = vpop.eup %6500 }
 0x3ae   : > { %v7461_v43 = vpop.xlane.xlu1 %1033 }
 0x3af   : > { %v1004_v46 = vpop.xlane.xlu0 %1003 }
 0x3b0   : > { %6504 = vrcp.f32 %v1004_v46 }
 0x3b2   : > { %v1010_v44 = vpop.xlane.xlu1 %1009 }
 0x3b3   : > { %v1007_v48 = vpop.xlane.xlu0 %1006 }
 0x3b4   : > { %6506 = vrcp.f32 %v1007_v48 }
 0x3b5   : > { %6508 = vrcp.f32 %v1010_v44 }
 0x3b6   : > { %v1016_v49 = vpop.xlane.xlu1 %1015 }
 0x3b7   : > { %v7463_v50 = vpop.xlane.xlu0 %1036 }
 0x3b8   : > { %v6503_v1 = vpop.eup %6502 }
 0x3ba   : > { %v1718_v52 = vpop.permute.xlu1 %1717 }
 0x3bb   : > { %v1013_v53 = vpop.xlane.xlu0 %1012  ;;  %6034 = vmatmul.mubr.msk.bf16.vlgmr.msra.gmra.mxu1 %vm501_vm2, %v1718_v52 }
 0x3bc   : > { %6039 = vmatprep.mubr.msk.bf16.mxu1 %vm6913_vm1, %v6912_v26  ;;  %6510 = vrcp.f32 %v1013_v53 }
 0x3bd   : > { %6512 = vrcp.f32 %v1016_v49  ;;  %v6505_v37 = vpop.eup %6504 }
 0x3bf   : > { %v1019_v56 = vpop.xlane.xlu0 %1018 }
 0x3c0   : > { %6514 = vrcp.f32 %v1019_v56 }
 0x3c1   : > { %v6507_v42 = vpop.eup %6506  ;;  %6516 = vrcp.f32 %v1022_v39 }
 0x3c2   : > { %6518 = vrcp.f32 %v1025_v15  ;;  %v6509_v55 = vpop.eup %6508 }
 0x3c3   : > { %v1771_v58 = vpop.permute.xlu0 %1770 }
 0x3c4   : > { %v1776_v61 = vsel %vm501_vm2, %v1771_v58, 0 }
 0x3c5   : > { %6038 = vmatpush3.bf16.xpose.msra.mxu1 %v1776_v61 }
 0x3c6   : > { %6049 = vmatprep.subr.bf16.mxu1 %v6912_v26 }
 0x3c9   : > { %v6511_v35 = vpop.eup %6510 }
 0x3ca   : > { %v6513_v30 = vpop.eup %6512 }
 0x3cd   : > { %v6515_v10 = vpop.eup %6514 }
 0x3ce   : > { %v6517_v15 = vpop.eup %6516 }
 0x3cf   : > { %v6519_v44 = vpop.eup %6518 }
 0x3e2   : > { %v1092_v24 = vpop.f32.mrf.mxu0 }
 0x3e3   : > { %v1444_v2 = vmul.f32 %v6501_v62, %v1092_v24 }
 0x3e4   : > { %v5957_v18 = vpop.f32.mrf.mxu0 }
 0x3e6   : > { %v1095_v25 = vpop.f32.mrf.mxu0 }
 0x3e7   : > { %v1445_v23 = vmul.f32 %v6503_v1, %v1095_v25 }
 0x3e8   : > { %v5958_v5 = vpop.f32.mrf.mxu0 }
 0x3e9   : > { %v1460_v34 = vpack.c.bf16 %v1445_v23, %v1444_v2 }
 0x3eb   : > { %v1139_v6 = vpop.f32.mrf.mxu1  ;;  %v1028_v7 = vpop.xlane.xlu1 %1027  ;;  %6003 = vmatprep.mubr.msk.bf16.mxu0 %vm501_vm2, %v1460_v34 }
 0x3ec   : > { %v1446_v12 = vmul.f32 %v6505_v37, %v1139_v6 }
 0x3ed   : > { %v5963_v9 = vpop.f32.mrf.mxu1 }
 0x3ef   : > { %v1142_v11 = vpop.f32.mrf.mxu1  ;;  %v1822_v51 = vpop.permute.xlu1 %1821 }
 0x3f0   : > { %v1447_v13 = vmul.f32 %v6507_v42, %v1142_v11  ;;  %v1827_v17 = vsel %vm501_vm2, %v1822_v51, 0 }
 0x3f1   : > { %v5964_v14 = vpop.f32.mrf.mxu1 }
 0x3f2   : > { %v1461_v45 = vpack.c.bf16 %v1447_v13, %v1446_v12  ;;  %v1186_v16 = vpop.f32.mrf.mxu0 }
 0x3f3   : > { %v1448_v21 = vmul.f32 %v6509_v55, %v1186_v16  ;;  %v1873_v4 = vpop.permute.xlu1 %1872 }
 0x3f4   : > { %6004 = vmatmul.mubr.msk.bf16.vlgmr.msra.gmra.mxu0 %vm501_vm2, %v1461_v45  ;;  %v1031_v19 = vpop.xlane.xlu0 %1030  ;;  %v5969_v20 = vpop.f32.mrf.mxu0  ;;  %v1878_v18 = vsel %vm501_vm2, %v1873_v4, 0 }
 0x3f5   : > { %6044 = vmatpush3.bf16.xpose.msra.mxu0 %v1827_v17  ;;  %6520 = vrcp.f32 %v1031_v19 }
 0x3f6   : > { %6522 = vrcp.f32 %v1028_v7  ;;  %v1189_v54 = vpop.f32.mrf.mxu0  ;;  %6055 = vmatprep.subr.bf16.mxu0 %v6912_v26  ;;  %v1233_v22 = vpop.f32.mrf.mxu1 }
 0x3f7   : > { %v1449_v36 = vmul.f32 %v6511_v35, %v1189_v54  ;;  %v1450_v38 = vmul.f32 %v6513_v30, %v1233_v22  ;;  %v7475_v52 = vpop.permute.xlu1 %1923  ;;  %6524 = vrcp.f32 %v7461_v43  ;;  %v5700_v22 = vld [vmem:[#allocation9 + $0x8] sm:$0xff]  }
 0x3f8   : > { %v1040_v27 = vpop.xlane.xlu0 %1039  ;;  %v5970_v8 = vpop.f32.mrf.mxu0  ;;  %6526 = vrcp.f32 %v7463_v50 }
 0x3f9   : > { %v1462_v28 = vpack.c.bf16 %v1449_v36, %v1448_v21  ;;  %v5975_v29 = vpop.f32.mrf.mxu1  ;;  %6528 = vrcp.f32 %v1040_v27 }
 0x3fa   : > { %v1280_v32 = vpop.f32.mrf.mxu0  ;;  %v7497_v29 = vunpack.c.l.bf16 %v5700_v22 }
 0x3fb   : > { %v1236_v33 = vpop.f32.mrf.mxu1  ;;  %6007 = vmatprep.mubr.msk.bf16.mxu0 %vm501_vm2, %v1462_v28  ;;  %v1452_v53 = vmul.f32 %v6517_v15, %v1280_v32  ;;  %v1975_v9 = vpop.permute.xlu1 %1974 }
 0x3fc   : > { %v1451_v39 = vmul.f32 %v6515_v10, %v1236_v33  ;;  %v1043_v31 = vpop.xlane.xlu0 %1042  ;;  %v5981_v40 = vpop.f32.mrf.mxu0  ;;  %v1980_v11 = vsel %vm501_vm2, %v1975_v9, 0  ;;  %v7503_v33 = vunpack.c.h.bf16 %v5700_v22 }
 0x3fd   : > { %v5976_v46 = vpop.f32.mrf.mxu1  ;;  %6530 = vrcp.f32 %v1043_v31 }
 0x3fe   : > { %v1463_v48 = vpack.c.bf16 %v1451_v39, %v1450_v38  ;;  %v1283_v49 = vpop.f32.mrf.mxu0 }
 0x3ff   : > { %v1453_v56 = vmul.f32 %v6519_v44, %v1283_v49  ;;  %v1327_v58 = vpop.f32.mrf.mxu1  ;;  %v1973_v13 = vpop.permute.xlu1 %1972 }
 0x400   : > { %6008 = vmatmul.mubr.msk.bf16.gmra.mxu0 %vm501_vm2, %v1463_v48  ;;  %v1769_v61 = vpop.permute.xlu0 %1768  ;;  %v5982_v24 = vpop.f32.mrf.mxu0  ;;  %v1929_v48 = vsel %vm501_vm2, %v7475_v52, 0 }
 0x401   : > { %v1464_v62 = vpack.c.bf16 %v1453_v56, %v1452_v53  ;;  %v5987_v1 = vpop.f32.mrf.mxu1  ;;  %6040 = vmatmul.mubr.msk.bf16.vlgmr.msra.gmra.mxu1 %vm501_vm2, %v1769_v61 }
 0x402   : > { %v6521_v25 = vpop.eup %6520  ;;  %6050 = vmatpush3.bf16.xpose.msra.mxu1 %v1878_v18  ;;  %6051 = vmatprep.mubr.msk.bf16.mxu1 %vm6913_vm1, %v6912_v26 }
 0x403   : > { %v6523_v2 = vpop.eup %6522  ;;  %v1330_v23 = vpop.f32.mrf.mxu1  ;;  %6011 = vmatprep.mubr.msk.bf16.mxu0 %vm501_vm2, %v1464_v62  ;;  %6061 = vmatprep.subr.bf16.mxu1 %v6912_v26 }
 0x404   : > { %v1454_v5 = vmul.f32 %v6523_v2, %v1327_v58  ;;  %v1455_v34 = vmul.f32 %v6521_v25, %v1330_v23  ;;  %v1820_v6 = vpop.permute.xlu0 %1819  ;;  %v6525_v16 = vpop.eup %6524 }
 0x405   : > { %v5988_v7 = vpop.f32.mrf.mxu1  ;;  %v6527_v17 = vpop.eup %6526 }
 0x406   : > { %v1465_v37 = vpack.c.bf16 %v1455_v34, %v1454_v5  ;;  %v6529_v8 = vpop.eup %6528  ;;  %v2176_v18 = vpop.permute.xlu1 %2175 }
 0x408   : > { %6012 = vmatmul.mubr.msk.bf16.gmra.mxu0 %vm501_vm2, %v1465_v37  ;;  %v1871_v42 = vpop.permute.xlu0 %1870 }
 0x409   : > { %6052 = vmatmul.mubr.msk.bf16.vlgmr.msra.gmra.mxu1 %vm501_vm2, %v1871_v42 }
 0x40a   : > { %6062 = vmatpush3.bf16.xpose.msra.mxu1 %v1980_v11  ;;  %6063 = vmatprep.mubr.msk.bf16.mxu1 %vm6913_vm1, %v6912_v26  ;;  %v6531_v43 = vpop.eup %6530  ;;  %v7548_v11 = vpop.permute.xlu1 %2269 }
 0x40b   : > { %6073 = vmatprep.subr.bf16.mxu1 %v6912_v26 }
 0x40c   : > { %v1922_v12 = vpop.permute.xlu0 %1921 }
 0x410   : > { %v2223_v51 = vpop.permute.xlu0 %2222 }
 0x411   : > { %6064 = vmatmul.mubr.msk.bf16.vlgmr.msra.gmra.mxu1 %vm501_vm2, %v1973_v13 }
 0x412   : > { %6074 = vmatpush3.bf16.msra.mxu1 %v2223_v51  ;;  %6075 = vmatprep.mubr.msk.bf16.mxu1 %vm6913_vm1, %v6912_v26 }
 0x413   : > { %6085 = vmatprep.subr.bf16.mxu1 %v6912_v26 }
 0x422   : > { %v1374_v14 = vpop.f32.mrf.mxu0 }
 0x423   : > { %v1456_v20 = vmul.f32 %v6525_v16, %v1374_v14 }
 0x424   : > { %v5993_v45 = vpop.f32.mrf.mxu0 }
 0x425   : > { %v7554_v45 = vpop.permute.xlu1 %2316 }
 0x426   : > { %v1377_v19 = vpop.f32.mrf.mxu0 }
 0x427   : > { %v1457_v55 = vmul.f32 %v6527_v17, %v1377_v19 }
 0x428   : > { %v5994_v35 = vpop.f32.mrf.mxu0 }
 0x429   : > { %v1466_v54 = vpack.c.bf16 %v1457_v55, %v1456_v20 }
 0x42b   : > { %6015 = vmatprep.mubr.msk.bf16.mxu0 %vm501_vm2, %v1466_v54 }
 0x42f   : > { %v1421_v21 = vpop.f32.mrf.mxu1 }
 0x430   : > { %v1458_v50 = vmul.f32 %v6529_v8, %v1421_v21 }
 0x431   : > { %v5999_v36 = vpop.f32.mrf.mxu1 }
 0x433   : > { %v1424_v4 = vpop.f32.mrf.mxu1 }
 0x434   : > { %v1459_v28 = vmul.f32 %v6531_v43, %v1424_v4 }
 0x435   : > { %v6000_v27 = vpop.f32.mrf.mxu1 }
 0x436   : > { %v1467_v30 = vpack.c.bf16 %v1459_v28, %v1458_v50 }
 0x437   : > { %v1659_v32 = vpop.f32.mrf.mxu1 }
 0x438   : > { %v7500_v10 = vadd.f32 %v7497_v29, %v1659_v32  ;;  %6016 = vmatmul.mubr.msk.bf16.gmra.mxu0 %vm501_vm2, %v1467_v30 }
 0x439   : > { %v6023_v38 = vpop.f32.mrf.mxu1  ;;  %6045 = vmatprep.mubr.msk.bf16.mxu0 %vm6913_vm1, %v6912_v26 }
 0x43a   : > { %v2023_v39 = vsel %vm899_vm3, %v7500_v10, -inf }
 0x43b   : > { %2024 = vmax.xlane.f32.xlu0 %v2023_v39  ;;  %v1662_v31 = vpop.f32.mrf.mxu1 }
 0x43c   : > { %v7510_v40 = vadd.f32 %v7503_v33, %v1662_v31 }
 0x43d   : > { %v6024_v15 = vpop.f32.mrf.mxu1 }
 0x43e   : > { %v2026_v46 = vsel %vm899_vm3, %v7510_v40, -inf }
 0x43f   : > { %2027 = vmax.xlane.f32.xlu1 %v2026_v46  ;;  %v1710_v44 = vpop.f32.mrf.mxu1 }
 0x440   : > { %v7517_v49 = vadd.f32 %v7497_v29, %v1710_v44  ;;  %6046 = vmatmul.mubr.msk.bf16.vlgmr.msra.gmra.mxu0 %vm501_vm2, %v1820_v6 }
 0x441   : > { %6056 = vmatpush3.bf16.xpose.msra.mxu0 %v1929_v48  ;;  %v6029_v53 = vpop.f32.mrf.mxu1  ;;  %6057 = vmatprep.mubr.msk.bf16.mxu0 %vm6913_vm1, %v6912_v26 }
 0x442   : > { %v2029_v56 = vsel %vm899_vm3, %v7517_v49, -inf  ;;  %6067 = vmatprep.subr.bf16.mxu0 %v6912_v26 }
 0x443   : > { %2030 = vmax.xlane.f32.xlu0 %v2029_v56  ;;  %v1713_v58 = vpop.f32.mrf.mxu1 }
 0x444   : > { %v7526_v61 = vadd.f32 %v7503_v33, %v1713_v58 }
 0x445   : > { %v6030_v52 = vpop.f32.mrf.mxu1 }
 0x446   : > { %v2032_v24 = vsel %vm899_vm3, %v7526_v61, -inf }
 0x447   : > { %2033 = vmax.xlane.f32.xlu0 %v2032_v24 }
 0x448   : > { %6058 = vmatmul.mubr.msk.bf16.vlgmr.msra.gmra.mxu0 %vm501_vm2, %v1922_v12 }
 0x449   : > { %6068 = vmatpush3.bf16.msra.mxu0 %v2176_v18  ;;  %6069 = vmatprep.mubr.msk.bf16.mxu0 %vm6913_vm1, %v6912_v26 }
 0x44a   : > { %6079 = vmatprep.subr.bf16.mxu0 %v6912_v26 }
 0x47b   : > { %v1761_v62 = vpop.f32.mrf.mxu1 }
 0x47c   : > { %v7535_v1 = vadd.f32 %v7497_v29, %v1761_v62 }
 0x47d   : > { %v6035_v25 = vpop.f32.mrf.mxu1 }
 0x47e   : > { %v2035_v2 = vsel %vm899_vm3, %v7535_v1, -inf }
 0x47f   : > { %2036 = vmax.xlane.f32.xlu1 %v2035_v2  ;;  %v1764_v23 = vpop.f32.mrf.mxu1 }
 0x480   : > { %v7540_v5 = vadd.f32 %v7503_v33, %v1764_v23 }
 0x481   : > { %v6036_v34 = vpop.f32.mrf.mxu1 }
 0x482   : > { %v2038_v6 = vsel %vm899_vm3, %v7540_v5, -inf }
 0x483   : > { %2039 = vmax.xlane.f32.xlu0 %v2038_v6 }
 0x4b4   : > { %v6005_v7 = vpop.f32.mrf.mxu0 }
 0x4b5   : > { %1596 = vst.msk [vmem:[#allocation2 + $0x10] sm:$0xff] %vm364_vm0, %v6005_v7 }
 0x4b6   : > { %v1531_v9 = vpop.f32.mrf.mxu0 }
 0x4b7   : > { %1594 = vst.msk [vmem:[#allocation2] sm:$0xff] %vm364_vm0, %v1531_v9 }
 0x4b8   : > { %v6006_v37 = vpop.f32.mrf.mxu0 }
 0x4b9   : > { %1597 = vst.msk [vmem:[#allocation2 + $0x18] sm:$0xff] %vm364_vm0, %v6006_v37 }
 0x4ba   : > { %v1534_v42 = vpop.f32.mrf.mxu0 }
 0x4bb   : > { %1595 = vst.msk [vmem:[#allocation2 + $0x8] sm:$0xff] %vm364_vm0, %v1534_v42 }
 0x4c0   : > { %v6009_v12 = vpop.f32.mrf.mxu0 }
 0x4c1   : > { %1600 = vst.msk [vmem:[#allocation2 + $0x30] sm:$0xff] %vm364_vm0, %v6009_v12  ;;  %v1812_v13 = vpop.f32.mrf.mxu1 }
 0x4c2   : > { %v7552_v51 = vadd.f32 %v7497_v29, %v1812_v13  ;;  %v1547_v14 = vpop.f32.mrf.mxu0 }
 0x4c3   : > { %1598 = vst.msk [vmem:[#allocation2 + $0x20] sm:$0xff] %vm364_vm0, %v1547_v14  ;;  %v6041_v16 = vpop.f32.mrf.mxu1 }
 0x4c4   : > { %v6010_v17 = vpop.f32.mrf.mxu0  ;;  %v2041_v19 = vsel %vm899_vm3, %v7552_v51, -inf  ;;  %v2025_v20 = vpop.xlane.xlu0 %2024 }
 0x4c5   : > { %1601 = vst.msk [vmem:[#allocation2 + $0x38] sm:$0xff] %vm364_vm0, %v6010_v17  ;;  %2042 = vmax.xlane.f32.xlu1 %v2041_v19  ;;  %v1815_v55 = vpop.f32.mrf.mxu1  ;;  %v2071_v35 = vsub.f32 %v7500_v10, %v2025_v20 }
 0x4c6   : > { %v7562_v54 = vadd.f32 %v7503_v33, %v1815_v55  ;;  %v1550_v21 = vpop.f32.mrf.mxu0 }
 0x4c7   : > { %1599 = vst.msk [vmem:[#allocation2 + $0x28] sm:$0xff] %vm364_vm0, %v1550_v21  ;;  %v6042_v36 = vpop.f32.mrf.mxu1  ;;  %v2087_v22 = vmul.f32 1.442695, %v2071_v35 }
 0x4c8   : > { %v6013_v8 = vpop.f32.mrf.mxu0  ;;  %v2028_v43 = vpop.xlane.xlu1 %2027  ;;  %v2044_v4 = vsel %vm899_vm3, %v7562_v54, -inf }
 0x4c9   : > { %1604 = vst.msk [vmem:[#allocation2 + $0x50] sm:$0xff] %vm364_vm0, %v6013_v8  ;;  %v2072_v50 = vsub.f32 %v7510_v40, %v2028_v43  ;;  %2045 = vmax.xlane.f32.xlu0 %v2044_v4  ;;  %v1914_v28 = vpop.f32.mrf.mxu1  ;;  %6532 = vpow2.f32 %v2087_v22 }
 0x4ca   : > { %v7570_v27 = vadd.f32 %v7497_v29, %v1914_v28  ;;  %v1563_v30 = vpop.f32.mrf.mxu0 }
 0x4cb   : > { %v2089_v32 = vmul.f32 1.442695, %v2072_v50  ;;  %1602 = vst.msk [vmem:[#allocation2 + $0x40] sm:$0xff] %vm364_vm0, %v1563_v30  ;;  %v6053_v10 = vpop.f32.mrf.mxu1 }
 0x4cc   : > { %v6014_v38 = vpop.f32.mrf.mxu0  ;;  %v2053_v39 = vsel %vm899_vm3, %v7570_v27, -inf  ;;  %v2031_v31 = vpop.xlane.xlu0 %2030 }
 0x4cd   : > { %6534 = vpow2.f32 %v2089_v32  ;;  %1605 = vst.msk [vmem:[#allocation2 + $0x58] sm:$0xff] %vm364_vm0, %v6014_v38  ;;  %2054 = vmax.xlane.f32.xlu1 %v2053_v39  ;;  %v1917_v40 = vpop.f32.mrf.mxu1  ;;  %v2073_v15 = vsub.f32 %v7517_v49, %v2031_v31 }
 0x4ce   : > { %v7578_v46 = vadd.f32 %v7503_v33, %v1917_v40  ;;  %v1566_v44 = vpop.f32.mrf.mxu0 }
 0x4cf   : > { %1603 = vst.msk [vmem:[#allocation2 + $0x48] sm:$0xff] %vm364_vm0, %v1566_v44  ;;  %v6054_v48 = vpop.f32.mrf.mxu1  ;;  %v2091_v53 = vmul.f32 1.442695, %v2073_v15 }
 0x4d0   : > { %v2056_v56 = vsel %vm899_vm3, %v7578_v46, -inf  ;;  %v2034_v58 = vpop.xlane.xlu0 %2033 }
 0x4d1   : > { %2057 = vmax.xlane.f32.xlu0 %v2056_v56  ;;  %v2016_v52 = vpop.f32.mrf.mxu1  ;;  %v2074_v24 = vsub.f32 %v7526_v61, %v2034_v58  ;;  %6536 = vpow2.f32 %v2091_v53 }
 0x4d2   : > { %v7585_v18 = vadd.f32 %v7497_v29, %v2016_v52 }
 0x4d3   : > { %v2093_v49 = vmul.f32 1.442695, %v2074_v24  ;;  %v6065_v62 = vpop.f32.mrf.mxu1 }
 0x4d4   : > { %v2065_v25 = vsel %vm899_vm3, %v7585_v18, -inf }
 0x4d5   : > { %6538 = vpow2.f32 %v2093_v49  ;;  %2066 = vmax.xlane.f32.xlu1 %v2065_v25  ;;  %v2019_v2 = vpop.f32.mrf.mxu1 }
 0x4d6   : > { %v7590_v23 = vadd.f32 %v7503_v33, %v2019_v2  ;;  %v7594_v61 = vpop.eup %6532 }
 0x4d7   : > { %v6066_v34 = vpop.f32.mrf.mxu1 }
 0x4d8   : > { %v2068_v6 = vsel %vm899_vm3, %v7590_v23, -inf }
 0x4d9   : > { %2069 = vmax.xlane.f32.xlu0 %v2068_v6 }
 0x4da   : > { %v7596_v7 = vpop.eup %6534 }
 0x4db   : > { %v2167_v9 = vpack.c.bf16 %v7596_v7, %v7594_v61 }
 0x4dd   : > { %6070 = vmatmul.mubr.msk.bf16.vlgmr.msra.gmra.mxu0 %vm899_vm3, %v2167_v9 }
 0x4de   : > { %6080 = vmatpush3.bf16.msra.mxu0 %v7548_v11  ;;  %6081 = vmatprep.mubr.msk.bf16.mxu0 %vm6913_vm1, %v6912_v26  ;;  %v7605_v37 = vpop.eup %6536 }
 0x4df   : > { %6091 = vmatprep.subr.bf16.mxu0 %v6912_v26 }
 0x4e2   : > { %v7607_v42 = vpop.eup %6538 }
 0x4e3   : > { %v2168_v12 = vpack.c.bf16 %v7607_v42, %v7605_v37 }
 0x4e5   : > { %6076 = vmatmul.mubr.msk.bf16.vlgmr.msra.gmra.mxu1 %vm899_vm3, %v2168_v12 }
 0x4e6   : > { %6086 = vmatpush3.bf16.msra.mxu1 %v7554_v45  ;;  %6087 = vmatprep.mubr.msk.bf16.mxu1 %vm6913_vm1, %v6912_v26 }
 0x4e7   : > { %6097 = vmatprep.subr.bf16.mxu1 %v6912_v26 }
 0x4f8   : > { %v6017_v11 = vpop.f32.mrf.mxu0 }
 0x4f9   : > { %1608 = vst.msk [vmem:[#allocation2 + $0x70] sm:$0xff] %vm364_vm0, %v6017_v11 }
 0x4fa   : > { %v1579_v13 = vpop.f32.mrf.mxu0 }
 0x4fb   : > { %1606 = vst.msk [vmem:[#allocation2 + $0x60] sm:$0xff] %vm364_vm0, %v1579_v13 }
 0x4fc   : > { %v6018_v14 = vpop.f32.mrf.mxu0 }
 0x4fd   : > { %1609 = vst.msk [vmem:[#allocation2 + $0x78] sm:$0xff] %vm364_vm0, %v6018_v14  ;;  %v2119_v14 = vsel %vm899_vm3, %v7594_v61, 0.0 }
 0x4fe   : > { %v1582_v16 = vpop.f32.mrf.mxu0 }
 0x4ff   : > { %1607 = vst.msk [vmem:[#allocation2 + $0x68] sm:$0xff] %vm364_vm0, %v1582_v16 }
 0x500   : > { %v1863_v17 = vpop.f32.mrf.mxu0 }
 0x501   : > { %v7621_v45 = vadd.f32 %v7497_v29, %v1863_v17 }
 0x502   : > { %v6047_v19 = vpop.f32.mrf.mxu0 }
 0x503   : > { %v2047_v20 = vsel %vm899_vm3, %v7621_v45, -inf }
 0x504   : > { %v1866_v55 = vpop.f32.mrf.mxu0  ;;  %2048 = vmax.xlane.f32.xlu1 %v2047_v20 }
 0x505   : > { %v7626_v35 = vadd.f32 %v7503_v33, %v1866_v55  ;;  %v2128_v55 = vsel %vm899_vm3, %v7607_v42, 0.0 }
 0x506   : > { %v6048_v21 = vpop.f32.mrf.mxu0 }
 0x507   : > { %v2050_v36 = vsel %vm899_vm3, %v7626_v35, -inf }
 0x508   : > { %v2037_v22 = vpop.xlane.xlu1 %2036  ;;  %2051 = vmax.xlane.f32.xlu0 %v2050_v36  ;;  %v1965_v8 = vpop.f32.mrf.mxu0 }
 0x509   : > { %v2075_v43 = vsub.f32 %v7535_v1, %v2037_v22  ;;  %v7640_v1 = vadd.f32 %v7497_v29, %v1965_v8 }
 0x50a   : > { %v6059_v4 = vpop.f32.mrf.mxu0 }
 0x50b   : > { %v2095_v50 = vmul.f32 1.442695, %v2075_v43  ;;  %v2059_v15 = vsel %vm899_vm3, %v7640_v1, -inf }
 0x50c   : > { %v1968_v28 = vpop.f32.mrf.mxu0  ;;  %v2040_v30 = vpop.xlane.xlu0 %2039 }
 0x50d   : > { %v2076_v32 = vsub.f32 %v7540_v5, %v2040_v30  ;;  %6540 = vpow2.f32 %v2095_v50  ;;  %v7643_v5 = vadd.f32 %v7503_v33, %v1968_v28 }
 0x50e   : > { %v6060_v10 = vpop.f32.mrf.mxu0 }
 0x50f   : > { %v2097_v38 = vmul.f32 1.442695, %v2076_v32  ;;  %v2062_v44 = vsel %vm899_vm3, %v7643_v5, -inf }
 0x511   : > { %6542 = vpow2.f32 %v2097_v38 }
 0x515   : > { %2410 = vrot.lane.b32.xlu1 %v7174_v0, %s6918_s15 }
 0x51a   : > { %v6541_v39 = vpop.eup %6540 }
 0x51e   : > { %v6543_v31 = vpop.eup %6542  ;;  %2363 = vrot.lane.b32.xlu0 %v7158_v57, %s6918_s15 }
 0x51f   : > { %v2169_v40 = vpack.c.bf16 %v6543_v31, %v6541_v39  ;;  %v2134_v21 = vsel %vm899_vm3, %v6543_v31, 0.0 }
 0x521   : > { %6082 = vmatmul.mubr.msk.bf16.vlgmr.msra.gmra.mxu0 %vm899_vm3, %v2169_v40 }
 0x522   : > { %6093 = vmatprep.mubr.msk.bf16.mxu0 %vm6913_vm1, %v6912_v26 }
 0x539   : > { %2060 = vmax.xlane.f32.xlu1 %v2059_v15 }
 0x53d   : > { %2063 = vmax.xlane.f32.xlu0 %v2062_v44 }
 0x54a   : > { %2504 = vrot.lane.b32.xlu1 %v7180_v3, %s6918_s15 }
 0x54e   : > { %v2043_v48 = vpop.xlane.xlu1 %2042 }
 0x54f   : > { %v2077_v53 = vsub.f32 %v7552_v51, %v2043_v48 }
 0x551   : > { %v2099_v56 = vmul.f32 1.442695, %v2077_v53 }
 0x552   : > { %v2046_v29 = vpop.xlane.xlu0 %2045 }
 0x553   : > { %v2078_v58 = vsub.f32 %v7562_v54, %v2046_v29  ;;  %2457 = vrot.lane.b32.xlu0 %v7162_v60, %s6918_s15  ;;  %6544 = vpow2.f32 %v2099_v56 }
 0x555   : > { %v2101_v33 = vmul.f32 1.442695, %v2078_v58 }
 0x556   : > { %v2055_v52 = vpop.xlane.xlu1 %2054 }
 0x557   : > { %6546 = vpow2.f32 %v2101_v33  ;;  %v2081_v25 = vsub.f32 %v7570_v27, %v2055_v52  ;;  %v2122_v27 = vsel %vm899_vm3, %v7596_v7, 0.0 }
 0x559   : > { %v2107_v54 = vmul.f32 1.442695, %v2081_v25 }
 0x55a   : > { %v2058_v24 = vpop.xlane.xlu0 %2057 }
 0x55e   : > { %v2067_v49 = vpop.xlane.xlu1 %2066 }
 0x55f   : > { %v2085_v62 = vsub.f32 %v7585_v18, %v2067_v49  ;;  %v2082_v18 = vsub.f32 %v7578_v46, %v2058_v24  ;;  %v2125_v46 = vsel %vm899_vm3, %v7605_v37, 0.0 }
 0x560   : > { %v6545_v51 = vpop.eup %6544 }
 0x561   : > { %v2115_v2 = vmul.f32 1.442695, %v2085_v62  ;;  %v2109_v13 = vmul.f32 1.442695, %v2082_v18  ;;  %v2137_v19 = vsel %vm899_vm3, %v6545_v51, 0.0 }
 0x562   : > { %v2070_v34 = vpop.xlane.xlu0 %2069 }
 0x563   : > { %v2086_v6 = vsub.f32 %v7590_v23, %v2070_v34  ;;  %6548 = vpow2.f32 %v2115_v2  ;;  %v2131_v23 = vsel %vm899_vm3, %v6541_v39, 0.0 }
 0x564   : > { %v6547_v9 = vpop.eup %6546 }
 0x565   : > { %v2117_v12 = vmul.f32 1.442695, %v2086_v6  ;;  %v2170_v11 = vpack.c.bf16 %v6547_v9, %v6545_v51  ;;  %v2140_v36 = vsel %vm899_vm3, %v6547_v9, 0.0  ;;  %v2591_v6 = vld [vmem:[#allocation8 + $0x4] sm:$0xf] }
 0x566   : > { %v2617_v18 = vsel %vm1493_vm4, %v2591_v6, 0 }
 0x567   : > { %6550 = vpow2.f32 %v2117_v12  ;;  %6088 = vmatmul.mubr.msk.bf16.vlgmr.msra.gmra.mxu1 %vm899_vm3, %v2170_v11 }
 0x568   : > { %6099 = vmatprep.mubr.msk.bf16.mxu1 %vm6913_vm1, %v6912_v26  ;;  %6552 = vpow2.f32 %v2107_v54 }
 0x569   : > { %6554 = vpow2.f32 %v2109_v13 }
 0x56e   : > { %2123 = vadd.xlane.f32.xlu1 %v2122_v27 }
 0x570   : > { %v7667_v16 = vpop.eup %6548 }
 0x571   : > { %v2161_v8 = vsel %vm899_vm3, %v7667_v16, 0.0 }
 0x572   : > { %2132 = vadd.xlane.f32.xlu1 %v2131_v23  ;;  %2120 = vadd.xlane.f32.xlu0 %v2119_v14 }
 0x574   : > { %v7669_v17 = vpop.eup %6550 }
 0x575   : > { %v2174_v7 = vpack.c.bf16 %v7669_v17, %v7667_v16  ;;  %v6553_v20 = vpop.eup %6552  ;;  %v2164_v43 = vsel %vm899_vm3, %v7669_v17, 0.0 }
 0x576   : > { %2138 = vadd.xlane.f32.xlu1 %v2137_v19  ;;  %2126 = vadd.xlane.f32.xlu0 %v2125_v46  ;;  %v2149_v61 = vsel %vm899_vm3, %v6553_v20, 0.0  ;;  %v6555_v22 = vpop.eup %6554 }
 0x577   : > { %v2152_v37 = vsel %vm899_vm3, %v6555_v22, 0.0  ;;  %v2172_v10 = vpack.c.bf16 %v6555_v22, %v6553_v20 }
 0x57a   : > { %2150 = vadd.xlane.f32.xlu1 %v2149_v61  ;;  %2129 = vadd.xlane.f32.xlu0 %v2128_v55 }
 0x57e   : > { %2135 = vadd.xlane.f32.xlu0 %v2134_v21 }
 0x582   : > { %2141 = vadd.xlane.f32.xlu0 %v2140_v36 }
 0x586   : > { %2153 = vadd.xlane.f32.xlu0 %v2152_v37 }
 0x58a   : > { %2162 = vadd.xlane.f32.xlu0 %v2161_v8 }
 0x58b   : > { %2771 = vrot.lane.b32.xlu1 %v7150_v41, %s6919_s19 }
 0x58d   : > { %v2049_v42 = vpop.xlane.xlu1 %2048 }
 0x58e   : > { %v2079_v4 = vsub.f32 %v7621_v45, %v2049_v42  ;;  %2165 = vadd.xlane.f32.xlu0 %v2164_v43 }
 0x58f   : > { %2822 = vrot.lane.b32.xlu1 %v7154_v47, %s6919_s19 }
 0x590   : > { %v2103_v50 = vmul.f32 1.442695, %v2079_v4 }
 0x591   : > { %v2411_v28 = vpop.permute.xlu1 %2410  ;;  %v2052_v30 = vpop.xlane.xlu0 %2051 }
 0x592   : > { %v2080_v32 = vsub.f32 %v7626_v35, %v2052_v30  ;;  %6098 = vmatpush3.bf16.msra.mxu1 %v2411_v28  ;;  %6556 = vpow2.f32 %v2103_v50 }
 0x593   : > { %2820 = vrot.lane.b32.xlu1 %v7154_v47, %s6920_s10  ;;  %6109 = vmatprep.subr.bf16.mxu1 %v6912_v26 }
 0x594   : > { %v2105_v38 = vmul.f32 1.442695, %v2080_v32 }
 0x595   : > { %6100 = vmatmul.mubr.msk.bf16.vlgmr.msra.gmra.mxu1 %vm899_vm3, %v2172_v10  ;;  %v2364_v45 = vpop.permute.xlu0 %2363 }
 0x596   : > { %6558 = vpow2.f32 %v2105_v38  ;;  %6092 = vmatpush3.bf16.msra.mxu0 %v2364_v45  ;;  %6111 = vmatprep.mubr.msk.bf16.mxu1 %vm6913_vm1, %v6912_v26 }
 0x597   : > { %2873 = vrot.lane.b32.xlu1 %v7160_v59, %s6919_s19  ;;  %6103 = vmatprep.subr.bf16.mxu0 %v6912_v26 }
 0x59b   : > { %2871 = vrot.lane.b32.xlu1 %v7160_v59, %s6920_s10 }
 0x59d   : > { %v7703_v35 = vpop.f32.mrf.mxu0 }
 0x59f   : > { %v6071_v39 = vpop.f32.mrf.mxu0  ;;  %v6557_v40 = vpop.eup %6556 }
 0x5a0   : > { %v2143_v33 = vsel %vm899_vm3, %v6557_v40, 0.0 }
 0x5a1   : > { %v7705_v31 = vpop.f32.mrf.mxu0 }
 0x5a3   : > { %v6559_v15 = vpop.eup %6558  ;;  %v6072_v44 = vpop.f32.mrf.mxu0 }
 0x5a4   : > { %2769 = vrot.lane.b32.xlu0 %v7150_v41, %s6920_s10  ;;  %v2171_v48 = vpack.c.bf16 %v6559_v15, %v6557_v40  ;;  %v2146_v24 = vsel %vm899_vm3, %v6559_v15, 0.0 }
 0x5a5   : > { %v7709_v53 = vpop.f32.mrf.mxu1 }
 0x5a6   : > { %6094 = vmatmul.mubr.msk.bf16.vlgmr.msra.gmra.mxu0 %vm899_vm3, %v2171_v48 }
 0x5a7   : > { %v6077_v56 = vpop.f32.mrf.mxu1  ;;  %6105 = vmatprep.mubr.msk.bf16.mxu0 %vm6913_vm1, %v6912_v26 }
 0x5a9   : > { %v7714_v29 = vpop.f32.mrf.mxu1 }
 0x5ab   : > { %v6078_v58 = vpop.f32.mrf.mxu1 }
 0x5bf   : > { %2144 = vadd.xlane.f32.xlu1 %v2143_v33 }
 0x5c2   : > { %v2061_v52 = vpop.xlane.xlu1 %2060 }
 0x5c3   : > { %v2083_v49 = vsub.f32 %v7640_v1, %v2061_v52  ;;  %2147 = vadd.xlane.f32.xlu0 %v2146_v24 }
 0x5c5   : > { %v2111_v62 = vmul.f32 1.442695, %v2083_v49 }
 0x5c6   : > { %v2505_v25 = vpop.permute.xlu1 %2504  ;;  %v2064_v2 = vpop.xlane.xlu0 %2063 }
 0x5c7   : > { %6560 = vpow2.f32 %v2111_v62  ;;  %v2084_v34 = vsub.f32 %v7643_v5, %v2064_v2  ;;  %6110 = vmatpush3.bf16.msra.mxu1 %v2505_v25 }
 0x5c8   : > { %6133 = vmatprep.subr.bf16.mxu1 %v6912_v26 }
 0x5c9   : > { %v2113_v51 = vmul.f32 1.442695, %v2084_v34 }
 0x5ca   : > { %6112 = vmatmul.mubr.msk.bf16.vlgmr.msra.gmra.mxu1 %vm899_vm3, %v2174_v7  ;;  %v2458_v9 = vpop.permute.xlu0 %2457 }
 0x5cb   : > { %6562 = vpow2.f32 %v2113_v51  ;;  %6104 = vmatpush3.bf16.msra.mxu0 %v2458_v9  ;;  %6135 = vmatprep.mubr.msk.bf16.mxu1 %vm6913_vm1, %v6912_v26 }
 0x5cc   : > { %6366 = vmatprep.subr.msk.bf16.mxu0 %vm1493_vm4, %v2591_v6 }
 0x5d4   : > { %v6561_v1 = vpop.eup %6560 }
 0x5d5   : > { %v2155_v5 = vsel %vm899_vm3, %v6561_v1, 0.0 }
 0x5d6   : > { %2156 = vadd.xlane.f32.xlu1 %v2155_v5 }
 0x5d8   : > { %v6563_v54 = vpop.eup %6562 }
 0x5d9   : > { %v2158_v12 = vsel %vm899_vm3, %v6563_v54, 0.0  ;;  %v2173_v11 = vpack.c.bf16 %v6563_v54, %v6561_v1 }
 0x5da   : > { %2159 = vadd.xlane.f32.xlu0 %v2158_v12 }
 0x5db   : > { %6106 = vmatmul.mubr.msk.bf16.vlgmr.msra.gmra.mxu0 %vm899_vm3, %v2173_v11 }
 0x5dc   : > { %6116 = vmatpush3.bf16.msra.mxu0 %v2617_v18 }
 0x5dd   : > { %6157 = vmatprep.subr.bf16.mxu0 %v6912_v26 }
 0x5e1   : > { %v2309_v27 = vpop.f32.mrf.mxu0 }
 0x5e3   : > { %v6083_v13 = vpop.f32.mrf.mxu0 }
 0x5e5   : > { %v2312_v23 = vpop.f32.mrf.mxu0 }
 0x5e7   : > { %2975 = vrot.lane.b32.xlu1 %v7158_v57, %s6919_s19  ;;  %v6084_v14 = vpop.f32.mrf.mxu0 }
 0x5eb   : > { %3026 = vrot.lane.b32.xlu1 %v7174_v0, %s6919_s19 }
 0x5ef   : > { %3077 = vrot.lane.b32.xlu1 %v7162_v60, %s6919_s19 }
 0x5f0   : > { %2924 = vrot.lane.b32.xlu0 %v7168_v63, %s6919_s19 }
 0x5f3   : > { %3128 = vrot.lane.b32.xlu1 %v7180_v3, %s6919_s19 }
 0x5f4   : > { %2922 = vrot.lane.b32.xlu0 %v7168_v63, %s6920_s10 }
 0x5f7   : > { %3126 = vrot.lane.b32.xlu1 %v7180_v3, %s6920_s10  ;;  %v2124_v16 = vpop.xlane.xlu1 %2123 }
 0x5f8   : > { %2973 = vrot.lane.b32.xlu0 %v7158_v57, %s6920_s10  ;;  %6564 = vrcp.f32 %v2124_v16 }
 0x5fb   : > { %3329 = vrot.lane.b32.xlu1 %v7150_v41, %s6921_s7  ;;  %v2133_v17 = vpop.xlane.xlu1 %2132  ;;  %v2121_v19 = vpop.xlane.xlu0 %2120 }
 0x5fc   : > { %3024 = vrot.lane.b32.xlu0 %v7174_v0, %s6920_s10  ;;  %6566 = vrcp.f32 %v2121_v19 }
 0x5ff   : > { %3423 = vrot.lane.b32.xlu1 %v7160_v59, %s6921_s7  ;;  %v2139_v46 = vpop.xlane.xlu1 %2138  ;;  %v2127_v7 = vpop.xlane.xlu0 %2126 }
 0x600   : > { %3075 = vrot.lane.b32.xlu0 %v7162_v60, %s6920_s10  ;;  %6568 = vrcp.f32 %v2127_v7 }
 0x603   : > { %3470 = vrot.lane.b32.xlu1 %v7168_v63, %s6921_s7  ;;  %v7759_v20 = vpop.xlane.xlu1 %2150  ;;  %v2130_v61 = vpop.xlane.xlu0 %2129 }
 0x604   : > { %3376 = vrot.lane.b32.xlu0 %v7154_v47, %s6921_s7  ;;  %6570 = vrcp.f32 %v2130_v61 }
 0x605   : > { %6572 = vrcp.f32 %v2133_v17  ;;  %v6565_v36 = vpop.eup %6564 }
 0x606   : > { %v2568_v43 = vmul.f32 %v6565_v36, %v7705_v31 }
 0x607   : > { %v2772_v55 = vpop.permute.xlu1 %2771  ;;  %v2136_v21 = vpop.xlane.xlu0 %2135 }
 0x608   : > { %v2777_v22 = vsel %vm501_vm2, %v2772_v55, 0  ;;  %6574 = vrcp.f32 %v2136_v21 }
 0x609   : > { %6134 = vmatpush3.bf16.xpose.msra.mxu1 %v2777_v22  ;;  %v6567_v37 = vpop.eup %6566  ;;  %6576 = vrcp.f32 %v2139_v46 }
 0x60a   : > { %6139 = vmatprep.subr.bf16.mxu1 %v6912_v26  ;;  %v2567_v42 = vmul.f32 %v6567_v37, %v7703_v35 }
 0x60b   : > { %v2142_v8 = vpop.xlane.xlu0 %2141  ;;  %v2823_v40 = vpop.permute.xlu1 %2822 }
 0x60c   : > { %v2583_v4 = vpack.c.bf16 %v2568_v43, %v2567_v42  ;;  %v2828_v33 = vsel %vm501_vm2, %v2823_v40, 0  ;;  %6578 = vrcp.f32 %v2142_v8 }
 0x60d   : > { %v6569_v28 = vpop.eup %6568 }
 0x60e   : > { %6117 = vmatprep.mubr.msk.bf16.mxu0 %vm501_vm2, %v2583_v4  ;;  %v2569_v38 = vmul.f32 %v6569_v28, %v7709_v53 }
 0x60f   : > { %v2154_v50 = vpop.xlane.xlu0 %2153  ;;  %v2821_v56 = vpop.permute.xlu1 %2820 }
 0x610   : > { %6580 = vrcp.f32 %v2154_v50 }
 0x611   : > { %v6571_v30 = vpop.eup %6570 }
 0x612   : > { %v6573_v32 = vpop.eup %6572  ;;  %v2570_v45 = vmul.f32 %v6571_v30, %v7714_v29 }
 0x613   : > { %v7768_v10 = vpop.xlane.xlu0 %2162  ;;  %v2571_v44 = vmul.f32 %v6573_v32, %v2309_v27  ;;  %v2874_v53 = vpop.permute.xlu1 %2873 }
 0x614   : > { %v2584_v15 = vpack.c.bf16 %v2570_v45, %v2569_v38  ;;  %v2879_v29 = vsel %vm501_vm2, %v2874_v53, 0 }
 0x615   : > { %v6575_v39 = vpop.eup %6574 }
 0x616   : > { %v2572_v35 = vmul.f32 %v6575_v39, %v2312_v23  ;;  %6118 = vmatmul.mubr.msk.bf16.vlgmr.msra.gmra.mxu0 %vm501_vm2, %v2584_v15  ;;  %v6577_v49 = vpop.eup %6576 }
 0x617   : > { %v7773_v31 = vpop.xlane.xlu0 %2165  ;;  %v2872_v25 = vpop.permute.xlu1 %2871 }
 0x618   : > { %v2585_v48 = vpack.c.bf16 %v2572_v35, %v2571_v44 }
 0x619   : > { %v6579_v62 = vpop.eup %6578 }
 0x61a   : > { %6121 = vmatprep.mubr.msk.bf16.mxu0 %vm501_vm2, %v2585_v48 }
 0x61b   : > { %v2770_v58 = vpop.permute.xlu0 %2769 }
 0x61c   : > { %6136 = vmatmul.mubr.msk.bf16.vlgmr.msra.gmra.mxu1 %vm501_vm2, %v2770_v58 }
 0x61d   : > { %6140 = vmatpush3.bf16.xpose.msra.mxu1 %v2828_v33  ;;  %6141 = vmatprep.mubr.msk.bf16.mxu1 %vm6913_vm1, %v6912_v26  ;;  %v6581_v19 = vpop.eup %6580 }
 0x61e   : > { %6145 = vmatprep.subr.bf16.mxu1 %v6912_v26 }
 0x624   : > { %6142 = vmatmul.mubr.msk.bf16.vlgmr.msra.gmra.mxu1 %vm501_vm2, %v2821_v56 }
 0x625   : > { %6146 = vmatpush3.bf16.xpose.msra.mxu1 %v2879_v29  ;;  %6147 = vmatprep.mubr.msk.bf16.mxu1 %vm6913_vm1, %v6912_v26 }
 0x626   : > { %6151 = vmatprep.subr.bf16.mxu1 %v6912_v26 }
 0x627   : > { %v2356_v52 = vpop.f32.mrf.mxu1 }
 0x628   : > { %v2573_v34 = vmul.f32 %v6577_v49, %v2356_v52 }
 0x629   : > { %v6089_v24 = vpop.f32.mrf.mxu1 }
 0x62b   : > { %v2359_v2 = vpop.f32.mrf.mxu1 }
 0x62c   : > { %v2574_v51 = vmul.f32 %v6579_v62, %v2359_v2  ;;  %6148 = vmatmul.mubr.msk.bf16.vlgmr.msra.gmra.mxu1 %vm501_vm2, %v2872_v25 }
 0x62d   : > { %v6090_v6 = vpop.f32.mrf.mxu1  ;;  %6153 = vmatprep.mubr.msk.bf16.mxu1 %vm6913_vm1, %v6912_v26 }
 0x62e   : > { %v2586_v9 = vpack.c.bf16 %v2574_v51, %v2573_v34 }
 0x630   : > { %6122 = vmatmul.mubr.msk.bf16.gmra.mxu0 %vm501_vm2, %v2586_v9 }
 0x648   : > { %v2145_v54 = vpop.xlane.xlu1 %2144 }
 0x649   : > { %6582 = vrcp.f32 %v2145_v54  ;;  %v5704_v54 = vld [vmem:[#allocation9 + $0x10] sm:$0xff]  }
 0x64c   : > { %v2148_v11 = vpop.xlane.xlu0 %2147 }
 0x64d   : > { %6584 = vrcp.f32 %v2148_v11  ;;  %v2718_v11 = vld [vmem:[#allocation2 + $0x10] sm:$0xff] }
 0x64e   : > { %6586 = vrcp.f32 %v7759_v20 }
 0x64f   : > { %6588 = vrcp.f32 %v7773_v31 }
 0x655   : > { %v2450_v1 = vpop.f32.mrf.mxu1 }
 0x656   : > { %v6583_v61 = vpop.eup %6582 }
 0x657   : > { %v6101_v5 = vpop.f32.mrf.mxu1 }
 0x659   : > { %v2453_v12 = vpop.f32.mrf.mxu1 }
 0x65a   : > { %v6585_v21 = vpop.eup %6584  ;;  %v2578_v36 = vmul.f32 %v6581_v19, %v2453_v12 }
 0x65b   : > { %v6102_v18 = vpop.f32.mrf.mxu1  ;;  %v6587_v22 = vpop.eup %6586 }
 0x65c   : > { %v2577_v43 = vmul.f32 %v6587_v22, %v2450_v1  ;;  %v6589_v29 = vpop.eup %6588 }
 0x65e   : > { %v2588_v28 = vpack.c.bf16 %v2578_v36, %v2577_v43 }
 0x65f   : > { %v2157_v27 = vpop.xlane.xlu1 %2156 }
 0x660   : > { %6590 = vrcp.f32 %v2157_v27 }
 0x663   : > { %v2976_v13 = vpop.permute.xlu1 %2975  ;;  %v2160_v23 = vpop.xlane.xlu0 %2159 }
 0x664   : > { %v2981_v14 = vsel %vm501_vm2, %v2976_v13, 0  ;;  %6592 = vrcp.f32 %v2160_v23  ;;  %v2716_v13 = vld [vmem:[#allocation2] sm:$0xff]  ;;  %v7826_v23 = vunpack.c.l.bf16 %v5704_v54 }
 0x665   : > { %6158 = vmatpush3.bf16.xpose.msra.mxu0 %v2981_v14  ;;  %6594 = vrcp.f32 %v7768_v10 }
 0x666   : > { %v2403_v16 = vpop.f32.mrf.mxu0  ;;  %6169 = vmatprep.subr.bf16.mxu0 %v6912_v26 }
 0x667   : > { %v2925_v17 = vpop.permute.xlu0 %2924  ;;  %v3027_v55 = vpop.permute.xlu1 %3026  ;;  %v2575_v37 = vmul.f32 %v6583_v61, %v2403_v16  ;;  %v2717_v61 = vld [vmem:[#allocation2 + $0x8] sm:$0xff] }
 0x668   : > { %v2930_v46 = vsel %vm501_vm2, %v2925_v17, 0  ;;  %v6095_v7 = vpop.f32.mrf.mxu0  ;;  %v3032_v38 = vsel %vm501_vm2, %v3027_v55, 0  ;;  %v2719_v17 = vld [vmem:[#allocation2 + $0x18] sm:$0xff] }
 0x669   : > { %6152 = vmatpush3.bf16.xpose.msra.mxu1 %v2930_v46 }
 0x66a   : > { %v2406_v20 = vpop.f32.mrf.mxu0  ;;  %6163 = vmatprep.subr.bf16.mxu1 %v6912_v26 }
 0x66b   : > { %v2576_v8 = vmul.f32 %v6585_v21, %v2406_v20  ;;  %v2923_v42 = vpop.permute.xlu0 %2922  ;;  %v3078_v30 = vpop.permute.xlu1 %3077  ;;  %v7833_v21 = vunpack.c.h.bf16 %v5704_v54 }
 0x66c   : > { %v6096_v4 = vpop.f32.mrf.mxu0  ;;  %v3083_v10 = vsel %vm501_vm2, %v3078_v30, 0 }
 0x66d   : > { %v2587_v50 = vpack.c.bf16 %v2576_v8, %v2575_v37  ;;  %v6591_v24 = vpop.eup %6590 }
 0x66f   : > { %6125 = vmatprep.mubr.msk.bf16.mxu0 %vm501_vm2, %v2587_v50  ;;  %v2974_v32 = vpop.permute.xlu0 %2973  ;;  %v3129_v39 = vpop.permute.xlu1 %3128 }
 0x670   : > { %6126 = vmatmul.mubr.msk.bf16.gmra.mxu0 %vm501_vm2, %v2588_v28  ;;  %6154 = vmatmul.mubr.msk.bf16.vlgmr.msra.gmra.mxu1 %vm501_vm2, %v2923_v42  ;;  %v3134_v40 = vsel %vm501_vm2, %v3129_v39, 0 }
 0x671   : > { %6164 = vmatpush3.bf16.xpose.msra.mxu1 %v3032_v38  ;;  %6165 = vmatprep.mubr.msk.bf16.mxu1 %vm6913_vm1, %v6912_v26  ;;  %v6593_v49 = vpop.eup %6592 }
 0x672   : > { %6175 = vmatprep.subr.bf16.mxu1 %v6912_v26  ;;  %v6595_v2 = vpop.eup %6594 }
 0x673   : > { %v3025_v45 = vpop.permute.xlu0 %3024  ;;  %v3127_v44 = vpop.permute.xlu1 %3126 }
 0x677   : > { %v3076_v15 = vpop.permute.xlu0 %3075  ;;  %v3330_v31 = vpop.permute.xlu1 %3329 }
 0x678   : > { %6166 = vmatmul.mubr.msk.bf16.vlgmr.msra.gmra.mxu1 %vm501_vm2, %v3025_v45 }
 0x679   : > { %6176 = vmatpush3.bf16.xpose.msra.mxu1 %v3134_v40  ;;  %6177 = vmatprep.mubr.msk.bf16.mxu1 %vm6913_vm1, %v6912_v26 }
 0x67a   : > { %6187 = vmatprep.subr.bf16.mxu1 %v6912_v26 }
 0x67b   : > { %v3377_v35 = vpop.permute.xlu0 %3376 }
 0x680   : > { %6178 = vmatmul.mubr.msk.bf16.vlgmr.msra.gmra.mxu1 %vm501_vm2, %v3127_v44 }
 0x681   : > { %6188 = vmatpush3.bf16.msra.mxu1 %v3377_v35  ;;  %6189 = vmatprep.mubr.msk.bf16.mxu1 %vm6913_vm1, %v6912_v26 }
 0x682   : > { %6199 = vmatprep.subr.bf16.mxu1 %v6912_v26 }
 0x68a   : > { %v2544_v48 = vpop.f32.mrf.mxu1 }
 0x68b   : > { %v2581_v6 = vmul.f32 %v6595_v2, %v2544_v48  ;;  %v2723_v2 = vld [vmem:[#allocation2 + $0x38] sm:$0xff] }
 0x68c   : > { %v6113_v56 = vpop.f32.mrf.mxu1 }
 0x68d   : > { %v2722_v56 = vld [vmem:[#allocation2 + $0x30] sm:$0xff] }
 0x68e   : > { %v2547_v58 = vpop.f32.mrf.mxu1 }
 0x68f   : > { %v2582_v62 = vmul.f32 %v6589_v29, %v2547_v58 }
 0x690   : > { %v6114_v33 = vpop.f32.mrf.mxu1 }
 0x691   : > { %v2590_v5 = vpack.c.bf16 %v2582_v62, %v2581_v6  ;;  %v2721_v6 = vld [vmem:[#allocation2 + $0x28] sm:$0xff] }
 0x69b   : > { %v2497_v53 = vpop.f32.mrf.mxu0 }
 0x69c   : > { %v2579_v34 = vmul.f32 %v6591_v24, %v2497_v53 }
 0x69d   : > { %v6107_v52 = vpop.f32.mrf.mxu0 }
 0x69e   : > { %v2720_v52 = vld [vmem:[#allocation2 + $0x20] sm:$0xff] }
 0x69f   : > { %v2500_v25 = vpop.f32.mrf.mxu0 }
 0x6a0   : > { %v2580_v51 = vmul.f32 %v6593_v49, %v2500_v25 }
 0x6a1   : > { %v6108_v9 = vpop.f32.mrf.mxu0 }
 0x6a2   : > { %v2589_v1 = vpack.c.bf16 %v2580_v51, %v2579_v34 }
 0x6a4   : > { %6129 = vmatprep.mubr.msk.bf16.mxu0 %vm501_vm2, %v2589_v1 }
 0x6a5   : > { %6130 = vmatmul.mubr.msk.bf16.gmra.mxu0 %vm501_vm2, %v2590_v5  ;;  %v2726_v5 = vld [vmem:[#allocation2 + $0x50] sm:$0xff] }
 0x6a6   : > { %6159 = vmatprep.mubr.msk.bf16.mxu0 %vm6913_vm1, %v6912_v26 }
 0x6ad   : > { %6160 = vmatmul.mubr.msk.bf16.vlgmr.msra.gmra.mxu0 %vm501_vm2, %v2974_v32 }
 0x6ae   : > { %6170 = vmatpush3.bf16.xpose.msra.mxu0 %v3083_v10  ;;  %6171 = vmatprep.mubr.msk.bf16.mxu0 %vm6913_vm1, %v6912_v26 }
 0x6af   : > { %6181 = vmatprep.subr.bf16.mxu0 %v6912_v26 }
 0x6b5   : > { %6172 = vmatmul.mubr.msk.bf16.vlgmr.msra.gmra.mxu0 %vm501_vm2, %v3076_v15 }
 0x6b6   : > { %6182 = vmatpush3.bf16.msra.mxu0 %v3330_v31  ;;  %6183 = vmatprep.mubr.msk.bf16.mxu0 %vm6913_vm1, %v6912_v26 }
 0x6b7   : > { %6193 = vmatprep.subr.bf16.mxu0 %v6912_v26 }
 0x6d6   : > { %v6119_v12 = vpop.f32.mrf.mxu0 }
 0x6d7   : > { %v2734_v18 = vadd.f32 %v6119_v12, %v2718_v11  ;;  %v2724_v11 = vld [vmem:[#allocation2 + $0x40] sm:$0xff] }
 0x6d8   : > { %v2653_v27 = vpop.f32.mrf.mxu0 }
 0x6d9   : > { %2750 = vst.msk [vmem:[#allocation2 + $0x10] sm:$0xff] %vm364_vm0, %v2734_v18  ;;  %v2732_v14 = vadd.f32 %v2716_v13, %v2653_v27 }
 0x6da   : > { %v6120_v16 = vpop.f32.mrf.mxu0 }
 0x6db   : > { %2748 = vst.msk [vmem:[#allocation2] sm:$0xff] %vm364_vm0, %v2732_v14  ;;  %v2735_v19 = vadd.f32 %v6120_v16, %v2719_v17  ;;  %v2727_v16 = vld [vmem:[#allocation2 + $0x58] sm:$0xff] }
 0x6dc   : > { %v2813_v46 = vpop.f32.mrf.mxu1  ;;  %v2656_v7 = vpop.f32.mrf.mxu0 }
 0x6dd   : > { %v7831_v55 = vadd.f32 %v7826_v23, %v2813_v46  ;;  %2751 = vst.msk [vmem:[#allocation2 + $0x18] sm:$0xff] %vm364_vm0, %v2735_v19  ;;  %v2733_v36 = vadd.f32 %v2717_v61, %v2656_v7  ;;  %v2725_v61 = vld [vmem:[#allocation2 + $0x48] sm:$0xff] }
 0x6de   : > { %v6137_v20 = vpop.f32.mrf.mxu1 }
 0x6df   : > { %v3177_v22 = vsel %vm899_vm3, %v7831_v55, -inf  ;;  %2749 = vst.msk [vmem:[#allocation2 + $0x8] sm:$0xff] %vm364_vm0, %v2733_v36 }
 0x6e0   : > { %3178 = vmax.xlane.f32.xlu0 %v3177_v22  ;;  %v2816_v37 = vpop.f32.mrf.mxu1 }
 0x6e1   : > { %v7840_v8 = vadd.f32 %v7833_v21, %v2816_v37 }
 0x6e2   : > { %v6138_v42 = vpop.f32.mrf.mxu1 }
 0x6e3   : > { %v3180_v43 = vsel %vm899_vm3, %v7840_v8, -inf }
 0x6e4   : > { %3181 = vmax.xlane.f32.xlu1 %v3180_v43  ;;  %v2864_v4 = vpop.f32.mrf.mxu1 }
 0x6e5   : > { %v7845_v50 = vadd.f32 %v7826_v23, %v2864_v4 }
 0x6e6   : > { %v6143_v28 = vpop.f32.mrf.mxu1 }
 0x6e7   : > { %v3183_v30 = vsel %vm899_vm3, %v7845_v50, -inf }
 0x6e8   : > { %3184 = vmax.xlane.f32.xlu0 %v3183_v30  ;;  %v2867_v32 = vpop.f32.mrf.mxu1 }
 0x6e9   : > { %v7850_v38 = vadd.f32 %v7833_v21, %v2867_v32 }
 0x6ea   : > { %v6144_v45 = vpop.f32.mrf.mxu1 }
 0x6eb   : > { %v3186_v39 = vsel %vm899_vm3, %v7850_v38, -inf }
 0x6ec   : > { %3187 = vmax.xlane.f32.xlu0 %v3186_v39  ;;  %v2915_v40 = vpop.f32.mrf.mxu1 }
 0x6ed   : > { %v7855_v15 = vadd.f32 %v7826_v23, %v2915_v40 }
 0x6ee   : > { %v6149_v44 = vpop.f32.mrf.mxu1 }
 0x6ef   : > { %v3189_v35 = vsel %vm899_vm3, %v7855_v15, -inf }
 0x6f0   : > { %v6123_v48 = vpop.f32.mrf.mxu0  ;;  %3190 = vmax.xlane.f32.xlu1 %v3189_v35  ;;  %v2918_v58 = vpop.f32.mrf.mxu1 }
 0x6f1   : > { %v2738_v33 = vadd.f32 %v6123_v48, %v2722_v56  ;;  %v7860_v53 = vadd.f32 %v7833_v21, %v2918_v58 }
 0x6f2   : > { %v2669_v29 = vpop.f32.mrf.mxu0  ;;  %v6150_v24 = vpop.f32.mrf.mxu1 }
 0x6f3   : > { %2754 = vst.msk [vmem:[#allocation2 + $0x30] sm:$0xff] %vm364_vm0, %v2738_v33  ;;  %v2736_v49 = vadd.f32 %v2720_v52, %v2669_v29  ;;  %v3192_v62 = vsel %vm899_vm3, %v7860_v53, -inf  ;;  %v3424_v29 = vpop.permute.xlu1 %3423  ;;  %v2730_v24 = vld [vmem:[#allocation2 + $0x70] sm:$0xff] }
 0x6f4   : > { %v6124_v25 = vpop.f32.mrf.mxu0  ;;  %3193 = vmax.xlane.f32.xlu0 %v3192_v62 }
 0x6f5   : > { %2752 = vst.msk [vmem:[#allocation2 + $0x20] sm:$0xff] %vm364_vm0, %v2736_v49  ;;  %v2739_v34 = vadd.f32 %v6124_v25, %v2723_v2  ;;  %v2728_v25 = vld [vmem:[#allocation2 + $0x60] sm:$0xff] }
 0x6f6   : > { %v2672_v51 = vpop.f32.mrf.mxu0 }
 0x6f7   : > { %2755 = vst.msk [vmem:[#allocation2 + $0x38] sm:$0xff] %vm364_vm0, %v2739_v34  ;;  %v2737_v9 = vadd.f32 %v2721_v6, %v2672_v51  ;;  %v3471_v2 = vpop.permute.xlu1 %3470  ;;  %v2731_v6 = vld [vmem:[#allocation2 + $0x78] sm:$0xff] }
 0x6f9   : > { %2753 = vst.msk [vmem:[#allocation2 + $0x28] sm:$0xff] %vm364_vm0, %v2737_v9 }
 0x730   : > { %v6127_v1 = vpop.f32.mrf.mxu0  ;;  %v2966_v10 = vpop.f32.mrf.mxu1 }
 0x731   : > { %v2742_v31 = vadd.f32 %v6127_v1, %v2726_v5  ;;  %v7869_v54 = vadd.f32 %v7826_v23, %v2966_v10 }
 0x732   : > { %v2685_v12 = vpop.f32.mrf.mxu0  ;;  %v6155_v18 = vpop.f32.mrf.mxu1 }
 0x733   : > { %2758 = vst.msk [vmem:[#allocation2 + $0x50] sm:$0xff] %vm364_vm0, %v2742_v31  ;;  %v2740_v27 = vadd.f32 %v2724_v11, %v2685_v12  ;;  %v3195_v13 = vsel %vm899_vm3, %v7869_v54, -inf  ;;  %v2729_v31 = vld [vmem:[#allocation2 + $0x68] sm:$0xff] }
 0x734   : > { %v6128_v14 = vpop.f32.mrf.mxu0  ;;  %3196 = vmax.xlane.f32.xlu1 %v3195_v13  ;;  %v2969_v17 = vpop.f32.mrf.mxu1 }
 0x735   : > { %2756 = vst.msk [vmem:[#allocation2 + $0x40] sm:$0xff] %vm364_vm0, %v2740_v27  ;;  %v2743_v19 = vadd.f32 %v6128_v14, %v2727_v16  ;;  %v7876_v46 = vadd.f32 %v7833_v21, %v2969_v17 }
 0x736   : > { %v2688_v7 = vpop.f32.mrf.mxu0  ;;  %v6156_v36 = vpop.f32.mrf.mxu1 }
 0x737   : > { %2759 = vst.msk [vmem:[#allocation2 + $0x58] sm:$0xff] %vm364_vm0, %v2743_v19  ;;  %v2741_v20 = vadd.f32 %v2725_v61, %v2688_v7  ;;  %v3198_v22 = vsel %vm899_vm3, %v7876_v46, -inf }
 0x738   : > { %3199 = vmax.xlane.f32.xlu0 %v3198_v22  ;;  %v3068_v37 = vpop.f32.mrf.mxu1 }
 0x739   : > { %2757 = vst.msk [vmem:[#allocation2 + $0x48] sm:$0xff] %vm364_vm0, %v2741_v20  ;;  %v7883_v42 = vadd.f32 %v7826_v23, %v3068_v37 }
 0x73a   : > { %v6167_v43 = vpop.f32.mrf.mxu1 }
 0x73b   : > { %v3207_v4 = vsel %vm899_vm3, %v7883_v42, -inf }
 0x73c   : > { %3208 = vmax.xlane.f32.xlu1 %v3207_v4  ;;  %v3071_v28 = vpop.f32.mrf.mxu1 }
 0x73d   : > { %v7888_v30 = vadd.f32 %v7833_v21, %v3071_v28 }
 0x73e   : > { %v6168_v32 = vpop.f32.mrf.mxu1 }
 0x73f   : > { %v3210_v45 = vsel %vm899_vm3, %v7888_v30, -inf }
 0x740   : > { %3211 = vmax.xlane.f32.xlu0 %v3210_v45  ;;  %v3170_v39 = vpop.f32.mrf.mxu1 }
 0x741   : > { %v7893_v40 = vadd.f32 %v7826_v23, %v3170_v39 }
 0x742   : > { %v6179_v44 = vpop.f32.mrf.mxu1 }
 0x743   : > { %v3219_v35 = vsel %vm899_vm3, %v7893_v40, -inf }
 0x744   : > { %3220 = vmax.xlane.f32.xlu1 %v3219_v35  ;;  %v3173_v48 = vpop.f32.mrf.mxu1 }
 0x745   : > { %v7898_v56 = vadd.f32 %v7833_v21, %v3173_v48 }
 0x746   : > { %v6180_v58 = vpop.f32.mrf.mxu1 }
 0x747   : > { %v3222_v33 = vsel %vm899_vm3, %v7898_v56, -inf }
 0x748   : > { %3223 = vmax.xlane.f32.xlu0 %v3222_v33 }
 0x765   : > { %v6131_v52 = vpop.f32.mrf.mxu0 }
 0x766   : > { %v2746_v49 = vadd.f32 %v6131_v52, %v2730_v24 }
 0x767   : > { %v2701_v62 = vpop.f32.mrf.mxu0 }
 0x768   : > { %2762 = vst.msk [vmem:[#allocation2 + $0x70] sm:$0xff] %vm364_vm0, %v2746_v49  ;;  %v2744_v34 = vadd.f32 %v2728_v25, %v2701_v62 }
 0x769   : > { %v6132_v51 = vpop.f32.mrf.mxu0  ;;  %v3179_v9 = vpop.xlane.xlu0 %3178 }
 0x76a   : > { %2760 = vst.msk [vmem:[#allocation2 + $0x60] sm:$0xff] %vm364_vm0, %v2744_v34  ;;  %v2747_v1 = vadd.f32 %v6132_v51, %v2731_v6  ;;  %v3225_v5 = vsub.f32 %v7831_v55, %v3179_v9 }
 0x76b   : > { %v2704_v10 = vpop.f32.mrf.mxu0 }
 0x76c   : > { %2763 = vst.msk [vmem:[#allocation2 + $0x78] sm:$0xff] %vm364_vm0, %v2747_v1  ;;  %v2745_v12 = vadd.f32 %v2729_v31, %v2704_v10  ;;  %v3241_v11 = vmul.f32 1.442695, %v3225_v5 }
 0x76d   : > { %v3182_v18 = vpop.xlane.xlu1 %3181  ;;  %v3017_v27 = vpop.f32.mrf.mxu0 }
 0x76e   : > { %2761 = vst.msk [vmem:[#allocation2 + $0x68] sm:$0xff] %vm364_vm0, %v2745_v12  ;;  %v3226_v13 = vsub.f32 %v7840_v8, %v3182_v18  ;;  %v7909_v14 = vadd.f32 %v7826_v23, %v3017_v27  ;;  %6596 = vpow2.f32 %v3241_v11 }
 0x76f   : > { %v6161_v16 = vpop.f32.mrf.mxu0 }
 0x770   : > { %v3243_v17 = vmul.f32 1.442695, %v3226_v13  ;;  %v3201_v55 = vsel %vm899_vm3, %v7909_v14, -inf }
 0x771   : > { %v3020_v19 = vpop.f32.mrf.mxu0  ;;  %3202 = vmax.xlane.f32.xlu1 %v3201_v55  ;;  %v3185_v7 = vpop.xlane.xlu0 %3184 }
 0x772   : > { %6598 = vpow2.f32 %v3243_v17  ;;  %v7914_v61 = vadd.f32 %v7833_v21, %v3020_v19  ;;  %v3227_v36 = vsub.f32 %v7845_v50, %v3185_v7 }
 0x773   : > { %v6162_v20 = vpop.f32.mrf.mxu0 }
 0x774   : > { %v3204_v8 = vsel %vm899_vm3, %v7914_v61, -inf  ;;  %v3245_v22 = vmul.f32 1.442695, %v3227_v36 }
 0x775   : > { %3205 = vmax.xlane.f32.xlu0 %v3204_v8  ;;  %v3119_v37 = vpop.f32.mrf.mxu0  ;;  %v3188_v43 = vpop.xlane.xlu0 %3187 }
 0x776   : > { %v3228_v4 = vsub.f32 %v7850_v38, %v3188_v43  ;;  %6600 = vpow2.f32 %v3245_v22  ;;  %v7944_v34 = vadd.f32 %v7826_v23, %v3119_v37 }
 0x777   : > { %v6173_v28 = vpop.f32.mrf.mxu0 }
 0x778   : > { %v3247_v32 = vmul.f32 1.442695, %v3228_v4  ;;  %v3213_v51 = vsel %vm899_vm3, %v7944_v34, -inf }
 0x779   : > { %v3191_v45 = vpop.xlane.xlu1 %3190  ;;  %v3122_v39 = vpop.f32.mrf.mxu0 }
 0x77a   : > { %6602 = vpow2.f32 %v3247_v32  ;;  %v3229_v44 = vsub.f32 %v7855_v15, %v3191_v45 }
 0x77b   : > { %v6174_v35 = vpop.f32.mrf.mxu0  ;;  %v7921_v58 = vpop.eup %6596 }
 0x77c   : > { %v3249_v50 = vmul.f32 1.442695, %v3229_v44 }
 0x77d   : > { %v3194_v48 = vpop.xlane.xlu0 %3193 }
 0x77e   : > { %v3230_v33 = vsub.f32 %v7860_v53, %v3194_v48  ;;  %6604 = vpow2.f32 %v3249_v50 }
 0x77f   : > { %v6599_v52 = vpop.eup %6598 }
 0x780   : > { %v3251_v24 = vmul.f32 1.442695, %v3230_v33  ;;  %v3321_v49 = vpack.c.bf16 %v6599_v52, %v7921_v58 }
 0x782   : > { %6606 = vpow2.f32 %v3251_v24  ;;  %3564 = vrot.lane.b32.xlu1 %v7174_v0, %s6921_s7  ;;  %6184 = vmatmul.mubr.msk.bf16.vlgmr.msra.gmra.mxu0 %vm899_vm3, %v3321_v49 }
 0x783   : > { %6194 = vmatpush3.bf16.msra.mxu0 %v3424_v29  ;;  %6195 = vmatprep.mubr.msk.bf16.mxu0 %vm6913_vm1, %v6912_v26  ;;  %v6601_v38 = vpop.eup %6600 }
 0x784   : > { %6205 = vmatprep.subr.bf16.mxu0 %v6912_v26  ;;  %v3279_v43 = vsel %vm899_vm3, %v6601_v38, 0.0 }
 0x787   : > { %v7931_v15 = vpop.eup %6602 }
 0x788   : > { %v3322_v53 = vpack.c.bf16 %v7931_v15, %v6601_v38  ;;  %v3282_v32 = vsel %vm899_vm3, %v7931_v15, 0.0 }
 0x78a   : > { %6190 = vmatmul.mubr.msk.bf16.vlgmr.msra.gmra.mxu1 %vm899_vm3, %v3322_v53 }
 0x78b   : > { %6200 = vmatpush3.bf16.msra.mxu1 %v3471_v2  ;;  %3517 = vrot.lane.b32.xlu0 %v7158_v57, %s6921_s7  ;;  %v6605_v29 = vpop.eup %6604  ;;  %v7947_v2 = vadd.f32 %v7833_v21, %v3122_v39 }
 0x78c   : > { %6201 = vmatprep.mubr.msk.bf16.mxu1 %vm6913_vm1, %v6912_v26  ;;  %6211 = vmatprep.subr.bf16.mxu1 %v6912_v26  ;;  %v3285_v20 = vsel %vm899_vm3, %v6605_v29, 0.0 }
 0x78d   : > { %v3216_v6 = vsel %vm899_vm3, %v7947_v2, -inf }
 0x78f   : > { %v6607_v62 = vpop.eup %6606 }
 0x790   : > { %v3323_v25 = vpack.c.bf16 %v6607_v62, %v6605_v29  ;;  %v3288_v45 = vsel %vm899_vm3, %v6607_v62, 0.0 }
 0x792   : > { %6196 = vmatmul.mubr.msk.bf16.vlgmr.msra.gmra.mxu0 %vm899_vm3, %v3323_v25 }
 0x793   : > { %6207 = vmatprep.mubr.msk.bf16.mxu0 %vm6913_vm1, %v6912_v26 }
 0x7a6   : > { %3214 = vmax.xlane.f32.xlu1 %v3213_v51 }
 0x7aa   : > { %3217 = vmax.xlane.f32.xlu0 %v3216_v6 }
 0x7b7   : > { %3658 = vrot.lane.b32.xlu1 %v7180_v3, %s6921_s7 }
 0x7bd   : > { %v3197_v9 = vpop.xlane.xlu1 %3196 }
 0x7be   : > { %v3231_v1 = vsub.f32 %v7869_v54, %v3197_v9 }
 0x7c0   : > { %3611 = vrot.lane.b32.xlu0 %v7162_v60, %s6921_s7  ;;  %v3253_v23 = vmul.f32 1.442695, %v3231_v1  ;;  %s5450_s7 = scalar_lea.sflag [#allocation5], %s7099_s17 }
 0x7c1   : > { %v3200_v21 = vpop.xlane.xlu0 %3199 }
 0x7c2   : > { %v3232_v5 = vsub.f32 %v7876_v46, %v3200_v21  ;;  %6608 = vpow2.f32 %v3253_v23 }
 0x7c4   : > { %v3255_v10 = vmul.f32 1.442695, %v3232_v5 }
 0x7c5   : > { %v3209_v31 = vpop.xlane.xlu1 %3208 }
 0x7c6   : > { %6610 = vpow2.f32 %v3255_v10  ;;  %v3235_v12 = vsub.f32 %v7883_v42, %v3209_v31  ;;  %v3745_v31 = vld [vmem:[#allocation8 + $0x8] sm:$0xf] }
 0x7c8   : > { %v3261_v13 = vmul.f32 1.442695, %v3235_v12 }
 0x7c9   : > { %v3212_v11 = vpop.xlane.xlu0 %3211 }
 0x7ca   : > { %6612 = vpow2.f32 %v3261_v13  ;;  %v3236_v42 = vsub.f32 %v7888_v30, %v3212_v11 }
 0x7cc   : > { %v3263_v36 = vmul.f32 1.442695, %v3236_v42 }
 0x7cd   : > { %v3221_v18 = vpop.xlane.xlu1 %3220 }
 0x7ce   : > { %v3239_v27 = vsub.f32 %v7893_v40, %v3221_v18  ;;  %v3276_v40 = vsel %vm899_vm3, %v6599_v52, 0.0 }
 0x7cf   : > { %v6609_v17 = vpop.eup %6608 }
 0x7d0   : > { %v3269_v16 = vmul.f32 1.442695, %v3239_v27  ;;  %v3291_v37 = vsel %vm899_vm3, %v6609_v17, 0.0 }
 0x7d1   : > { %v3224_v54 = vpop.xlane.xlu0 %3223 }
 0x7d2   : > { %v3240_v55 = vsub.f32 %v7898_v56, %v3224_v54  ;;  %6614 = vpow2.f32 %v3269_v16  ;;  %v3273_v56 = vsel %vm899_vm3, %v7921_v58, 0.0 }
 0x7d3   : > { %v6611_v19 = vpop.eup %6610 }
 0x7d4   : > { %v3324_v7 = vpack.c.bf16 %v6611_v19, %v6609_v17  ;;  %v3271_v46 = vmul.f32 1.442695, %v3240_v55  ;;  %v3294_v39 = vsel %vm899_vm3, %v6611_v19, 0.0  ;;  %v3771_v17 = vsel %vm1493_vm4, %v3745_v31, 0 }
 0x7d6   : > { %6616 = vpow2.f32 %v3271_v46  ;;  %6202 = vmatmul.mubr.msk.bf16.vlgmr.msra.gmra.mxu1 %vm899_vm3, %v3324_v7 }
 0x7d7   : > { %6213 = vmatprep.mubr.msk.bf16.mxu1 %vm6913_vm1, %v6912_v26  ;;  %v6613_v8 = vpop.eup %6612  ;;  %6618 = vpow2.f32 %v3263_v36 }
 0x7d8   : > { %v3303_v28 = vsel %vm899_vm3, %v6613_v8, 0.0 }
 0x7db   : > { %3277 = vadd.xlane.f32.xlu1 %v3276_v40 }
 0x7df   : > { %3286 = vadd.xlane.f32.xlu1 %v3285_v20  ;;  %3274 = vadd.xlane.f32.xlu0 %v3273_v56  ;;  %v7970_v22 = vpop.eup %6614 }
 0x7e0   : > { %v3315_v50 = vsel %vm899_vm3, %v7970_v22, 0.0 }
 0x7e3   : > { %v7974_v30 = vpop.eup %6616  ;;  %3292 = vadd.xlane.f32.xlu1 %v3291_v37  ;;  %3280 = vadd.xlane.f32.xlu0 %v3279_v43 }
 0x7e4   : > { %v3328_v4 = vpack.c.bf16 %v7974_v30, %v7970_v22  ;;  %v6619_v44 = vpop.eup %6618  ;;  %v3318_v58 = vsel %vm899_vm3, %v7974_v30, 0.0 }
 0x7e5   : > { %v3306_v35 = vsel %vm899_vm3, %v6619_v44, 0.0  ;;  %v3326_v15 = vpack.c.bf16 %v6619_v44, %v6613_v8 }
 0x7e7   : > { %3304 = vadd.xlane.f32.xlu1 %v3303_v28  ;;  %3283 = vadd.xlane.f32.xlu0 %v3282_v32 }
 0x7eb   : > { %3289 = vadd.xlane.f32.xlu0 %v3288_v45 }
 0x7ef   : > { %3295 = vadd.xlane.f32.xlu0 %v3294_v39 }
 0x7f3   : > { %3307 = vadd.xlane.f32.xlu0 %v3306_v35 }
 0x7f7   : > { %3316 = vadd.xlane.f32.xlu0 %v3315_v50 }
 0x7f8   : > { %3925 = vrot.lane.b32.xlu1 %v7150_v41, %s6922_s8 }
 0x7fa   : > { %v3203_v48 = vpop.xlane.xlu1 %3202 }
 0x7fb   : > { %v3233_v33 = vsub.f32 %v7909_v14, %v3203_v48  ;;  %3319 = vadd.xlane.f32.xlu0 %v3318_v58 }
 0x7fc   : > { %3976 = vrot.lane.b32.xlu1 %v7154_v47, %s6922_s8 }
 0x7fd   : > { %v3257_v52 = vmul.f32 1.442695, %v3233_v33 }
 0x7fe   : > { %v3565_v24 = vpop.permute.xlu1 %3564  ;;  %v3206_v49 = vpop.xlane.xlu0 %3205 }
 0x7ff   : > { %v3234_v38 = vsub.f32 %v7914_v61, %v3206_v49  ;;  %6212 = vmatpush3.bf16.msra.mxu1 %v3565_v24  ;;  %6620 = vpow2.f32 %v3257_v52 }
 0x800   : > { %3974 = vrot.lane.b32.xlu1 %v7154_v47, %s6923_s12  ;;  %6223 = vmatprep.subr.bf16.mxu1 %v6912_v26 }
 0x801   : > { %v3259_v53 = vmul.f32 1.442695, %v3234_v38 }
 0x802   : > { %6214 = vmatmul.mubr.msk.bf16.vlgmr.msra.gmra.mxu1 %vm899_vm3, %v3326_v15  ;;  %v3518_v14 = vpop.permute.xlu0 %3517 }
 0x803   : > { %6622 = vpow2.f32 %v3259_v53  ;;  %6206 = vmatpush3.bf16.msra.mxu0 %v3518_v14  ;;  %6225 = vmatprep.mubr.msk.bf16.mxu1 %vm6913_vm1, %v6912_v26 }
 0x804   : > { %4027 = vrot.lane.b32.xlu1 %v7160_v59, %s6922_s8  ;;  %6217 = vmatprep.subr.bf16.mxu0 %v6912_v26 }
 0x808   : > { %4025 = vrot.lane.b32.xlu1 %v7160_v59, %s6923_s12 }
 0x80c   : > { %v6621_v61 = vpop.eup %6620 }
 0x80d   : > { %v3297_v25 = vsel %vm899_vm3, %v6621_v61, 0.0 }
 0x810   : > { %v6623_v29 = vpop.eup %6622 }
 0x811   : > { %3923 = vrot.lane.b32.xlu0 %v7150_v41, %s6923_s12  ;;  %v3325_v62 = vpack.c.bf16 %v6623_v29, %v6621_v61  ;;  %v3300_v6 = vsel %vm899_vm3, %v6623_v29, 0.0 }
 0x813   : > { %6208 = vmatmul.mubr.msk.bf16.vlgmr.msra.gmra.mxu0 %vm899_vm3, %v3325_v62 }
 0x814   : > { %6219 = vmatprep.mubr.msk.bf16.mxu0 %vm6913_vm1, %v6912_v26 }
 0x82c   : > { %3298 = vadd.xlane.f32.xlu1 %v3297_v25 }
 0x82f   : > { %v3215_v51 = vpop.xlane.xlu1 %3214 }
 0x830   : > { %v3237_v9 = vsub.f32 %v7944_v34, %v3215_v51  ;;  %3301 = vadd.xlane.f32.xlu0 %v3300_v6 }
 0x832   : > { %v3265_v1 = vmul.f32 1.442695, %v3237_v9 }
 0x833   : > { %v3659_v23 = vpop.permute.xlu1 %3658  ;;  %v3218_v21 = vpop.xlane.xlu0 %3217 }
 0x834   : > { %6624 = vpow2.f32 %v3265_v1  ;;  %v3238_v5 = vsub.f32 %v7947_v2, %v3218_v21  ;;  %6224 = vmatpush3.bf16.msra.mxu1 %v3659_v23 }
 0x835   : > { %6247 = vmatprep.subr.bf16.mxu1 %v6912_v26 }
 0x836   : > { %v3267_v10 = vmul.f32 1.442695, %v3238_v5 }
 0x837   : > { %6226 = vmatmul.mubr.msk.bf16.vlgmr.msra.gmra.mxu1 %vm899_vm3, %v3328_v4  ;;  %v3612_v12 = vpop.permute.xlu0 %3611 }
 0x838   : > { %6626 = vpow2.f32 %v3267_v10  ;;  %6218 = vmatpush3.bf16.msra.mxu0 %v3612_v12  ;;  %6249 = vmatprep.mubr.msk.bf16.mxu1 %vm6913_vm1, %v6912_v26 }
 0x839   : > { %6367 = vmatprep.subr.msk.bf16.mxu0 %vm1493_vm4, %v3745_v31 }
 0x841   : > { %v6625_v34 = vpop.eup %6624 }
 0x842   : > { %v3369_v11 = vpop.f32.mrf.mxu0  ;;  %v3309_v18 = vsel %vm899_vm3, %v6625_v34, 0.0 }
 0x843   : > { %3310 = vadd.xlane.f32.xlu1 %v3309_v18 }
 0x844   : > { %v6185_v2 = vpop.f32.mrf.mxu0 }
 0x845   : > { %v6627_v27 = vpop.eup %6626 }
 0x846   : > { %v3372_v13 = vpop.f32.mrf.mxu0  ;;  %v3312_v16 = vsel %vm899_vm3, %v6627_v27, 0.0  ;;  %v3327_v54 = vpack.c.bf16 %v6627_v27, %v6625_v34 }
 0x847   : > { %3313 = vadd.xlane.f32.xlu0 %v3312_v16 }
 0x848   : > { %v6186_v55 = vpop.f32.mrf.mxu0  ;;  %6220 = vmatmul.mubr.msk.bf16.vlgmr.msra.gmra.mxu0 %vm899_vm3, %v3327_v54 }
 0x849   : > { %6230 = vmatpush3.bf16.msra.mxu0 %v3771_v17 }
 0x84a   : > { %v3416_v19 = vpop.f32.mrf.mxu1  ;;  %6271 = vmatprep.subr.bf16.mxu0 %v6912_v26 }
 0x84c   : > { %v6191_v7 = vpop.f32.mrf.mxu1 }
 0x84e   : > { %v3419_v46 = vpop.f32.mrf.mxu1 }
 0x850   : > { %v6192_v42 = vpop.f32.mrf.mxu1 }
 0x852   : > { %v3463_v40 = vpop.f32.mrf.mxu0 }
 0x854   : > { %4129 = vrot.lane.b32.xlu1 %v7158_v57, %s6922_s8  ;;  %v6197_v36 = vpop.f32.mrf.mxu0 }
 0x856   : > { %v3466_v20 = vpop.f32.mrf.mxu0 }
 0x858   : > { %4180 = vrot.lane.b32.xlu1 %v7174_v0, %s6922_s8  ;;  %v6198_v56 = vpop.f32.mrf.mxu0 }
 0x85c   : > { %4231 = vrot.lane.b32.xlu1 %v7162_v60, %s6922_s8 }
 0x85d   : > { %4078 = vrot.lane.b32.xlu0 %v7168_v63, %s6922_s8 }
 0x860   : > { %4282 = vrot.lane.b32.xlu1 %v7180_v3, %s6922_s8 }
 0x861   : > { %4076 = vrot.lane.b32.xlu0 %v7168_v63, %s6923_s12 }
 0x864   : > { %4280 = vrot.lane.b32.xlu1 %v7180_v3, %s6923_s12  ;;  %v3278_v8 = vpop.xlane.xlu1 %3277 }
 0x865   : > { %4127 = vrot.lane.b32.xlu0 %v7158_v57, %s6923_s12  ;;  %6628 = vrcp.f32 %v3278_v8 }
 0x868   : > { %v3287_v22 = vpop.xlane.xlu1 %3286  ;;  %v3275_v37 = vpop.xlane.xlu0 %3274 }
 0x869   : > { %4178 = vrot.lane.b32.xlu0 %v7174_v0, %s6923_s12  ;;  %6630 = vrcp.f32 %v3275_v37 }
 0x86c   : > { %v3293_v43 = vpop.xlane.xlu1 %3292  ;;  %v3281_v30 = vpop.xlane.xlu0 %3280 }
 0x86d   : > { %4229 = vrot.lane.b32.xlu0 %v7162_v60, %s6923_s12  ;;  %6632 = vrcp.f32 %v3281_v30 }
 0x870   : > { %v3305_v4 = vpop.xlane.xlu1 %3304  ;;  %v3284_v28 = vpop.xlane.xlu0 %3283 }
 0x871   : > { %6634 = vrcp.f32 %v3284_v28 }
 0x872   : > { %6636 = vrcp.f32 %v3287_v22  ;;  %v6629_v39 = vpop.eup %6628 }
 0x873   : > { %v3722_v58 = vmul.f32 %v6629_v39, %v3372_v13 }
 0x874   : > { %v3926_v32 = vpop.permute.xlu1 %3925  ;;  %v3290_v45 = vpop.xlane.xlu0 %3289 }
 0x875   : > { %v3931_v44 = vsel %vm501_vm2, %v3926_v32, 0  ;;  %6638 = vrcp.f32 %v3290_v45 }
 0x876   : > { %6248 = vmatpush3.bf16.xpose.msra.mxu1 %v3931_v44  ;;  %v6631_v35 = vpop.eup %6630  ;;  %6640 = vrcp.f32 %v3293_v43 }
 0x877   : > { %6253 = vmatprep.subr.bf16.mxu1 %v6912_v26  ;;  %v3721_v48 = vmul.f32 %v6631_v35, %v3369_v11 }
 0x878   : > { %v3296_v50 = vpop.xlane.xlu0 %3295  ;;  %v3977_v62 = vpop.permute.xlu1 %3976 }
 0x879   : > { %v3737_v33 = vpack.c.bf16 %v3722_v58, %v3721_v48  ;;  %v3982_v21 = vsel %vm501_vm2, %v3977_v62, 0  ;;  %6642 = vrcp.f32 %v3296_v50 }
 0x87a   : > { %v6633_v24 = vpop.eup %6632  ;;  %6644 = vrcp.f32 %v3305_v4 }
 0x87b   : > { %6231 = vmatprep.mubr.msk.bf16.mxu0 %vm501_vm2, %v3737_v33  ;;  %v3723_v15 = vmul.f32 %v6633_v24, %v3416_v19 }
 0x87c   : > { %v3308_v52 = vpop.xlane.xlu0 %3307  ;;  %v3975_v1 = vpop.permute.xlu1 %3974 }
 0x87d   : > { %6646 = vrcp.f32 %v3308_v52 }
 0x87e   : > { %v6635_v49 = vpop.eup %6634 }
 0x87f   : > { %v6637_v38 = vpop.eup %6636  ;;  %v3724_v53 = vmul.f32 %v6635_v49, %v3419_v46 }
 0x880   : > { %v8047_v14 = vpop.xlane.xlu0 %3316  ;;  %v3725_v25 = vmul.f32 %v6637_v38, %v3463_v40  ;;  %v4028_v5 = vpop.permute.xlu1 %4027 }
 0x881   : > { %v3738_v29 = vpack.c.bf16 %v3724_v53, %v3723_v15  ;;  %v4033_v10 = vsel %vm501_vm2, %v4028_v5, 0 }
 0x882   : > { %v6639_v61 = vpop.eup %6638 }
 0x883   : > { %v3726_v51 = vmul.f32 %v6639_v61, %v3466_v20  ;;  %6232 = vmatmul.mubr.msk.bf16.vlgmr.msra.gmra.mxu0 %vm501_vm2, %v3738_v29  ;;  %v6641_v11 = vpop.eup %6640 }
 0x884   : > { %v8050_v6 = vpop.xlane.xlu0 %3319  ;;  %v4026_v12 = vpop.permute.xlu1 %4025 }
 0x885   : > { %v3739_v9 = vpack.c.bf16 %v3726_v51, %v3725_v25 }
 0x886   : > { %v6643_v18 = vpop.eup %6642 }
 0x887   : > { %6235 = vmatprep.mubr.msk.bf16.mxu0 %vm501_vm2, %v3739_v9  ;;  %v6645_v19 = vpop.eup %6644 }
 0x888   : > { %v3924_v23 = vpop.permute.xlu0 %3923 }
 0x889   : > { %6250 = vmatmul.mubr.msk.bf16.vlgmr.msra.gmra.mxu1 %vm501_vm2, %v3924_v23 }
 0x88a   : > { %6254 = vmatpush3.bf16.xpose.msra.mxu1 %v3982_v21  ;;  %6255 = vmatprep.mubr.msk.bf16.mxu1 %vm6913_vm1, %v6912_v26  ;;  %v6647_v7 = vpop.eup %6646 }
 0x88b   : > { %6259 = vmatprep.subr.bf16.mxu1 %v6912_v26 }
 0x891   : > { %6256 = vmatmul.mubr.msk.bf16.vlgmr.msra.gmra.mxu1 %vm501_vm2, %v3975_v1 }
 0x892   : > { %6260 = vmatpush3.bf16.xpose.msra.mxu1 %v4033_v10  ;;  %6261 = vmatprep.mubr.msk.bf16.mxu1 %vm6913_vm1, %v6912_v26 }
 0x893   : > { %6265 = vmatprep.subr.bf16.mxu1 %v6912_v26 }
 0x896   : > { %v3510_v31 = vpop.f32.mrf.mxu1 }
 0x897   : > { %v3727_v27 = vmul.f32 %v6641_v11, %v3510_v31 }
 0x898   : > { %v6203_v34 = vpop.f32.mrf.mxu1 }
 0x899   : > { %6262 = vmatmul.mubr.msk.bf16.vlgmr.msra.gmra.mxu1 %vm501_vm2, %v4026_v12 }
 0x89a   : > { %v3513_v2 = vpop.f32.mrf.mxu1  ;;  %6267 = vmatprep.mubr.msk.bf16.mxu1 %vm6913_vm1, %v6912_v26 }
 0x89b   : > { %v3728_v13 = vmul.f32 %v6643_v18, %v3513_v2 }
 0x89c   : > { %v6204_v16 = vpop.f32.mrf.mxu1 }
 0x89d   : > { %v3740_v54 = vpack.c.bf16 %v3728_v13, %v3727_v27 }
 0x89f   : > { %6236 = vmatmul.mubr.msk.bf16.gmra.mxu0 %vm501_vm2, %v3740_v54 }
 0x8b5   : > { %v3299_v46 = vpop.xlane.xlu1 %3298 }
 0x8b6   : > { %6648 = vrcp.f32 %v3299_v46 }
 0x8b9   : > { %v3302_v40 = vpop.xlane.xlu0 %3301 }
 0x8ba   : > { %6650 = vrcp.f32 %v3302_v40 }
 0x8bb   : > { %6652 = vrcp.f32 %v8047_v14 }
 0x8bc   : > { %6654 = vrcp.f32 %v8050_v6 }
 0x8c2   : > { %v3604_v17 = vpop.f32.mrf.mxu1 }
 0x8c3   : > { %v3731_v36 = vmul.f32 %v6645_v19, %v3604_v17  ;;  %v6649_v39 = vpop.eup %6648  ;;  %v5708_v17 = vld [vmem:[#allocation9 + $0x18] sm:$0xff]   ;;  %v3872_v19 = vld [vmem:[#allocation2 + $0x10] sm:$0xff] }
 0x8c4   : > { %v6215_v55 = vpop.f32.mrf.mxu1  ;;  %v8100_v40 = vunpack.c.l.bf16 %v5708_v17 }
 0x8c6   : > { %v3607_v42 = vpop.f32.mrf.mxu1 }
 0x8c7   : > { %v3732_v20 = vmul.f32 %v6647_v7, %v3607_v42  ;;  %v6651_v35 = vpop.eup %6650  ;;  %v3870_v42 = vld [vmem:[#allocation2] sm:$0xff] }
 0x8c8   : > { %v6216_v56 = vpop.f32.mrf.mxu1  ;;  %v6653_v9 = vpop.eup %6652 }
 0x8c9   : > { %v3742_v8 = vpack.c.bf16 %v3732_v20, %v3731_v36  ;;  %v6655_v1 = vpop.eup %6654  ;;  %v3873_v56 = vld [vmem:[#allocation2 + $0x18] sm:$0xff] }
 0x8cc   : > { %v3311_v22 = vpop.xlane.xlu1 %3310 }
 0x8cd   : > { %6656 = vrcp.f32 %v3311_v22 }
 0x8d0   : > { %v4130_v37 = vpop.permute.xlu1 %4129  ;;  %v3314_v43 = vpop.xlane.xlu0 %3313 }
 0x8d1   : > { %v4135_v30 = vsel %vm501_vm2, %v4130_v37, 0  ;;  %6658 = vrcp.f32 %v3314_v43  ;;  %v3871_v43 = vld [vmem:[#allocation2 + $0x8] sm:$0xff] }
 0x8d2   : > { %6272 = vmatpush3.bf16.xpose.msra.mxu0 %v4135_v30 }
 0x8d3   : > { %v3557_v4 = vpop.f32.mrf.mxu0  ;;  %6283 = vmatprep.subr.bf16.mxu0 %v6912_v26 }
 0x8d4   : > { %v4079_v28 = vpop.permute.xlu0 %4078  ;;  %v4181_v44 = vpop.permute.xlu1 %4180  ;;  %v3729_v48 = vmul.f32 %v6649_v39, %v3557_v4  ;;  %v8107_v4 = vunpack.c.h.bf16 %v5708_v17 }
 0x8d5   : > { %v4084_v32 = vsel %vm501_vm2, %v4079_v28, 0  ;;  %v6209_v45 = vpop.f32.mrf.mxu0  ;;  %v4186_v38 = vsel %vm501_vm2, %v4181_v44, 0 }
 0x8d6   : > { %6266 = vmatpush3.bf16.xpose.msra.mxu1 %v4084_v32 }
 0x8d7   : > { %v3560_v50 = vpop.f32.mrf.mxu0  ;;  %6277 = vmatprep.subr.bf16.mxu1 %v6912_v26 }
 0x8d8   : > { %v3730_v58 = vmul.f32 %v6651_v35, %v3560_v50  ;;  %v4077_v33 = vpop.permute.xlu0 %4076  ;;  %v4232_v49 = vpop.permute.xlu1 %4231 }
 0x8d9   : > { %v6210_v52 = vpop.f32.mrf.mxu0  ;;  %v4237_v16 = vsel %vm501_vm2, %v4232_v49, 0 }
 0x8da   : > { %v3741_v24 = vpack.c.bf16 %v3730_v58, %v3729_v48  ;;  %v6657_v34 = vpop.eup %6656 }
 0x8dc   : > { %6239 = vmatprep.mubr.msk.bf16.mxu0 %vm501_vm2, %v3741_v24  ;;  %v4128_v15 = vpop.permute.xlu0 %4127  ;;  %v4283_v53 = vpop.permute.xlu1 %4282 }
 0x8dd   : > { %6240 = vmatmul.mubr.msk.bf16.gmra.mxu0 %vm501_vm2, %v3742_v8  ;;  %6268 = vmatmul.mubr.msk.bf16.vlgmr.msra.gmra.mxu1 %vm501_vm2, %v4077_v33  ;;  %v4288_v29 = vsel %vm501_vm2, %v4283_v53, 0 }
 0x8de   : > { %6278 = vmatpush3.bf16.xpose.msra.mxu1 %v4186_v38  ;;  %6279 = vmatprep.mubr.msk.bf16.mxu1 %vm6913_vm1, %v6912_v26  ;;  %v6659_v11 = vpop.eup %6658 }
 0x8df   : > { %6289 = vmatprep.subr.bf16.mxu1 %v6912_v26 }
 0x8e0   : > { %v4179_v61 = vpop.permute.xlu0 %4178  ;;  %v4281_v62 = vpop.permute.xlu1 %4280 }
 0x8e4   : > { %v4230_v54 = vpop.permute.xlu0 %4229 }
 0x8e5   : > { %6280 = vmatmul.mubr.msk.bf16.vlgmr.msra.gmra.mxu1 %vm501_vm2, %v4179_v61 }
 0x8e6   : > { %6290 = vmatpush3.bf16.xpose.msra.mxu1 %v4288_v29  ;;  %6291 = vmatprep.mubr.msk.bf16.mxu1 %vm6913_vm1, %v6912_v26 }
 0x8e7   : > { %6301 = vmatprep.subr.bf16.mxu1 %v6912_v26 }
 0x8ed   : > { %6292 = vmatmul.mubr.msk.bf16.vlgmr.msra.gmra.mxu1 %vm501_vm2, %v4281_v62 }
 0x8ee   : > { %6303 = vmatprep.mubr.msk.bf16.mxu1 %vm6913_vm1, %v6912_v26 }
 0x8f7   : > { %v3698_v25 = vpop.f32.mrf.mxu1 }
 0x8f8   : > { %v3735_v21 = vmul.f32 %v6653_v9, %v3698_v25 }
 0x8f9   : > { %v6227_v51 = vpop.f32.mrf.mxu1 }
 0x8fb   : > { %v3701_v23 = vpop.f32.mrf.mxu1 }
 0x8fc   : > { %v3736_v5 = vmul.f32 %v6655_v1, %v3701_v23  ;;  %v3876_v1 = vld [vmem:[#allocation2 + $0x30] sm:$0xff] }
 0x8fd   : > { %v6228_v10 = vpop.f32.mrf.mxu1 }
 0x8fe   : > { %v3744_v31 = vpack.c.bf16 %v3736_v5, %v3735_v21 }
 0x908   : > { %v3651_v12 = vpop.f32.mrf.mxu0 }
 0x909   : > { %v3733_v6 = vmul.f32 %v6657_v34, %v3651_v12  ;;  %v3877_v34 = vld [vmem:[#allocation2 + $0x38] sm:$0xff] }
 0x90a   : > { %v6221_v14 = vpop.f32.mrf.mxu0 }
 0x90c   : > { %v3654_v18 = vpop.f32.mrf.mxu0 }
 0x90d   : > { %v3734_v2 = vmul.f32 %v6659_v11, %v3654_v18 }
 0x90e   : > { %v6222_v27 = vpop.f32.mrf.mxu0 }
 0x90f   : > { %v3743_v13 = vpack.c.bf16 %v3734_v2, %v3733_v6  ;;  %v3875_v6 = vld [vmem:[#allocation2 + $0x28] sm:$0xff] }
 0x911   : > { %6243 = vmatprep.mubr.msk.bf16.mxu0 %vm501_vm2, %v3743_v13  ;;  %v3880_v13 = vld [vmem:[#allocation2 + $0x50] sm:$0xff] }
 0x912   : > { %6244 = vmatmul.mubr.msk.bf16.gmra.mxu0 %vm501_vm2, %v3744_v31  ;;  %v3874_v31 = vld [vmem:[#allocation2 + $0x20] sm:$0xff] }
 0x913   : > { %6273 = vmatprep.mubr.msk.bf16.mxu0 %vm6913_vm1, %v6912_v26 }
 0x91a   : > { %6274 = vmatmul.mubr.msk.bf16.vlgmr.msra.gmra.mxu0 %vm501_vm2, %v4128_v15 }
 0x91b   : > { %6284 = vmatpush3.bf16.xpose.msra.mxu0 %v4237_v16  ;;  %6285 = vmatprep.mubr.msk.bf16.mxu0 %vm6913_vm1, %v6912_v26 }
 0x91c   : > { %6295 = vmatprep.subr.bf16.mxu0 %v6912_v26 }
 0x922   : > { %6286 = vmatmul.mubr.msk.bf16.vlgmr.msra.gmra.mxu0 %vm501_vm2, %v4230_v54 }
 0x923   : > { %6297 = vmatprep.mubr.msk.bf16.mxu0 %vm6913_vm1, %v6912_v26 }
 0x943   : > { %v6233_v55 = vpop.f32.mrf.mxu0 }
 0x944   : > { %v3888_v7 = vadd.f32 %v6233_v55, %v3872_v19  ;;  %v3878_v19 = vld [vmem:[#allocation2 + $0x40] sm:$0xff] }
 0x945   : > { %v3807_v46 = vpop.f32.mrf.mxu0 }
 0x946   : > { %3904 = vst.msk [vmem:[#allocation2 + $0x10] sm:$0xff] %vm364_vm0, %v3888_v7  ;;  %v3886_v36 = vadd.f32 %v3870_v42, %v3807_v46 }
 0x947   : > { %v6234_v20 = vpop.f32.mrf.mxu0 }
 0x948   : > { %3902 = vst.msk [vmem:[#allocation2] sm:$0xff] %vm364_vm0, %v3886_v36  ;;  %v3889_v8 = vadd.f32 %v6234_v20, %v3873_v56  ;;  %v3881_v20 = vld [vmem:[#allocation2 + $0x58] sm:$0xff] }
 0x949   : > { %v3967_v22 = vpop.f32.mrf.mxu1  ;;  %v3810_v37 = vpop.f32.mrf.mxu0 }
 0x94a   : > { %v8105_v30 = vadd.f32 %v8100_v40, %v3967_v22  ;;  %3905 = vst.msk [vmem:[#allocation2 + $0x18] sm:$0xff] %vm364_vm0, %v3889_v8  ;;  %v3887_v28 = vadd.f32 %v3871_v43, %v3810_v37  ;;  %v3879_v43 = vld [vmem:[#allocation2 + $0x48] sm:$0xff] }
 0x94b   : > { %v6251_v32 = vpop.f32.mrf.mxu1 }
 0x94c   : > { %v4331_v45 = vsel %vm899_vm3, %v8105_v30, -inf  ;;  %3903 = vst.msk [vmem:[#allocation2 + $0x8] sm:$0xff] %vm364_vm0, %v3887_v28 }
 0x94d   : > { %4332 = vmax.xlane.f32.xlu0 %v4331_v45  ;;  %v3970_v39 = vpop.f32.mrf.mxu1 }
 0x94e   : > { %v8114_v44 = vadd.f32 %v8107_v4, %v3970_v39 }
 0x94f   : > { %v6252_v35 = vpop.f32.mrf.mxu1 }
 0x950   : > { %v4334_v50 = vsel %vm899_vm3, %v8114_v44, -inf }
 0x951   : > { %4335 = vmax.xlane.f32.xlu1 %v4334_v50  ;;  %v4018_v48 = vpop.f32.mrf.mxu1 }
 0x952   : > { %v8119_v58 = vadd.f32 %v8100_v40, %v4018_v48 }
 0x953   : > { %v6257_v33 = vpop.f32.mrf.mxu1 }
 0x954   : > { %v4337_v52 = vsel %vm899_vm3, %v8119_v58, -inf }
 0x955   : > { %4338 = vmax.xlane.f32.xlu0 %v4337_v52  ;;  %v4021_v24 = vpop.f32.mrf.mxu1 }
 0x956   : > { %v8124_v49 = vadd.f32 %v8107_v4, %v4021_v24 }
 0x957   : > { %v6258_v38 = vpop.f32.mrf.mxu1 }
 0x958   : > { %v4340_v15 = vsel %vm899_vm3, %v8124_v49, -inf }
 0x959   : > { %4341 = vmax.xlane.f32.xlu0 %v4340_v15  ;;  %v4069_v53 = vpop.f32.mrf.mxu1 }
 0x95a   : > { %v8129_v61 = vadd.f32 %v8100_v40, %v4069_v53 }
 0x95b   : > { %v6263_v29 = vpop.f32.mrf.mxu1 }
 0x95c   : > { %v4343_v62 = vsel %vm899_vm3, %v8129_v61, -inf }
 0x95d   : > { %4344 = vmax.xlane.f32.xlu1 %v4343_v62  ;;  %v4072_v25 = vpop.f32.mrf.mxu1 }
 0x95e   : > { %v8134_v51 = vadd.f32 %v8107_v4, %v4072_v25 }
 0x95f   : > { %v6237_v9 = vpop.f32.mrf.mxu0  ;;  %v6264_v23 = vpop.f32.mrf.mxu1 }
 0x960   : > { %v3892_v21 = vadd.f32 %v6237_v9, %v3876_v1  ;;  %v4346_v5 = vsel %vm899_vm3, %v8134_v51, -inf }
 0x961   : > { %v3823_v10 = vpop.f32.mrf.mxu0  ;;  %4347 = vmax.xlane.f32.xlu0 %v4346_v5  ;;  %v3884_v5 = vld [vmem:[#allocation2 + $0x70] sm:$0xff] }
 0x962   : > { %3908 = vst.msk [vmem:[#allocation2 + $0x30] sm:$0xff] %vm364_vm0, %v3892_v21  ;;  %v3890_v12 = vadd.f32 %v3874_v31, %v3823_v10 }
 0x963   : > { %v6238_v14 = vpop.f32.mrf.mxu0 }
 0x964   : > { %3906 = vst.msk [vmem:[#allocation2 + $0x20] sm:$0xff] %vm364_vm0, %v3890_v12  ;;  %v3893_v11 = vadd.f32 %v6238_v14, %v3877_v34  ;;  %v3882_v12 = vld [vmem:[#allocation2 + $0x60] sm:$0xff] }
 0x965   : > { %v3826_v18 = vpop.f32.mrf.mxu0 }
 0x966   : > { %3909 = vst.msk [vmem:[#allocation2 + $0x38] sm:$0xff] %vm364_vm0, %v3893_v11  ;;  %v3891_v2 = vadd.f32 %v3875_v6, %v3826_v18  ;;  %v3885_v11 = vld [vmem:[#allocation2 + $0x78] sm:$0xff]  ;;  %v3883_v18 = vld [vmem:[#allocation2 + $0x68] sm:$0xff] }
 0x968   : > { %3907 = vst.msk [vmem:[#allocation2 + $0x28] sm:$0xff] %vm364_vm0, %v3891_v2 }
 0x99d   : > { %v6241_v27 = vpop.f32.mrf.mxu0  ;;  %v4120_v16 = vpop.f32.mrf.mxu1 }
 0x99e   : > { %v3896_v54 = vadd.f32 %v6241_v27, %v3880_v13  ;;  %v8143_v17 = vadd.f32 %v8100_v40, %v4120_v16 }
 0x99f   : > { %v3839_v55 = vpop.f32.mrf.mxu0  ;;  %v6269_v7 = vpop.f32.mrf.mxu1 }
 0x9a0   : > { %3912 = vst.msk [vmem:[#allocation2 + $0x50] sm:$0xff] %vm364_vm0, %v3896_v54  ;;  %v3894_v46 = vadd.f32 %v3878_v19, %v3839_v55  ;;  %v4349_v42 = vsel %vm899_vm3, %v8143_v17, -inf }
 0x9a1   : > { %v6242_v36 = vpop.f32.mrf.mxu0  ;;  %4350 = vmax.xlane.f32.xlu1 %v4349_v42  ;;  %v4123_v56 = vpop.f32.mrf.mxu1 }
 0x9a2   : > { %3910 = vst.msk [vmem:[#allocation2 + $0x40] sm:$0xff] %vm364_vm0, %v3894_v46  ;;  %v3897_v8 = vadd.f32 %v6242_v36, %v3881_v20  ;;  %v8150_v22 = vadd.f32 %v8107_v4, %v4123_v56 }
 0x9a3   : > { %v3842_v37 = vpop.f32.mrf.mxu0  ;;  %v6270_v28 = vpop.f32.mrf.mxu1 }
 0x9a4   : > { %3913 = vst.msk [vmem:[#allocation2 + $0x58] sm:$0xff] %vm364_vm0, %v3897_v8  ;;  %v3895_v32 = vadd.f32 %v3879_v43, %v3842_v37  ;;  %v4352_v45 = vsel %vm899_vm3, %v8150_v22, -inf }
 0x9a5   : > { %4353 = vmax.xlane.f32.xlu0 %v4352_v45  ;;  %v4222_v39 = vpop.f32.mrf.mxu1 }
 0x9a6   : > { %3911 = vst.msk [vmem:[#allocation2 + $0x48] sm:$0xff] %vm364_vm0, %v3895_v32  ;;  %v8157_v35 = vadd.f32 %v8100_v40, %v4222_v39 }
 0x9a7   : > { %v6281_v50 = vpop.f32.mrf.mxu1 }
 0x9a8   : > { %v4361_v48 = vsel %vm899_vm3, %v8157_v35, -inf }
 0x9a9   : > { %4362 = vmax.xlane.f32.xlu1 %v4361_v48  ;;  %v4225_v33 = vpop.f32.mrf.mxu1 }
 0x9aa   : > { %v8162_v52 = vadd.f32 %v8107_v4, %v4225_v33 }
 0x9ab   : > { %v6282_v24 = vpop.f32.mrf.mxu1 }
 0x9ac   : > { %v4364_v38 = vsel %vm899_vm3, %v8162_v52, -inf }
 0x9ad   : > { %4365 = vmax.xlane.f32.xlu0 %v4364_v38  ;;  %v4324_v15 = vpop.f32.mrf.mxu1 }
 0x9ae   : > { %v8167_v53 = vadd.f32 %v8100_v40, %v4324_v15 }
 0x9af   : > { %v6293_v29 = vpop.f32.mrf.mxu1 }
 0x9b0   : > { %v4373_v62 = vsel %vm899_vm3, %v8167_v53, -inf }
 0x9b1   : > { %4374 = vmax.xlane.f32.xlu1 %v4373_v62  ;;  %v4327_v25 = vpop.f32.mrf.mxu1 }
 0x9b2   : > { %v8172_v9 = vadd.f32 %v8107_v4, %v4327_v25 }
 0x9b3   : > { %v6294_v1 = vpop.f32.mrf.mxu1 }
 0x9b4   : > { %v4376_v23 = vsel %vm899_vm3, %v8172_v9, -inf }
 0x9b5   : > { %4377 = vmax.xlane.f32.xlu0 %v4376_v23 }
 0x9c2   : > { %4483 = vrot.lane.b32.xlu1 %v7150_v41, %s6924_s14 }
 0x9c6   : > { %4577 = vrot.lane.b32.xlu1 %v7160_v59, %s6924_s14 }
 0x9ca   : > { %4624 = vrot.lane.b32.xlu1 %v7168_v63, %s6924_s14 }
 0x9cb   : > { %4530 = vrot.lane.b32.xlu0 %v7154_v47, %s6924_s14 }
 0x9d2   : > { %v6245_v21 = vpop.f32.mrf.mxu0 }
 0x9d3   : > { %v3900_v10 = vadd.f32 %v6245_v21, %v3884_v5 }
 0x9d4   : > { %v3855_v31 = vpop.f32.mrf.mxu0 }
 0x9d5   : > { %3916 = vst.msk [vmem:[#allocation2 + $0x70] sm:$0xff] %vm364_vm0, %v3900_v10  ;;  %v3898_v14 = vadd.f32 %v3882_v12, %v3855_v31 }
 0x9d6   : > { %v6246_v34 = vpop.f32.mrf.mxu0  ;;  %v4333_v8 = vpop.xlane.xlu0 %4332 }
 0x9d7   : > { %3914 = vst.msk [vmem:[#allocation2 + $0x60] sm:$0xff] %vm364_vm0, %v3898_v14  ;;  %v3901_v41 = vadd.f32 %v6246_v34, %v3885_v11 }
 0x9d8   : > { %v3858_v59 = vpop.f32.mrf.mxu0 }
 0x9d9   : > { %3917 = vst.msk [vmem:[#allocation2 + $0x78] sm:$0xff] %vm364_vm0, %v3901_v41  ;;  %v3899_v63 = vadd.f32 %v3883_v18, %v3858_v59 }
 0x9da   : > { %v4171_v6 = vpop.f32.mrf.mxu0 }
 0x9db   : > { %3915 = vst.msk [vmem:[#allocation2 + $0x68] sm:$0xff] %vm364_vm0, %v3899_v63  ;;  %v8192_v7 = vadd.f32 %v8100_v40, %v4171_v6 }
 0x9dc   : > { %v6275_v47 = vpop.f32.mrf.mxu0 }
 0x9dd   : > { %v4355_v42 = vsel %vm899_vm3, %v8192_v7, -inf }
 0x9de   : > { %v4174_v2 = vpop.f32.mrf.mxu0  ;;  %v4339_v43 = vpop.xlane.xlu0 %4338 }
 0x9df   : > { %v8189_v54 = vadd.f32 %v8107_v4, %v4174_v2  ;;  %v4381_v50 = vsub.f32 %v8119_v58, %v4339_v43 }
 0x9e0   : > { %v6276_v27 = vpop.f32.mrf.mxu0 }
 0x9e1   : > { %v4358_v46 = vsel %vm899_vm3, %v8189_v54, -inf  ;;  %v4399_v15 = vmul.f32 1.442695, %v4381_v50 }
 0x9e2   : > { %v4273_v13 = vpop.f32.mrf.mxu0 }
 0x9e3   : > { %v8206_v20 = vadd.f32 %v8100_v40, %v4273_v13 }
 0x9e4   : > { %v6287_v16 = vpop.f32.mrf.mxu0 }
 0x9e5   : > { %v4367_v37 = vsel %vm899_vm3, %v8206_v20, -inf }
 0x9e6   : > { %v4276_v55 = vpop.f32.mrf.mxu0 }
 0x9e7   : > { %v8203_v36 = vadd.f32 %v8107_v4, %v4276_v55  ;;  %v4379_v4 = vsub.f32 %v8105_v30, %v4333_v8 }
 0x9e8   : > { %v6288_v19 = vpop.f32.mrf.mxu0 }
 0x9e9   : > { %v4370_v56 = vsel %vm899_vm3, %v8203_v36, -inf  ;;  %v4395_v39 = vmul.f32 1.442695, %v4379_v4 }
 0x9ea   : > { %4359 = vmax.xlane.f32.xlu0 %v4358_v46 }
 0x9ee   : > { %4356 = vmax.xlane.f32.xlu1 %v4355_v42 }
 0x9ff   : > { %4718 = vrot.lane.b32.xlu1 %v7174_v0, %s6924_s14  ;;  %v4336_v0 = vpop.xlane.xlu1 %4335 }
 0xa00   : > { %4671 = vrot.lane.b32.xlu0 %v7158_v57, %s6924_s14  ;;  %v4380_v28 = vsub.f32 %v8114_v44, %v4336_v0  ;;  %v4342_v57 = vpop.xlane.xlu0 %4341 }
 0xa01   : > { %v4382_v40 = vsub.f32 %v8124_v49, %v4342_v57 }
 0xa02   : > { %v4397_v32 = vmul.f32 1.442695, %v4380_v28 }
 0xa03   : > { %v4345_v48 = vpop.xlane.xlu1 %4344  ;;  %v4401_v33 = vmul.f32 1.442695, %v4382_v40 }
 0xa04   : > { %v4348_v45 = vpop.xlane.xlu0 %4347  ;;  %6660 = vpow2.f32 %v4397_v32  ;;  %v4383_v44 = vsub.f32 %v8129_v61, %v4345_v48 }
 0xa05   : > { %v4384_v24 = vsub.f32 %v8134_v51, %v4348_v45  ;;  %6662 = vpow2.f32 %v4395_v39 }
 0xa06   : > { %6664 = vpow2.f32 %v4401_v33  ;;  %v4403_v58 = vmul.f32 1.442695, %v4383_v44 }
 0xa07   : > { %v4405_v30 = vmul.f32 1.442695, %v4384_v24  ;;  %6666 = vpow2.f32 %v4399_v15 }
 0xa09   : > { %6668 = vpow2.f32 %v4405_v30 }
 0xa0a   : > { %6670 = vpow2.f32 %v4403_v58 }
 0xa1f   : > { %4371 = vmax.xlane.f32.xlu0 %v4370_v56 }
 0xa23   : > { %4368 = vmax.xlane.f32.xlu1 %v4367_v37 }
 0xa2a   : > { %v4351_v29 = vpop.xlane.xlu1 %4350 }
 0xa2b   : > { %v4385_v49 = vsub.f32 %v8143_v17, %v4351_v29 }
 0xa2d   : > { %v4407_v61 = vmul.f32 1.442695, %v4385_v49 }
 0xa2e   : > { %v4354_v38 = vpop.xlane.xlu0 %4353 }
 0xa2f   : > { %v4386_v62 = vsub.f32 %v8150_v22, %v4354_v38 }
 0xa31   : > { %v4409_v25 = vmul.f32 1.442695, %v4386_v62 }
 0xa32   : > { %v8224_v51 = vpop.xlane.xlu1 %4362 }
 0xa33   : > { %6672 = vpow2.f32 %v4409_v25  ;;  %v4389_v28 = vsub.f32 %v8157_v35, %v8224_v51  ;;  %v4899_v25 = vld [vmem:[#allocation8 + $0xc] sm:$0xf] }
 0xa34   : > { %4812 = vrot.lane.b32.xlu1 %v7180_v3, %s6924_s14  ;;  %v6661_v3 = vpop.eup %6660  ;;  %6674 = vpow2.f32 %v4407_v61 }
 0xa35   : > { %4765 = vrot.lane.b32.xlu0 %v7162_v60, %s6924_s14  ;;  %v6663_v10 = vpop.eup %6662  ;;  %v4430_v19 = vsel %vm899_vm3, %v6661_v3, 0.0  ;;  %v4415_v4 = vmul.f32 1.442695, %v4389_v28 }
 0xa36   : > { %v8226_v1 = vpop.xlane.xlu0 %4365  ;;  %v4475_v31 = vpack.c.bf16 %v6661_v3, %v6663_v10  ;;  %v6665_v12 = vpop.eup %6664  ;;  %v4427_v55 = vsel %vm899_vm3, %v6663_v10, 0.0  ;;  %v4925_v10 = vsel %vm1493_vm4, %v4899_v25, 0 }
 0xa37   : > { %v6667_v11 = vpop.eup %6666  ;;  %v4436_v56 = vsel %vm899_vm3, %v6665_v12, 0.0  ;;  %v4390_v0 = vsub.f32 %v8162_v52, %v8226_v1 }
 0xa38   : > { %v4476_v41 = vpack.c.bf16 %v6665_v12, %v6667_v11  ;;  %v4433_v46 = vsel %vm899_vm3, %v6667_v11, 0.0 }
 0xa39   : > { %v4417_v57 = vmul.f32 1.442695, %v4390_v0 }
 0xa3a   : > { %v4375_v23 = vpop.xlane.xlu1 %4374 }
 0xa3b   : > { %v4393_v22 = vsub.f32 %v8167_v53, %v4375_v23 }
 0xa3d   : > { %v4423_v21 = vmul.f32 1.442695, %v4393_v22 }
 0xa3e   : > { %v4484_v60 = vpop.permute.xlu1 %4483  ;;  %v4378_v5 = vpop.xlane.xlu0 %4377 }
 0xa3f   : > { %v4394_v17 = vsub.f32 %v8172_v9, %v4378_v5  ;;  %6296 = vmatpush3.bf16.msra.mxu0 %v4484_v60  ;;  %6676 = vpow2.f32 %v4423_v21  ;;  %v6669_v9 = vpop.eup %6668 }
 0xa40   : > { %6307 = vmatprep.subr.bf16.mxu0 %v6912_v26  ;;  %v6671_v18 = vpop.eup %6670  ;;  %v4442_v37 = vsel %vm899_vm3, %v6669_v9, 0.0 }
 0xa41   : > { %v4425_v14 = vmul.f32 1.442695, %v4394_v17  ;;  %v4477_v63 = vpack.c.bf16 %v6669_v9, %v6671_v18  ;;  %v6673_v6 = vpop.eup %6672  ;;  %v4439_v42 = vsel %vm899_vm3, %v6671_v18, 0.0 }
 0xa42   : > { %v4578_v34 = vpop.permute.xlu1 %4577  ;;  %6298 = vmatmul.mubr.msk.bf16.vlgmr.msra.gmra.mxu0 %vm899_vm3, %v4475_v31  ;;  %v4531_v53 = vpop.permute.xlu0 %4530  ;;  %v4448_v43 = vsel %vm899_vm3, %v6673_v6, 0.0 }
 0xa43   : > { %6678 = vpow2.f32 %v4425_v14  ;;  %6302 = vmatpush3.bf16.msra.mxu1 %v4531_v53  ;;  %6308 = vmatpush3.bf16.msra.mxu0 %v4578_v34  ;;  %v6675_v47 = vpop.eup %6674 }
 0xa44   : > { %6313 = vmatprep.subr.bf16.mxu1 %v6912_v26  ;;  %6309 = vmatprep.mubr.msk.bf16.mxu0 %vm6913_vm1, %v6912_v26  ;;  %v4478_v2 = vpack.c.bf16 %v6673_v6, %v6675_v47  ;;  %v4445_v8 = vsel %vm899_vm3, %v6675_v47, 0.0  ;;  %6680 = vpow2.f32 %v4417_v57 }
 0xa45   : > { %6319 = vmatprep.subr.bf16.mxu0 %v6912_v26  ;;  %6682 = vpow2.f32 %v4415_v4 }
 0xa46   : > { %v4625_v59 = vpop.permute.xlu1 %4624  ;;  %6304 = vmatmul.mubr.msk.bf16.vlgmr.msra.gmra.mxu1 %vm899_vm3, %v4476_v41 }
 0xa47   : > { %6314 = vmatpush3.bf16.msra.mxu1 %v4625_v59  ;;  %6315 = vmatprep.mubr.msk.bf16.mxu1 %vm6913_vm1, %v6912_v26 }
 0xa48   : > { %6325 = vmatprep.subr.bf16.mxu1 %v6912_v26 }
 0xa4a   : > { %6310 = vmatmul.mubr.msk.bf16.vlgmr.msra.gmra.mxu0 %vm899_vm3, %v4477_v63 }
 0xa4b   : > { %6321 = vmatprep.mubr.msk.bf16.mxu0 %vm6913_vm1, %v6912_v26 }
 0xa4c   : > { %v8244_v27 = vpop.eup %6676 }
 0xa4d   : > { %v4469_v17 = vsel %vm899_vm3, %v8244_v27, 0.0 }
 0xa4e   : > { %6316 = vmatmul.mubr.msk.bf16.vlgmr.msra.gmra.mxu1 %vm899_vm3, %v4478_v2 }
 0xa4f   : > { %6327 = vmatprep.mubr.msk.bf16.mxu1 %vm6913_vm1, %v6912_v26 }
 0xa50   : > { %v8248_v13 = vpop.eup %6678 }
 0xa51   : > { %v4482_v16 = vpack.c.bf16 %v8248_v13, %v8244_v27  ;;  %v6681_v52 = vpop.eup %6680  ;;  %v4472_v5 = vsel %vm899_vm3, %v8248_v13, 0.0 }
 0xa52   : > { %v6683_v35 = vpop.eup %6682  ;;  %v4460_v30 = vsel %vm899_vm3, %v6681_v52, 0.0 }
 0xa53   : > { %v4480_v38 = vpack.c.bf16 %v6681_v52, %v6683_v35  ;;  %v4457_v62 = vsel %vm899_vm3, %v6683_v35, 0.0 }
 0xa54   : > { %4428 = vadd.xlane.f32.xlu0 %v4427_v55 }
 0xa58   : > { %4431 = vadd.xlane.f32.xlu1 %v4430_v19  ;;  %4434 = vadd.xlane.f32.xlu0 %v4433_v46 }
 0xa5c   : > { %4440 = vadd.xlane.f32.xlu1 %v4439_v42  ;;  %4437 = vadd.xlane.f32.xlu0 %v4436_v56 }
 0xa60   : > { %4446 = vadd.xlane.f32.xlu1 %v4445_v8  ;;  %4443 = vadd.xlane.f32.xlu0 %v4442_v37 }
 0xa64   : > { %4449 = vadd.xlane.f32.xlu0 %v4448_v43 }
 0xa73   : > { %v4360_v32 = vpop.xlane.xlu0 %4359 }
 0xa74   : > { %v4388_v40 = vsub.f32 %v8189_v54, %v4360_v32 }
 0xa76   : > { %v4413_v45 = vmul.f32 1.442695, %v4388_v40 }
 0xa77   : > { %v4357_v39 = vpop.xlane.xlu1 %4356  ;;  %v4672_v50 = vpop.permute.xlu0 %4671 }
 0xa78   : > { %6684 = vpow2.f32 %v4413_v45  ;;  %v4387_v48 = vsub.f32 %v8192_v7, %v4357_v39  ;;  %6320 = vmatpush3.bf16.msra.mxu0 %v4672_v50 }
 0xa79   : > { %6331 = vmatprep.subr.bf16.mxu0 %v6912_v26 }
 0xa7a   : > { %v4411_v33 = vmul.f32 1.442695, %v4387_v48 }
 0xa7b   : > { %v4719_v24 = vpop.permute.xlu1 %4718 }
 0xa7c   : > { %6686 = vpow2.f32 %v4411_v33  ;;  %6326 = vmatpush3.bf16.msra.mxu1 %v4719_v24 }
 0xa7d   : > { %6337 = vmatprep.subr.bf16.mxu1 %v6912_v26 }
 0xa7f   : > { %6328 = vmatmul.mubr.msk.bf16.vlgmr.msra.gmra.mxu1 %vm899_vm3, %v4480_v38 }
 0xa80   : > { %6339 = vmatprep.mubr.msk.bf16.mxu1 %vm6913_vm1, %v6912_v26 }
 0xa85   : > { %v6685_v54 = vpop.eup %6684 }
 0xa86   : > { %v4454_v7 = vsel %vm899_vm3, %v6685_v54, 0.0 }
 0xa87   : > { %4455 = vadd.xlane.f32.xlu0 %v4454_v7 }
 0xa89   : > { %v6687_v15 = vpop.eup %6686 }
 0xa8a   : > { %v4479_v44 = vpack.c.bf16 %v6685_v54, %v6687_v15  ;;  %v4451_v29 = vsel %vm899_vm3, %v6687_v15, 0.0 }
 0xa8b   : > { %4452 = vadd.xlane.f32.xlu1 %v4451_v29  ;;  %4461 = vadd.xlane.f32.xlu0 %v4460_v30 }
 0xa8c   : > { %6322 = vmatmul.mubr.msk.bf16.vlgmr.msra.gmra.mxu0 %vm899_vm3, %v4479_v44 }
 0xa8d   : > { %6333 = vmatprep.mubr.msk.bf16.mxu0 %vm6913_vm1, %v6912_v26 }
 0xa8f   : > { %4458 = vadd.xlane.f32.xlu1 %v4457_v62 }
 0xaa8   : > { %v4372_v58 = vpop.xlane.xlu0 %4371 }
 0xaa9   : > { %v4392_v49 = vsub.f32 %v8203_v36, %v4372_v58 }
 0xaab   : > { %v4421_v51 = vmul.f32 1.442695, %v4392_v49 }
 0xaac   : > { %v4369_v61 = vpop.xlane.xlu1 %4368  ;;  %v4766_v1 = vpop.permute.xlu0 %4765 }
 0xaad   : > { %6688 = vpow2.f32 %v4421_v51  ;;  %v4391_v23 = vsub.f32 %v8206_v20, %v4369_v61  ;;  %6332 = vmatpush3.bf16.msra.mxu0 %v4766_v1 }
 0xaae   : > { %6368 = vmatprep.subr.msk.bf16.mxu0 %vm1493_vm4, %v4899_v25 }
 0xaaf   : > { %v4419_v22 = vmul.f32 1.442695, %v4391_v23 }
 0xab0   : > { %v4813_v3 = vpop.permute.xlu1 %4812 }
 0xab1   : > { %6690 = vpow2.f32 %v4419_v22  ;;  %6338 = vmatpush3.bf16.msra.mxu1 %v4813_v3 }
 0xab4   : > { %6340 = vmatmul.mubr.msk.bf16.vlgmr.msra.gmra.mxu1 %vm899_vm3, %v4482_v16 }
 0xaba   : > { %v6689_v26 = vpop.eup %6688 }
 0xabb   : > { %v4466_v36 = vsel %vm899_vm3, %v6689_v26, 0.0 }
 0xabc   : > { %4467 = vadd.xlane.f32.xlu0 %v4466_v36 }
 0xabe   : > { %v6691_v21 = vpop.eup %6690 }
 0xabf   : > { %v4481_v60 = vpack.c.bf16 %v6689_v26, %v6691_v21  ;;  %v4463_v20 = vsel %vm899_vm3, %v6691_v21, 0.0 }
 0xac0   : > { %4464 = vadd.xlane.f32.xlu1 %v4463_v20  ;;  %4473 = vadd.xlane.f32.xlu0 %v4472_v5 }
 0xac1   : > { %6334 = vmatmul.mubr.msk.bf16.vlgmr.msra.gmra.mxu0 %vm899_vm3, %v4481_v60 }
 0xac2   : > { %6344 = vmatpush3.bf16.msra.mxu0 %v4925_v10 }
 0xac4   : > { %4470 = vadd.xlane.f32.xlu1 %v4469_v17 }
 0xadd   : > { %v4429_v31 = vpop.xlane.xlu0 %4428 }
 0xade   : > { %6692 = vrcp.f32 %v4429_v31 }
 0xae1   : > { %v4435_v12 = vpop.xlane.xlu0 %4434  ;;  %v4432_v14 = vpop.xlane.xlu1 %4431 }
 0xae2   : > { %6694 = vrcp.f32 %v4432_v14 }
 0xae3   : > { %6696 = vrcp.f32 %v4435_v12 }
 0xae5   : > { %v4438_v34 = vpop.xlane.xlu0 %4437  ;;  %v4441_v53 = vpop.xlane.xlu1 %4440 }
 0xae6   : > { %6698 = vrcp.f32 %v4438_v34 }
 0xae7   : > { %6700 = vrcp.f32 %v4441_v53 }
 0xae9   : > { %v4444_v11 = vpop.xlane.xlu0 %4443  ;;  %v4447_v41 = vpop.xlane.xlu1 %4446 }
 0xaea   : > { %6702 = vrcp.f32 %v4444_v11 }
 0xaeb   : > { %6704 = vrcp.f32 %v4447_v41  ;;  %v6693_v63 = vpop.eup %6692 }
 0xaed   : > { %v4450_v9 = vpop.xlane.xlu0 %4449 }
 0xaee   : > { %6706 = vrcp.f32 %v4450_v9 }
 0xaef   : > { %v6695_v6 = vpop.eup %6694 }
 0xaf0   : > { %v6697_v19 = vpop.eup %6696 }
 0xaf3   : > { %v6699_v42 = vpop.eup %6698 }
 0xaf4   : > { %v6701_v57 = vpop.eup %6700 }
 0xaf7   : > { %v6703_v32 = vpop.eup %6702 }
 0xaf8   : > { %v6705_v33 = vpop.eup %6704 }
 0xafb   : > { %v6707_v35 = vpop.eup %6706 }
 0xb02   : > { %v4523_v59 = vpop.f32.mrf.mxu0 }
 0xb03   : > { %v4875_v27 = vmul.f32 %v6693_v63, %v4523_v59 }
 0xb04   : > { %v6299_v18 = vpop.f32.mrf.mxu0 }
 0xb06   : > { %v4526_v47 = vpop.f32.mrf.mxu0  ;;  %v4570_v2 = vpop.f32.mrf.mxu1 }
 0xb07   : > { %v4876_v13 = vmul.f32 %v6695_v6, %v4526_v47  ;;  %v4877_v37 = vmul.f32 %v6697_v19, %v4570_v2 }
 0xb08   : > { %v6300_v16 = vpop.f32.mrf.mxu0  ;;  %v6305_v55 = vpop.f32.mrf.mxu1 }
 0xb09   : > { %v4891_v46 = vpack.c.bf16 %v4876_v13, %v4875_v27 }
 0xb0a   : > { %v4573_v56 = vpop.f32.mrf.mxu1  ;;  %v4617_v8 = vpop.f32.mrf.mxu0 }
 0xb0b   : > { %v4878_v43 = vmul.f32 %v6699_v42, %v4573_v56  ;;  %6345 = vmatprep.mubr.msk.bf16.mxu0 %vm501_vm2, %v4891_v46  ;;  %v4879_v39 = vmul.f32 %v6701_v57, %v4617_v8 }
 0xb0c   : > { %v6306_v0 = vpop.f32.mrf.mxu1  ;;  %v6311_v28 = vpop.f32.mrf.mxu0 }
 0xb0d   : > { %v4892_v4 = vpack.c.bf16 %v4878_v43, %v4877_v37  ;;  %v5026_v0 = vld [vmem:[#allocation2 + $0x10] sm:$0xff] }
 0xb0e   : > { %v4620_v40 = vpop.f32.mrf.mxu0  ;;  %v4664_v45 = vpop.f32.mrf.mxu1 }
 0xb0f   : > { %v4880_v50 = vmul.f32 %v6703_v32, %v4620_v40  ;;  %6346 = vmatmul.mubr.msk.bf16.vlgmr.msra.gmra.mxu0 %vm501_vm2, %v4892_v4  ;;  %v4881_v54 = vmul.f32 %v6705_v33, %v4664_v45  ;;  %v5024_v4 = vld [vmem:[#allocation2] sm:$0xff]  ;;  %v5027_v45 = vld [vmem:[#allocation2 + $0x18] sm:$0xff] }
 0xb10   : > { %v6312_v48 = vpop.f32.mrf.mxu0  ;;  %v6317_v52 = vpop.f32.mrf.mxu1 }
 0xb11   : > { %v4893_v24 = vpack.c.bf16 %v4880_v50, %v4879_v39  ;;  %v4456_v29 = vpop.xlane.xlu0 %4455  ;;  %v5025_v48 = vld [vmem:[#allocation2 + $0x8] sm:$0xff] }
 0xb12   : > { %v4667_v38 = vpop.f32.mrf.mxu1  ;;  %6708 = vrcp.f32 %v4456_v29 }
 0xb13   : > { %v4882_v7 = vmul.f32 %v6707_v35, %v4667_v38  ;;  %6349 = vmatprep.mubr.msk.bf16.mxu0 %vm501_vm2, %v4893_v24  ;;  %v5030_v24 = vld [vmem:[#allocation2 + $0x30] sm:$0xff] }
 0xb14   : > { %v6318_v15 = vpop.f32.mrf.mxu1  ;;  %v4453_v30 = vpop.xlane.xlu1 %4452 }
 0xb15   : > { %v4894_v44 = vpack.c.bf16 %v4882_v7, %v4881_v54  ;;  %v4462_v62 = vpop.xlane.xlu0 %4461  ;;  %v5028_v54 = vld [vmem:[#allocation2 + $0x20] sm:$0xff] }
 0xb16   : > { %6710 = vrcp.f32 %v4462_v62  ;;  %v5029_v62 = vld [vmem:[#allocation2 + $0x28] sm:$0xff] }
 0xb17   : > { %6350 = vmatmul.mubr.msk.bf16.gmra.mxu0 %vm501_vm2, %v4894_v44  ;;  %6712 = vrcp.f32 %v4453_v30  ;;  %v5031_v44 = vld [vmem:[#allocation2 + $0x38] sm:$0xff] }
 0xb18   : > { %v4459_v49 = vpop.xlane.xlu1 %4458 }
 0xb19   : > { %6714 = vrcp.f32 %v4459_v49 }
 0xb1f   : > { %v6709_v23 = vpop.eup %6708 }
 0xb23   : > { %v6711_v3 = vpop.eup %6710 }
 0xb24   : > { %v6713_v26 = vpop.eup %6712 }
 0xb26   : > { %v6715_v60 = vpop.eup %6714 }
 0xb3f   : > { %v4758_v58 = vpop.f32.mrf.mxu1 }
 0xb40   : > { %v4885_v10 = vmul.f32 %v6715_v60, %v4758_v58 }
 0xb41   : > { %v6329_v51 = vpop.f32.mrf.mxu1 }
 0xb42   : > { %v5034_v51 = vld [vmem:[#allocation2 + $0x50] sm:$0xff] }
 0xb43   : > { %v4761_v25 = vpop.f32.mrf.mxu1 }
 0xb44   : > { %v4886_v36 = vmul.f32 %v6711_v3, %v4761_v25  ;;  %v5035_v3 = vld [vmem:[#allocation2 + $0x58] sm:$0xff] }
 0xb45   : > { %v6330_v61 = vpop.f32.mrf.mxu1  ;;  %v4468_v14 = vpop.xlane.xlu0 %4467 }
 0xb46   : > { %v4896_v12 = vpack.c.bf16 %v4886_v36, %v4885_v10  ;;  %6716 = vrcp.f32 %v4468_v14  ;;  %v5038_v10 = vld [vmem:[#allocation2 + $0x70] sm:$0xff] }
 0xb49   : > { %v4465_v34 = vpop.xlane.xlu1 %4464  ;;  %v4474_v53 = vpop.xlane.xlu0 %4473 }
 0xb4a   : > { %6718 = vrcp.f32 %v4474_v53 }
 0xb4b   : > { %6720 = vrcp.f32 %v4465_v34 }
 0xb4c   : > { %v4711_v1 = vpop.f32.mrf.mxu0 }
 0xb4d   : > { %v4883_v20 = vmul.f32 %v6713_v26, %v4711_v1  ;;  %v4471_v41 = vpop.xlane.xlu1 %4470  ;;  %v5032_v1 = vld [vmem:[#allocation2 + $0x40] sm:$0xff] }
 0xb4e   : > { %v6323_v22 = vpop.f32.mrf.mxu0  ;;  %6722 = vrcp.f32 %v4471_v41 }
 0xb50   : > { %v4714_v21 = vpop.f32.mrf.mxu0 }
 0xb51   : > { %v4884_v5 = vmul.f32 %v6709_v23, %v4714_v21  ;;  %v5033_v21 = vld [vmem:[#allocation2 + $0x48] sm:$0xff] }
 0xb52   : > { %v6324_v17 = vpop.f32.mrf.mxu0 }
 0xb53   : > { %v4895_v31 = vpack.c.bf16 %v4884_v5, %v4883_v20  ;;  %v6717_v6 = vpop.eup %6716  ;;  %v6925_v17 = vmov 1983009808  }
 0xb55   : > { %6353 = vmatprep.mubr.msk.bf16.mxu0 %vm501_vm2, %v4895_v31  ;;  %v5114_v31 = vunpack.c.l.s4 %v6925_v17 }
 0xb56   : > { %6354 = vmatmul.mubr.msk.bf16.gmra.mxu0 %vm501_vm2, %v4896_v12  ;;  %v5116_v12 = vlaneseq }
 0xb57   : > { %v6719_v2 = vpop.eup %6718 }
 0xb58   : > { %v6721_v27 = vpop.eup %6720 }
 0xb5b   : > { %v6723_v55 = vpop.eup %6722 }
 0xb74   : > { %v4852_v11 = vpop.f32.mrf.mxu1 }
 0xb75   : > { %v4889_v42 = vmul.f32 %v6723_v55, %v4852_v11  ;;  %v8316_v11 = vld [vmem:[%s8468_s4] ss:$0 sm:$0xff]  ;;  %v5115_v55 = vunpack.c.0.s8 %v5114_v31 }
 0xb76   : > { %v6341_v9 = vpop.f32.mrf.mxu1 }
 0xb77   : > { %v5036_v9 = vld [vmem:[#allocation2 + $0x60] sm:$0xff] }
 0xb78   : > { %v4855_v59 = vpop.f32.mrf.mxu1 }
 0xb79   : > { %v4890_v13 = vmul.f32 %v6719_v2, %v4855_v59 }
 0xb7a   : > { %v6342_v18 = vpop.f32.mrf.mxu1 }
 0xb7b   : > { %v4898_v37 = vpack.c.bf16 %v4890_v13, %v4889_v42 }
 0xb81   : > { %v4805_v63 = vpop.f32.mrf.mxu0 }
 0xb82   : > { %v4887_v19 = vmul.f32 %v6721_v27, %v4805_v63  ;;  %v5039_v27 = vld [vmem:[#allocation2 + $0x78] sm:$0xff] }
 0xb83   : > { %v6335_v47 = vpop.f32.mrf.mxu0 }
 0xb85   : > { %v4808_v16 = vpop.f32.mrf.mxu0 }
 0xb86   : > { %v4888_v46 = vmul.f32 %v6717_v6, %v4808_v16  ;;  %v6926_v6 = vmov 1934713408  }
 0xb87   : > { %v6336_v56 = vpop.f32.mrf.mxu0  ;;  %v5178_v47 = vunpack.c.l.s4 %v6926_v6 }
 0xb88   : > { %v4897_v8 = vpack.c.bf16 %v4888_v46, %v4887_v19  ;;  %v5117_v19 = vshrl.u32 %v5116_v12, 7 }
 0xb8a   : > { %6357 = vmatprep.mubr.msk.bf16.mxu0 %vm501_vm2, %v4897_v8 }
 0xb8b   : > { %6358 = vmatmul.mubr.msk.bf16.gmra.mxu0 %vm501_vm2, %v4898_v37  ;;  %v5037_v37 = vld [vmem:[#allocation2 + $0x68] sm:$0xff] }
 0xbcf   : > { %v6347_v43 = vpop.f32.mrf.mxu0 }
 0xbd0   : > { %v5042_v28 = vadd.f32 %v6347_v43, %v5026_v0 }
 0xbd1   : > { %v4961_v57 = vpop.f32.mrf.mxu0 }
 0xbd2   : > { %5058 = vst.msk [vmem:[#allocation2 + $0x10] sm:$0xff] %vm364_vm0, %v5042_v28  ;;  %v5040_v32 = vadd.f32 %v5024_v4, %v4961_v57 }
 0xbd3   : > { %v6348_v40 = vpop.f32.mrf.mxu0 }
 0xbd4   : > { %5056 = vst.msk [vmem:[#allocation2] sm:$0xff] %vm364_vm0, %v5040_v32  ;;  %v5043_v39 = vadd.f32 %v6348_v40, %v5027_v45  ;;  %v5179_v32 = vunpack.c.0.s8 %v5178_v47 }
 0xbd5   : > { %v4964_v50 = vpop.f32.mrf.mxu0 }
 0xbd6   : > { %5059 = vst.msk [vmem:[#allocation2 + $0x18] sm:$0xff] %vm364_vm0, %v5043_v39  ;;  %v5041_v52 = vadd.f32 %v5025_v48, %v4964_v50  ;;  %v8326_v50 = vsub.s32 %v5115_v55, %v5117_v19 }
 0xbd7   : > { %v6351_v33 = vpop.f32.mrf.mxu0 }
 0xbd8   : > { %5057 = vst.msk [vmem:[#allocation2 + $0x8] sm:$0xff] %vm364_vm0, %v5041_v52  ;;  %v5046_v35 = vadd.f32 %v6351_v33, %v5030_v24 }
 0xbd9   : > { %v4977_v38 = vpop.f32.mrf.mxu0  ;;  %v5074_v63 = vld [vmem:[#allocation2 + $0x10] sm:$0xff] }
 0xbda   : > { %5062 = vst.msk [vmem:[#allocation2 + $0x30] sm:$0xff] %vm364_vm0, %v5046_v35  ;;  %v5044_v7 = vadd.f32 %v5028_v54, %v4977_v38  ;;  %v5097_v43 = vadd.f32 %v8316_v11, %v5074_v63 }
 0xbdb   : > { %v6352_v15 = vpop.f32.mrf.mxu0  ;;  %v5072_v34 = vld [vmem:[#allocation2] sm:$0xff] }
 0xbdc   : > { %5060 = vst.msk [vmem:[#allocation2 + $0x20] sm:$0xff] %vm364_vm0, %v5044_v7  ;;  %v5047_v29 = vadd.f32 %v6352_v15, %v5031_v44  ;;  %v5095_v13 = vadd.f32 %v8316_v11, %v5072_v34 }
 0xbdd   : > { %v4980_v30 = vpop.f32.mrf.mxu0  ;;  %v5075_v57 = vld [vmem:[#allocation2 + $0x18] sm:$0xff] }
 0xbde   : > { %5063 = vst.msk [vmem:[#allocation2 + $0x38] sm:$0xff] %vm364_vm0, %v5047_v29  ;;  %v5045_v58 = vadd.f32 %v5029_v62, %v4980_v30  ;;  %v5098_v24 = vadd.f32 %v8316_v11, %v5075_v57  ;;  %v8338_v30 = vsub.s32 %v5179_v32, %v5117_v19 }
 0xbdf   : > { %v5073_v40 = vld [vmem:[#allocation2 + $0x8] sm:$0xff] }
 0xbe0   : > { %5061 = vst.msk [vmem:[#allocation2 + $0x28] sm:$0xff] %vm364_vm0, %v5045_v58  ;;  %v5096_v15 = vadd.f32 %v8316_v11, %v5073_v40 }
 0xbe1   : > { %v5078_v53 = vld [vmem:[#allocation2 + $0x30] sm:$0xff] }
 0xbe2   : > { %v5101_v16 = vadd.f32 %v8316_v11, %v5078_v53 }
 0xbe3   : > { %v5076_v20 = vld [vmem:[#allocation2 + $0x20] sm:$0xff] }
 0xbe4   : > { %v5099_v59 = vadd.f32 %v8316_v11, %v5076_v20  ;;  %v5128_v48 = vcombine.high %v5097_v43, %v5101_v16  ;;  %v5127_v52 = vcombine.low %v5097_v43, %v5101_v16 }
 0xbe5   : > { %v5079_v46 = vld [vmem:[#allocation2 + $0x38] sm:$0xff] }
 0xbe6   : > { %v5112_v0 = vcombine.high %v5095_v13, %v5099_v59  ;;  %v5111_v28 = vcombine.low %v5095_v13, %v5099_v59  ;;  %v5102_v45 = vadd.f32 %v8316_v11, %v5079_v46 }
 0xbe7   : > { %v5077_v56 = vld [vmem:[#allocation2 + $0x28] sm:$0xff] }
 0xbe8   : > { %v5100_v33 = vadd.f32 %v8316_v11, %v5077_v56  ;;  %v8332_v54 = vrot.slane %v5112_v0, %v8326_v50  ;;  %v5119_v7 = vrot.slane %v5111_v28, %v8326_v50  ;;  %v5263_v62 = vcombine.low %v5098_v24, %v5102_v45 }
 0xbea   : > { %v8347_v12 = vrot.slane %v5263_v62, %v8326_v50 }
 0xc16   : > { %v6355_v49 = vpop.f32.mrf.mxu0 }
 0xc17   : > { %v5050_v25 = vadd.f32 %v6355_v49, %v5034_v51  ;;  %v5142_v49 = vrot.slane %v5128_v48, %v8326_v50  ;;  %v5135_v51 = vrot.slane %v5127_v52, %v8326_v50 }
 0xc18   : > { %v4993_v61 = vpop.f32.mrf.mxu0 }
 0xc19   : > { %5066 = vst.msk [vmem:[#allocation2 + $0x50] sm:$0xff] %vm364_vm0, %v5050_v25  ;;  %v5048_v23 = vadd.f32 %v5032_v1, %v4993_v61  ;;  %v5247_v25 = vcombine.low %v5096_v15, %v5100_v33  ;;  %v5264_v61 = vcombine.high %v5098_v24, %v5102_v45  ;;  %v5192_v20 = vcombine.high %v8332_v54, %v5142_v49 }
 0xc1a   : > { %v6356_v22 = vpop.f32.mrf.mxu0 }
 0xc1b   : > { %5064 = vst.msk [vmem:[#allocation2 + $0x40] sm:$0xff] %vm364_vm0, %v5048_v23  ;;  %v5051_v26 = vadd.f32 %v6356_v22, %v5035_v3  ;;  %v5255_v59 = vrot.slane %v5247_v25, %v8326_v50  ;;  %v5278_v13 = vrot.slane %v5264_v61, %v8326_v50 }
 0xc1c   : > { %v4996_v36 = vpop.f32.mrf.mxu0 }
 0xc1d   : > { %5067 = vst.msk [vmem:[#allocation2 + $0x58] sm:$0xff] %vm364_vm0, %v5051_v26  ;;  %v5049_v60 = vadd.f32 %v5033_v21, %v4996_v36  ;;  %v5191_v36 = vcombine.low %v8332_v54, %v5142_v49  ;;  %v5175_v21 = vcombine.low %v5119_v7, %v5135_v51  ;;  %v5311_v57 = vcombine.low %v5255_v59, %v8347_v12 }
 0xc1f   : > { %5065 = vst.msk [vmem:[#allocation2 + $0x48] sm:$0xff] %vm364_vm0, %v5049_v60  ;;  %v5176_v60 = vcombine.high %v5119_v7, %v5135_v51  ;;  %v8360_v56 = vrot.slane %v5191_v36, %v8338_v30 }
 0xc20   : > { %v5082_v39 = vld [vmem:[#allocation2 + $0x50] sm:$0xff] }
 0xc21   : > { %v5105_v44 = vadd.f32 %v8316_v11, %v5082_v39  ;;  %v5190_v24 = vrot.slane %v5176_v60, %v8338_v30 }
 0xc22   : > { %v5080_v35 = vld [vmem:[#allocation2 + $0x40] sm:$0xff] }
 0xc23   : > { %v5103_v1 = vadd.f32 %v8316_v11, %v5080_v35 }
 0xc24   : > { %v5083_v26 = vld [vmem:[#allocation2 + $0x58] sm:$0xff] }
 0xc26   : > { %v5081_v31 = vld [vmem:[#allocation2 + $0x48] sm:$0xff] }
 0xc4b   : > { %v6359_v5 = vpop.f32.mrf.mxu0 }
 0xc4c   : > { %v5054_v14 = vadd.f32 %v6359_v5, %v5038_v10 }
 0xc4d   : > { %v5009_v41 = vpop.f32.mrf.mxu0 }
 0xc4e   : > { %5070 = vst.msk [vmem:[#allocation2 + $0x70] sm:$0xff] %vm364_vm0, %v5054_v14  ;;  %v5052_v18 = vadd.f32 %v5036_v9, %v5009_v41  ;;  %v5248_v14 = vcombine.high %v5096_v15, %v5100_v33  ;;  %v5106_v41 = vadd.f32 %v8316_v11, %v5083_v26  ;;  %v5319_v15 = vrot.slane %v5311_v57, %v8338_v30 }
 0xc4f   : > { %v6360_v2 = vpop.f32.mrf.mxu0 }
 0xc50   : > { %5068 = vst.msk [vmem:[#allocation2 + $0x60] sm:$0xff] %vm364_vm0, %v5052_v18  ;;  %v5055_v42 = vadd.f32 %v6360_v2, %v5039_v27  ;;  %v5104_v2 = vadd.f32 %v8316_v11, %v5081_v31 }
 0xc51   : > { %v5012_v8 = vpop.f32.mrf.mxu0 }
 0xc52   : > { %5071 = vst.msk [vmem:[#allocation2 + $0x78] sm:$0xff] %vm364_vm0, %v5055_v42  ;;  %v5053_v4 = vadd.f32 %v5037_v37, %v5012_v8  ;;  %v5262_v37 = vrot.slane %v5248_v14, %v8326_v50 }
 0xc54   : > { %5069 = vst.msk [vmem:[#allocation2 + $0x68] sm:$0xff] %vm364_vm0, %v5053_v4 }
 0xc55   : > { %v5086_v38 = vld [vmem:[#allocation2 + $0x70] sm:$0xff] }
 0xc56   : > { %v5109_v29 = vadd.f32 %v8316_v11, %v5086_v38  ;;  %v5327_v38 = vcombine.low %v5262_v37, %v5278_v13 }
 0xc57   : > { %v5084_v58 = vld [vmem:[#allocation2 + $0x60] sm:$0xff] }
 0xc58   : > { %v5107_v23 = vadd.f32 %v8316_v11, %v5084_v58  ;;  %v5160_v22 = vcombine.high %v5105_v44, %v5109_v29  ;;  %v5159_v3 = vcombine.low %v5105_v44, %v5109_v29  ;;  %v5335_v25 = vrot.slane %v5327_v38, %v8338_v30 }
 0xc59   : > { %v5087_v5 = vld [vmem:[#allocation2 + $0x78] sm:$0xff] }
 0xc5a   : > { %v5144_v10 = vcombine.high %v5103_v1, %v5107_v23  ;;  %v5143_v17 = vcombine.low %v5103_v1, %v5107_v23  ;;  %v5174_v34 = vrot.slane %v5160_v22, %v8326_v50  ;;  %v5110_v9 = vadd.f32 %v8316_v11, %v5087_v5 }
 0xc5b   : > { %v5085_v53 = vld [vmem:[#allocation2 + $0x68] sm:$0xff]  ;;  %v5167_v6 = vrot.slane %v5159_v3, %v8326_v50  ;;  %v5312_v1 = vcombine.high %v5255_v59, %v8347_v12  ;;  %v5328_v5 = vcombine.high %v5262_v37, %v5278_v13 }
 0xc5c   : > { %v5158_v18 = vrot.slane %v5144_v10, %v8326_v50  ;;  %v5151_v63 = vrot.slane %v5143_v17, %v8326_v50  ;;  %v5108_v47 = vadd.f32 %v8316_v11, %v5085_v53  ;;  %v5295_v27 = vcombine.low %v5106_v41, %v5110_v9 }
 0xc5d   : > { %v5296_v16 = vcombine.high %v5106_v41, %v5110_v9  ;;  %v8367_v11 = vrot.slane %v5175_v21, %v8338_v30  ;;  %v5326_v36 = vrot.slane %v5312_v1, %v8338_v30  ;;  %v5342_v12 = vrot.slane %v5328_v5, %v8338_v30 }
 0xc5e   : > { %v5223_v55 = vcombine.low %v5158_v18, %v5174_v34  ;;  %v5207_v19 = vcombine.low %v5151_v63, %v5167_v6  ;;  %v5208_v46 = vcombine.high %v5151_v63, %v5167_v6  ;;  %v5224_v42 = vcombine.high %v5158_v18, %v5174_v34 }
 0xc5f   : > { %v5279_v8 = vcombine.low %v5104_v2, %v5108_v47  ;;  %v5280_v43 = vcombine.high %v5104_v2, %v5108_v47  ;;  %v5303_v32 = vrot.slane %v5295_v27, %v8326_v50  ;;  %v5310_v45 = vrot.slane %v5296_v16, %v8326_v50 }
 0xc60   : > { %v8364_v0 = vrot.slane %v5223_v55, %v8338_v30  ;;  %v8370_v28 = vrot.slane %v5207_v19, %v8338_v30  ;;  %v5222_v52 = vrot.slane %v5208_v46, %v8338_v30  ;;  %v5238_v33 = vrot.slane %v5224_v42, %v8338_v30 }
 0xc61   : > { %v5287_v4 = vrot.slane %v5279_v8, %v8326_v50  ;;  %v5294_v40 = vrot.slane %v5280_v43, %v8326_v50  ;;  %v5206_v50 = vrot.slane %v5192_v20, %v8338_v30 }
 0xc62   : > { %v5244_v39 = vcombine.high %v8360_v56, %v8364_v0  ;;  %v5240_v48 = vcombine.high %v8367_v11, %v8370_v28  ;;  %v5243_v7 = vcombine.low %v8360_v56, %v8364_v0  ;;  %v5239_v29 = vcombine.low %v8367_v11, %v8370_v28 }
 0xc63   : > { %v5343_v35 = vcombine.low %v5287_v4, %v5303_v32  ;;  %v5359_v54 = vcombine.low %v5294_v40, %v5310_v45  ;;  %v5241_v62 = vcombine.low %v5190_v24, %v5222_v52  ;;  %v5245_v58 = vcombine.low %v5206_v50, %v5238_v33 }
 0xc64   : > { %5396 = vrot.lane.b32.xlu0 %v5244_v39, %s6927_s29  ;;  %5384 = vrot.lane.b32.xlu1 %v5240_v48, %s6927_s29  ;;  %v5344_v49 = vcombine.high %v5287_v4, %v5303_v32  ;;  %v5242_v22 = vcombine.high %v5190_v24, %v5222_v52  ;;  %v5246_v3 = vcombine.high %v5206_v50, %v5238_v33 }
 0xc65   : > { %v5351_v44 = vrot.slane %v5343_v35, %v8338_v30  ;;  %v5367_v51 = vrot.slane %v5359_v54, %v8338_v30  ;;  %v5360_v20 = vcombine.high %v5294_v40, %v5310_v45 }
 0xc66   : > { %v5358_v26 = vrot.slane %v5344_v49, %v8338_v30 }
 0xc67   : > { %v5375_v61 = vcombine.low %v5319_v15, %v5351_v44  ;;  %v5379_v23 = vcombine.low %v5335_v25, %v5367_v51  ;;  %v5376_v60 = vcombine.high %v5319_v15, %v5351_v44  ;;  %v5380_v17 = vcombine.high %v5335_v25, %v5367_v51 }
 0xc68   : > { %5388 = vrot.lane.b32.xlu0 %v5241_v62, %s6915_s20  ;;  %5400 = vrot.lane.b32.xlu1 %v5245_v58, %s6915_s20  ;;  %v5377_v21 = vcombine.low %v5326_v36, %v5358_v26  ;;  %v5378_v10 = vcombine.high %v5326_v36, %v5358_v26  ;;  %v5374_v31 = vrot.slane %v5360_v20, %v8338_v30 }
 0xc6a   : > { %v5381_v14 = vcombine.low %v5342_v12, %v5374_v31  ;;  %v5382_v34 = vcombine.high %v5342_v12, %v5374_v31 }
 0xc6c   : > { %5392 = vrot.lane.b32.xlu0 %v5242_v22, %s6914_s18  ;;  %5404 = vrot.lane.b32.xlu1 %v5246_v3, %s6914_s18 }
 0xc70   : > { %5412 = vrot.lane.b32.xlu0 %v5377_v21, %s6915_s20  ;;  %5408 = vrot.lane.b32.xlu1 %v5376_v60, %s6927_s29 }
 0xc74   : > { %5416 = vrot.lane.b32.xlu0 %v5378_v10, %s6914_s18  ;;  %5420 = vrot.lane.b32.xlu1 %v5380_v17, %s6927_s29 }
 0xc78   : > { %5424 = vrot.lane.b32.xlu1 %v5381_v14, %s6915_s20  ;;  %s5694_s20 = sshll.u32 %s6985_s25, 9  ;;  %s6928_s25 = smov [#allocation11]  }
 0xc79   : > { %s8426_s10 = scalar_lea.hbm %s8470_s6, %s5694_s20  ;;  %s6834_s12 = sshll.u32 %s6928_s25, 4  ;;  %s6835_s12 = int_to_ptr.vmem [resolvable:$false] %s6834_s12 }
 0xc7a   : > { %s6836_s14 = scalar_lea.vmem %s6835_s12, 1024 }
 0xc7c   : > { %5428 = vrot.lane.b32.xlu1 %v5382_v34, %s6914_s18  ;;  %s314_s18 = scalar_lea.vmem [#allocation11], %s5578_s26 }
 0xc7d   : > { %s5464_s30 = sshll.u32 %s314_s18, 4  ;;  %s5465_s30 = int_to_ptr.vmem [resolvable:$true] %s5464_s30 }
 0xc7e   : > { %s6830_s8 = scalar_lea.vmem %s5465_s30, 512  ;;  %p6837_p5 = scmp.lt.s32.totalorder %s5465_s30, %s6835_s12 }
 0xc7f   : > { %p6831_p4 = scmp.ne.s32.totalorder %s5465_s30, %s6830_s8  ;;  %p6838_p3 = scmp.lt.s32.totalorder %s6836_s14, %s6830_s8 }
 0xc81   : > { %p6832_p12 = pnand %p6831_p4, %p8488_p6  ;;  %p6839_p7 = por %p6838_p3, %p6837_p5 }
 0xc83   : > { %p6833_p0 = pneg %p6832_p12 }
 0xc85   : > { %p6840_p9 = pnand %p6839_p7, %p6833_p0 }
 0xcd6   : > { %v5397_v53 = vpop.permute.xlu0 %5396  ;;  %v5385_v41 = vpop.permute.xlu1 %5384 }
 0xcd7   : > { %v5436_v18 = vsel %vm364_vm0, %v5243_v7, %v5397_v53  ;;  %v5431_v63 = vsel %vm364_vm0, %v5239_v29, %v5385_v41 }
 0xcda   : > { %v5389_v9 = vpop.permute.xlu0 %5388  ;;  %v5401_v59 = vpop.permute.xlu1 %5400 }
 0xcdb   : > { %v5433_v6 = vsel %vm5432_vm5, %v5431_v63, %v5389_v9  ;;  %v5437_v30 = vsel %vm5432_vm5, %v5436_v18, %v5401_v59 }
 0xcde   : > { %v5393_v47 = vpop.permute.xlu0 %5392  ;;  %v5405_v2 = vpop.permute.xlu1 %5404 }
 0xcdf   : > { %v5435_v27 = vsel %vm5434_vm6, %v5433_v6, %v5393_v47  ;;  %v5438_v13 = vsel %vm5434_vm6, %v5437_v30, %v5405_v2 }
 0xce0   : > { %5445 = vst [vmem:[%s314_s18] sm:$0xff] %v5435_v27  ;;  %5446 = vst [vmem:[%s314_s18 + $0x8] sm:$0xff] %v5438_v13 }
 0xce2   : > { %v5413_v16 = vpop.permute.xlu0 %5412  ;;  %v5409_v55 = vpop.permute.xlu1 %5408 }
 0xce3   : > { %v5439_v19 = vsel %vm364_vm0, %v5375_v61, %v5409_v55 }
 0xce4   : > { %v5440_v42 = vsel %vm5432_vm5, %v5439_v19, %v5413_v16 }
 0xce6   : > { %v5417_v46 = vpop.permute.xlu0 %5416  ;;  %v5421_v56 = vpop.permute.xlu1 %5420 }
 0xce7   : > { %v5441_v8 = vsel %vm5434_vm6, %v5440_v42, %v5417_v46  ;;  %v5442_v43 = vsel %vm364_vm0, %v5379_v23, %v5421_v56 }
 0xce8   : > { %5447 = vst [vmem:[%s314_s18 + $0x10] sm:$0xff] %v5441_v8 }
 0xcea   : > { %v5425_v37 = vpop.permute.xlu1 %5424 }
 0xceb   : > { %v5443_v0 = vsel %vm5432_vm5, %v5442_v43, %v5425_v37 }
 0xcee   : > { %v5429_v11 = vpop.permute.xlu1 %5428 }
 0xcef   : > { %v5444_v28 = vsel %vm5434_vm6, %v5443_v0, %v5429_v11 }
 0xcf0   : > { %5448 = vst [vmem:[%s314_s18 + $0x18] sm:$0xff] %v5444_v28 }
 0xcf1   : > { %6843 = shalt.err (!%p6840_p9)
}
 0xcf2   : > { %s6844_s16 = scalar_lea.hbm %s8426_s10, 512  ;;  %s6848_s29 = scalar_lea.hbm %s8470_s6, 1024 }
 0xcf3   : > { %p6845_p1 = scmp.ne.s32.totalorder %s8426_s10, %s6844_s16  ;;  %p6849_p11 = scmp.lt.s32.totalorder %s8426_s10, %s8470_s6 }
 0xcf4   : > { %p6850_p13 = scmp.lt.s32.totalorder %s6848_s29, %s6844_s16 }
 0xcf5   : > { %p6846_p8 = pnand %p6845_p1, %p8488_p6 }
 0xcf6   : > { %p6851_p2 = por %p6850_p13, %p6849_p11 }
 0xcf7   : > { %p6847_p10 = pneg %p6846_p8 }
 0xcf9   : > { %p6852_p4 = pnand %p6851_p2, %p6847_p10 }
 0xcfb   : > { %6855 = shalt.err (!%p6852_p4)
}
 0xcfc   : > { %6383 = dma.vmem_to_hbm [thread:$0]  (%p8488_p6), %s5465_s30, 512, %s8426_s10, %s5450_s7  }
 0xcfd PF: > { %s5476_s20 = sand.u32 1, %s6890_s21   ;;  %p8489_p12 = scmp.ne.s32.totalorder %s8476_s28, 0 }
 0xcfe   : > { %p8490_p0 = scmp.ge.s32.totalorder %s6902_s24, 2  ;;  %s5477_s15 = scalar_lea.sflag [#allocation5], %s5476_s20 }
 0xd00   : > { %p6400_p5 = pnand %p8490_p0, %p8489_p12 }
 0xd02   : > { %p6401_p3 = pneg %p6400_p5 }
 0xd04   : > { %6885 = dma.done.wait (%p6401_p3), %s5477_s15, 512  }
 0xd05   : > { %6887 = vsyncadd (%p6401_p3), %s5477_s15, 4294966784  ;;  %p21_p7 = scmp.ge.s32.totalorder %s7044_s9, 4   ;;  %s8491_s21 = smov %s6894_s22 }
 0xd06   : > { %s8492_s22 = smov %s6898_s23  ;;  %s8493_s23 = smov %s7054_s11 }
 0xd07   : > { %s8494_s24 = smov %s7044_s9  ;;  %23 = sbr.rel (!%p21_p7) target bundleno = 7 (0x7), region = 104 }
 0xd0c   :  { %5482 = vsyncpa [#allocation4], 1 }
 0xd0d   :  { %5484 = vsyncpa [#allocation4 + $0x1], 1 }
 0xd0e   :  { %5485 = vsyncpa [#allocation7], 1 }
 0xd0f   :  { %5486 = vsyncpa [#allocation10], 1 }
 0xd10   :  { %5487 = vsyncpa [#allocation5], 1 }
 0xd11   :  { %5489 = vsyncpa [#allocation5 + $0x1], 1 }

</bundles_post_ra>
